<compile_context>
chip_gen: v5e
topology: v5e:2x2
jax: 0.10.0
libtpu: 0.0.40
codegen_flags: <defaults>
</compile_context>

<pallas_src>
import functools

import jax
import jax.numpy as jnp
from jax.experimental import pallas as pl
from jax.experimental.pallas import tpu as pltpu


def _round_up(x, m):
    return (x + m - 1) // m * m


# ---------------------------------------------------------------------------
# Fused autoencoder kernel: chain all Linear (+ optional ReLU) layers in VMEM
# ---------------------------------------------------------------------------
def _fused_autoencoder_kernel(x_ref, *refs, n_layers, relu_flags):
    # refs = (w0, b0, w1, b1, ..., w_{L-1}, b_{L-1}, o_ref)
    o_ref = refs[-1]
    h = x_ref[...]                                   # (m_tile, D_in)
    for i in range(n_layers):
        w = refs[2 * i][...]                         # (K, N) bf16 (pre-transposed)
        b = refs[2 * i + 1][...]                     # (1, N) f32
        # bf16 MXU matmul with f32 accumulation; epilogue in f32.
        y = jnp.dot(h.astype(w.dtype), w, preferred_element_type=jnp.float32)
        y = y + b
        if relu_flags[i]:
            y = jnp.maximum(y, 0.0)
        if i + 1 < n_layers:
            # bf16 intermediates: bit-identical (next dot casts to bf16 anyway), half the bytes.
            h = y.astype(jnp.bfloat16)
        else:
            o_ref[...] = y.astype(o_ref.dtype)


# ---------------------------------------------------------------------------
# Parameter prep: fold the ReLU-free latent bottleneck into one layer
# ---------------------------------------------------------------------------
def _maybe_fold_bottleneck(enc_layers, dec_layers, enc_flags, dec_flags):
    """Fold encoder-last (no ReLU) with decoder-first: (hW3+b3)W4+b4 == h(W3W4)+(b3W4+b4)."""
    w3, b3 = enc_layers[-1]            # (k_in, latent)
    w4, b4 = dec_layers[0]             # (latent, k_out)
    k_in, lat = w3.shape
    k_out = w4.shape[1]
    # Only fold when the fused matmul costs no more FLOPs than the two it replaces.
    if k_in * k_out > lat * (k_in + k_out):
        return enc_layers + dec_layers, enc_flags + dec_flags
    w3f = w3.astype(jnp.float32)
    w4f = w4.astype(jnp.float32)
    w_fold = (w3f @ w4f).astype(w3.dtype)                         # fold in f32, cast once
    b_fold = b3.astype(jnp.float32) @ w4f + b4.astype(jnp.float32)
    layers = enc_layers[:-1] + [(w_fold, b_fold)] + dec_layers[1:]
    flags = enc_flags[:-1] + [dec_flags[0]] + dec_flags[1:]
    return layers, flags


# ---------------------------------------------------------------------------
# Wrapper: one pallas_call for the whole encoder+decoder
# ---------------------------------------------------------------------------
def autoencoder_forward(params, x, *, grid_steps=None, out_dtype=None, max_m_tile=1024):
    """decoded = decoder(encoder(x)), computed by one fused Pallas call."""
    enc, dec = list(params["encoder"]), list(params["decoder"])
    enc_flags = [i < len(enc) - 1 for i in range(len(enc))]
    dec_flags = [i < len(dec) - 1 for i in range(len(dec))]
    layers, relu_flags = _maybe_fold_bottleneck(enc, dec, enc_flags, dec_flags)
    relu_flags = tuple(relu_flags)

    M, d_in = x.shape
    d_out = layers[-1][0].shape[1]
    out_dtype = x.dtype if out_dtype is None else out_dtype

    # Tiling: as few grid steps as possible. Default 2 steps so the "parallel" M axis still
    # feeds both v7x TensorCores; on single-TC v5e/v6e the extra step is ~0.35us. Tile is a
    # multiple of 8 (sublane) and capped so double-buffered tiles stay well inside scoped VMEM.
    m_pad8 = _round_up(M, 8)
    if grid_steps is None:
        grid_steps = 2 if m_pad8 >= 16 else 1
    m_tile = min(_round_up(pl.cdiv(m_pad8, grid_steps), 8), max_m_tile)
    m_pad = _round_up(M, m_tile)
    xp = x if m_pad == M else jnp.pad(x, ((0, m_pad - M), (0, 0)))

    flat_params = []
    for (w, b) in layers:
        flat_params.append(w)
        flat_params.append(b)

    kern = functools.partial(
        _fused_autoencoder_kernel, n_layers=len(layers), relu_flags=relu_flags
    )
    out_shape = jax.ShapeDtypeStruct((m_pad, d_out), out_dtype)
    grid = (m_pad // m_tile,)

    def build_and_call(single_buffer_weights):
        in_specs = [pl.BlockSpec((m_tile, d_in), lambda i: (i, 0))]   # activations: tiled over M
        for (w, b) in layers:
            if single_buffer_weights:
                # Constant index_map -> fetched once; second buffer would be dead VMEM.
                in_specs.append(
                    pl.BlockSpec(w.shape, lambda i: (0, 0), pipeline_mode=pl.Buffered(1)))
                in_specs.append(
                    pl.BlockSpec(b.shape, lambda i: (0, 0), pipeline_mode=pl.Buffered(1)))
            else:
                in_specs.append(pl.BlockSpec(w.shape, lambda i: (0, 0)))
                in_specs.append(pl.BlockSpec(b.shape, lambda i: (0, 0)))
        return pl.pallas_call(
            kern,
            out_shape=out_shape,
            grid=grid,
            in_specs=in_specs,
            out_specs=pl.BlockSpec((m_tile, d_out), lambda i: (i, 0)),   # lane-dense (256 = 2x128)
            compiler_params=pltpu.CompilerParams(
                dimension_semantics=("parallel",),                       # megacore-shard M on v7x
            ),
        )(xp, *flat_params)

    try:
        out = build_and_call(True)
    except Exception:
        # Older JAX may not accept single-buffer pipeline_mode on pallas_call BlockSpecs.
        out = build_and_call(False)

    return out[:M]


# ---------------------------------------------------------------------------
# Parameter construction (mirrors nn.Linear init) + pure-JAX reference
# ---------------------------------------------------------------------------
def init_autoencoder_params(key, input_dim, latent_dim, hidden_layers,
                            *, weight_dtype=jnp.bfloat16):
    """Weights stored pre-transposed (in_dim, out_dim) in bf16; biases (1, out_dim) f32."""
    def make_linear(k, fan_in, fan_out):
        kw, kb = jax.random.split(k)
        bound = 1.0 / jnp.sqrt(float(fan_in))
        w_t = jax.random.uniform(kw, (fan_in, fan_out), jnp.float32, -bound, bound)
        b = jax.random.uniform(kb, (fan_out,), jnp.float32, -bound, bound)
        return w_t.astype(weight_dtype), b.reshape(1, fan_out)

    enc_dims = [input_dim] + list(hidden_layers) + [latent_dim]
    dec_dims = [latent_dim] + list(reversed(hidden_layers)) + [input_dim]

    params = {"encoder": [], "decoder": []}
    for i in range(len(enc_dims) - 1):
        key, sub = jax.random.split(key)
        params["encoder"].append(make_linear(sub, enc_dims[i], enc_dims[i + 1]))
    for i in range(len(dec_dims) - 1):
        key, sub = jax.random.split(key)
        params["decoder"].append(make_linear(sub, dec_dims[i], dec_dims[i + 1]))
    return params


def autoencoder_forward_ref(params, x):
    """Pure-JAX reference (unfolded layers, same bf16-matmul / f32-epilogue semantics)."""
    layers = params["encoder"] + params["decoder"]
    n_enc, n_dec = len(params["encoder"]), len(params["decoder"])
    relu_flags = (
        [i < n_enc - 1 for i in range(n_enc)] + [i < n_dec - 1 for i in range(n_dec)]
    )
    h = x
    for (w, b), relu in zip(layers, relu_flags):
        y = jnp.dot(h.astype(w.dtype), w, preferred_element_type=jnp.float32) + b
        h = jnp.maximum(y, 0.0) if relu else y
    return h.astype(x.dtype)


if __name__ == "__main__":
    # Shapes consistent with the module's (input_dim, latent_dim, hidden_layers) API.
    batch = 512
    input_dim = 256
    latent_dim = 32
    hidden_layers = [128, 64]

    key = jax.random.PRNGKey(0)
    key_params, key_x = jax.random.split(key)

    params = init_autoencoder_params(key_params, input_dim, latent_dim, hidden_layers)
    x = jax.random.normal(key_x, (batch, input_dim), dtype=jnp.float32)

    decoded = autoencoder_forward(params, x)            # 2 grid steps of 256 rows
    decoded = jax.block_until_ready(decoded)

    ref = autoencoder_forward_ref(params, x)
    assert decoded.shape == (batch, input_dim)
    # bf16 matmul inputs + folded bottleneck -> loose-but-safe tolerance vs the reference.
    assert jnp.allclose(decoded, ref, atol=2e-2, rtol=2e-2), "mismatch vs JAX reference"

    print("KERNEL_OK")
</pallas_src>

<mosaic_0001>
module attributes {stable_mosaic.version = 11 : i64} {
  func.func @_fused_autoencoder_kernel(%arg0: i32, %arg1: memref<256x256xf32, #tpu.memory_space<vmem>>, %arg2: memref<256x128xbf16, #tpu.memory_space<vmem>>, %arg3: memref<1x128xf32, #tpu.memory_space<vmem>>, %arg4: memref<128x64xbf16, #tpu.memory_space<vmem>>, %arg5: memref<1x64xf32, #tpu.memory_space<vmem>>, %arg6: memref<64x64xbf16, #tpu.memory_space<vmem>>, %arg7: memref<1x64xf32, #tpu.memory_space<vmem>>, %arg8: memref<64x128xbf16, #tpu.memory_space<vmem>>, %arg9: memref<1x128xf32, #tpu.memory_space<vmem>>, %arg10: memref<128x256xbf16, #tpu.memory_space<vmem>>, %arg11: memref<1x256xf32, #tpu.memory_space<vmem>>, %arg12: memref<256x256xf32, #tpu.memory_space<vmem>>) attributes {dimension_semantics = [#tpu.dimension_semantics<parallel>], iteration_bounds = array<i64: 2>, scalar_prefetch = 0 : i64, scratch_operands = 0 : i64, tpu.core_type = #tpu.core_type<tc>, window_params = [{transform_indices = @transform_0, window_bounds = array<i64: 256, 256>}, {pipeline_mode = #tpu.pipeline_mode<synchronous>, transform_indices = @transform_1, window_bounds = array<i64: 256, 128>}, {pipeline_mode = #tpu.pipeline_mode<synchronous>, transform_indices = @transform_2, window_bounds = array<i64: 1, 128>}, {pipeline_mode = #tpu.pipeline_mode<synchronous>, transform_indices = @transform_3, window_bounds = array<i64: 128, 64>}, {pipeline_mode = #tpu.pipeline_mode<synchronous>, transform_indices = @transform_4, window_bounds = array<i64: 1, 64>}, {pipeline_mode = #tpu.pipeline_mode<synchronous>, transform_indices = @transform_5, window_bounds = array<i64: 64, 64>}, {pipeline_mode = #tpu.pipeline_mode<synchronous>, transform_indices = @transform_6, window_bounds = array<i64: 1, 64>}, {pipeline_mode = #tpu.pipeline_mode<synchronous>, transform_indices = @transform_7, window_bounds = array<i64: 64, 128>}, {pipeline_mode = #tpu.pipeline_mode<synchronous>, transform_indices = @transform_8, window_bounds = array<i64: 1, 128>}, {pipeline_mode = #tpu.pipeline_mode<synchronous>, transform_indices = @transform_9, window_bounds = array<i64: 128, 256>}, {pipeline_mode = #tpu.pipeline_mode<synchronous>, transform_indices = @transform_10, window_bounds = array<i64: 1, 256>}, {transform_indices = @transform_11, window_bounds = array<i64: 256, 256>}]} {
    %c0 = arith.constant 0 : index
    %c0_0 = arith.constant 0 : index
    %0 = vector.load %arg1[%c0, %c0_0] : memref<256x256xf32, #tpu.memory_space<vmem>>, vector<256x256xf32>
    %c0_1 = arith.constant 0 : index
    %c0_2 = arith.constant 0 : index
    %1 = vector.load %arg2[%c0_1, %c0_2] : memref<256x128xbf16, #tpu.memory_space<vmem>>, vector<256x128xbf16>
    %c0_3 = arith.constant 0 : index
    %c0_4 = arith.constant 0 : index
    %2 = vector.load %arg3[%c0_3, %c0_4] : memref<1x128xf32, #tpu.memory_space<vmem>>, vector<1x128xf32>
    %3 = arith.truncf %0 : vector<256x256xf32> to vector<256x256xbf16>
    %cst = arith.constant dense<0.000000e+00> : vector<256x128xf32>
    %4 = tpu.matmul %3, %1, %cst {dimension_numbers = #tpu.dot_dimension_numbers<[1], [0], [0], [1], [0, 0, 1, 1], [], []>} : vector<256x256xbf16>, vector<256x128xbf16>, vector<256x128xf32> -> vector<256x128xf32>
    %5 = vector.broadcast %2 : vector<1x128xf32> to vector<256x128xf32>
    %6 = arith.addf %4, %5 : vector<256x128xf32>
    %cst_5 = arith.constant 0.000000e+00 : f32
    %7 = vector.broadcast %cst_5 : f32 to vector<256x128xf32>
    %8 = arith.maximumf %6, %7 : vector<256x128xf32>
    %9 = arith.truncf %8 : vector<256x128xf32> to vector<256x128xbf16>
    %c0_6 = arith.constant 0 : index
    %c0_7 = arith.constant 0 : index
    %10 = vector.load %arg4[%c0_6, %c0_7] : memref<128x64xbf16, #tpu.memory_space<vmem>>, vector<128x64xbf16>
    %c0_8 = arith.constant 0 : index
    %c0_9 = arith.constant 0 : index
    %11 = vector.load %arg5[%c0_8, %c0_9] : memref<1x64xf32, #tpu.memory_space<vmem>>, vector<1x64xf32>
    %cst_10 = arith.constant dense<0.000000e+00> : vector<256x64xf32>
    %12 = tpu.matmul %9, %10, %cst_10 {dimension_numbers = #tpu.dot_dimension_numbers<[1], [0], [0], [1], [0, 0, 1, 1], [], []>} : vector<256x128xbf16>, vector<128x64xbf16>, vector<256x64xf32> -> vector<256x64xf32>
    %13 = vector.broadcast %11 : vector<1x64xf32> to vector<256x64xf32>
    %14 = arith.addf %12, %13 : vector<256x64xf32>
    %cst_11 = arith.constant 0.000000e+00 : f32
    %15 = vector.broadcast %cst_11 : f32 to vector<256x64xf32>
    %16 = arith.maximumf %14, %15 : vector<256x64xf32>
    %17 = arith.truncf %16 : vector<256x64xf32> to vector<256x64xbf16>
    %c0_12 = arith.constant 0 : index
    %c0_13 = arith.constant 0 : index
    %18 = vector.load %arg6[%c0_12, %c0_13] : memref<64x64xbf16, #tpu.memory_space<vmem>>, vector<64x64xbf16>
    %c0_14 = arith.constant 0 : index
    %c0_15 = arith.constant 0 : index
    %19 = vector.load %arg7[%c0_14, %c0_15] : memref<1x64xf32, #tpu.memory_space<vmem>>, vector<1x64xf32>
    %cst_16 = arith.constant dense<0.000000e+00> : vector<256x64xf32>
    %20 = tpu.matmul %17, %18, %cst_16 {dimension_numbers = #tpu.dot_dimension_numbers<[1], [0], [0], [1], [0, 0, 1, 1], [], []>} : vector<256x64xbf16>, vector<64x64xbf16>, vector<256x64xf32> -> vector<256x64xf32>
    %21 = vector.broadcast %19 : vector<1x64xf32> to vector<256x64xf32>
    %22 = arith.addf %20, %21 : vector<256x64xf32>
    %cst_17 = arith.constant 0.000000e+00 : f32
    %23 = vector.broadcast %cst_17 : f32 to vector<256x64xf32>
    %24 = arith.maximumf %22, %23 : vector<256x64xf32>
    %25 = arith.truncf %24 : vector<256x64xf32> to vector<256x64xbf16>
    %c0_18 = arith.constant 0 : index
    %c0_19 = arith.constant 0 : index
    %26 = vector.load %arg8[%c0_18, %c0_19] : memref<64x128xbf16, #tpu.memory_space<vmem>>, vector<64x128xbf16>
    %c0_20 = arith.constant 0 : index
    %c0_21 = arith.constant 0 : index
    %27 = vector.load %arg9[%c0_20, %c0_21] : memref<1x128xf32, #tpu.memory_space<vmem>>, vector<1x128xf32>
    %cst_22 = arith.constant dense<0.000000e+00> : vector<256x128xf32>
    %28 = tpu.matmul %25, %26, %cst_22 {dimension_numbers = #tpu.dot_dimension_numbers<[1], [0], [0], [1], [0, 0, 1, 1], [], []>} : vector<256x64xbf16>, vector<64x128xbf16>, vector<256x128xf32> -> vector<256x128xf32>
    %29 = vector.broadcast %27 : vector<1x128xf32> to vector<256x128xf32>
    %30 = arith.addf %28, %29 : vector<256x128xf32>
    %cst_23 = arith.constant 0.000000e+00 : f32
    %31 = vector.broadcast %cst_23 : f32 to vector<256x128xf32>
    %32 = arith.maximumf %30, %31 : vector<256x128xf32>
    %33 = arith.truncf %32 : vector<256x128xf32> to vector<256x128xbf16>
    %c0_24 = arith.constant 0 : index
    %c0_25 = arith.constant 0 : index
    %34 = vector.load %arg10[%c0_24, %c0_25] : memref<128x256xbf16, #tpu.memory_space<vmem>>, vector<128x256xbf16>
    %c0_26 = arith.constant 0 : index
    %c0_27 = arith.constant 0 : index
    %35 = vector.load %arg11[%c0_26, %c0_27] : memref<1x256xf32, #tpu.memory_space<vmem>>, vector<1x256xf32>
    %cst_28 = arith.constant dense<0.000000e+00> : vector<256x256xf32>
    %36 = tpu.matmul %33, %34, %cst_28 {dimension_numbers = #tpu.dot_dimension_numbers<[1], [0], [0], [1], [0, 0, 1, 1], [], []>} : vector<256x128xbf16>, vector<128x256xbf16>, vector<256x256xf32> -> vector<256x256xf32>
    %37 = vector.broadcast %35 : vector<1x256xf32> to vector<256x256xf32>
    %38 = arith.addf %36, %37 : vector<256x256xf32>
    %c0_29 = arith.constant 0 : index
    %c0_30 = arith.constant 0 : index
    %39 = vector.load %arg12[%c0_29, %c0_30] : memref<256x256xf32, #tpu.memory_space<vmem>>, vector<256x256xf32>
    tpu.vector_store %arg12[%c0_29, %c0_30], %38 {strides = array<i32>} : memref<256x256xf32, #tpu.memory_space<vmem>>, vector<256x256xf32>,
    return
  }
  func.func @transform_0(%arg0: i32) -> (i32, i32) {
    %c0_i32 = arith.constant 0 : i32
    %c0_i32_0 = arith.constant 0 : i32
    return %arg0, %c0_i32 : i32, i32
  }
  func.func @transform_1(%arg0: i32) -> (i32, i32) {
    %c0_i32 = arith.constant 0 : i32
    %c0_i32_0 = arith.constant 0 : i32
    %c0_i32_1 = arith.constant 0 : i32
    return %c0_i32, %c0_i32_0 : i32, i32
  }
  func.func @transform_2(%arg0: i32) -> (i32, i32) {
    %c0_i32 = arith.constant 0 : i32
    %c0_i32_0 = arith.constant 0 : i32
    %c0_i32_1 = arith.constant 0 : i32
    return %c0_i32, %c0_i32_0 : i32, i32
  }
  func.func @transform_3(%arg0: i32) -> (i32, i32) {
    %c0_i32 = arith.constant 0 : i32
    %c0_i32_0 = arith.constant 0 : i32
    %c0_i32_1 = arith.constant 0 : i32
    return %c0_i32, %c0_i32_0 : i32, i32
  }
  func.func @transform_4(%arg0: i32) -> (i32, i32) {
    %c0_i32 = arith.constant 0 : i32
    %c0_i32_0 = arith.constant 0 : i32
    %c0_i32_1 = arith.constant 0 : i32
    return %c0_i32, %c0_i32_0 : i32, i32
  }
  func.func @transform_5(%arg0: i32) -> (i32, i32) {
    %c0_i32 = arith.constant 0 : i32
    %c0_i32_0 = arith.constant 0 : i32
    %c0_i32_1 = arith.constant 0 : i32
    return %c0_i32, %c0_i32_0 : i32, i32
  }
  func.func @transform_6(%arg0: i32) -> (i32, i32) {
    %c0_i32 = arith.constant 0 : i32
    %c0_i32_0 = arith.constant 0 : i32
    %c0_i32_1 = arith.constant 0 : i32
    return %c0_i32, %c0_i32_0 : i32, i32
  }
  func.func @transform_7(%arg0: i32) -> (i32, i32) {
    %c0_i32 = arith.constant 0 : i32
    %c0_i32_0 = arith.constant 0 : i32
    %c0_i32_1 = arith.constant 0 : i32
    return %c0_i32, %c0_i32_0 : i32, i32
  }
  func.func @transform_8(%arg0: i32) -> (i32, i32) {
    %c0_i32 = arith.constant 0 : i32
    %c0_i32_0 = arith.constant 0 : i32
    %c0_i32_1 = arith.constant 0 : i32
    return %c0_i32, %c0_i32_0 : i32, i32
  }
  func.func @transform_9(%arg0: i32) -> (i32, i32) {
    %c0_i32 = arith.constant 0 : i32
    %c0_i32_0 = arith.constant 0 : i32
    %c0_i32_1 = arith.constant 0 : i32
    return %c0_i32, %c0_i32_0 : i32, i32
  }
  func.func @transform_10(%arg0: i32) -> (i32, i32) {
    %c0_i32 = arith.constant 0 : i32
    %c0_i32_0 = arith.constant 0 : i32
    %c0_i32_1 = arith.constant 0 : i32
    return %c0_i32, %c0_i32_0 : i32, i32
  }
  func.func @transform_11(%arg0: i32) -> (i32, i32) {
    %c0_i32 = arith.constant 0 : i32
    %c0_i32_0 = arith.constant 0 : i32
    return %arg0, %c0_i32 : i32, i32
  }
}

module attributes {stable_mosaic.version = 11 : i64} {
  func.func @_fused_autoencoder_kernel(%arg0: i32, %arg1: memref<256x256xf32, #tpu.memory_space<vmem>>, %arg2: memref<256x128xbf16, #tpu.memory_space<vmem>>, %arg3: memref<1x128xf32, #tpu.memory_space<vmem>>, %arg4: memref<128x64xbf16, #tpu.memory_space<vmem>>, %arg5: memref<1x64xf32, #tpu.memory_space<vmem>>, %arg6: memref<64x64xbf16, #tpu.memory_space<vmem>>, %arg7: memref<1x64xf32, #tpu.memory_space<vmem>>, %arg8: memref<64x128xbf16, #tpu.memory_space<vmem>>, %arg9: memref<1x128xf32, #tpu.memory_space<vmem>>, %arg10: memref<128x256xbf16, #tpu.memory_space<vmem>>, %arg11: memref<1x256xf32, #tpu.memory_space<vmem>>, %arg12: memref<256x256xf32, #tpu.memory_space<vmem>>) attributes {dimension_semantics = [#tpu.dimension_semantics<parallel>], iteration_bounds = array<i64: 2>, scalar_prefetch = 0 : i64, scratch_operands = 0 : i64, tpu.core_type = #tpu.core_type<tc>, window_params = [{transform_indices = @transform_0, window_bounds = array<i64: 256, 256>}, {pipeline_mode = #tpu.pipeline_mode<synchronous>, transform_indices = @transform_1, window_bounds = array<i64: 256, 128>}, {pipeline_mode = #tpu.pipeline_mode<synchronous>, transform_indices = @transform_2, window_bounds = array<i64: 1, 128>}, {pipeline_mode = #tpu.pipeline_mode<synchronous>, transform_indices = @transform_3, window_bounds = array<i64: 128, 64>}, {pipeline_mode = #tpu.pipeline_mode<synchronous>, transform_indices = @transform_4, window_bounds = array<i64: 1, 64>}, {pipeline_mode = #tpu.pipeline_mode<synchronous>, transform_indices = @transform_5, window_bounds = array<i64: 64, 64>}, {pipeline_mode = #tpu.pipeline_mode<synchronous>, transform_indices = @transform_6, window_bounds = array<i64: 1, 64>}, {pipeline_mode = #tpu.pipeline_mode<synchronous>, transform_indices = @transform_7, window_bounds = array<i64: 64, 128>}, {pipeline_mode = #tpu.pipeline_mode<synchronous>, transform_indices = @transform_8, window_bounds = array<i64: 1, 128>}, {pipeline_mode = #tpu.pipeline_mode<synchronous>, transform_indices = @transform_9, window_bounds = array<i64: 128, 256>}, {pipeline_mode = #tpu.pipeline_mode<synchronous>, transform_indices = @transform_10, window_bounds = array<i64: 1, 256>}, {transform_indices = @transform_11, window_bounds = array<i64: 256, 256>}]} {
    %c0 = arith.constant 0 : index
    %c0_0 = arith.constant 0 : index
    %0 = vector.load %arg1[%c0, %c0_0] : memref<256x256xf32, #tpu.memory_space<vmem>>, vector<256x256xf32>
    %c0_1 = arith.constant 0 : index
    %c0_2 = arith.constant 0 : index
    %1 = vector.load %arg2[%c0_1, %c0_2] : memref<256x128xbf16, #tpu.memory_space<vmem>>, vector<256x128xbf16>
    %c0_3 = arith.constant 0 : index
    %c0_4 = arith.constant 0 : index
    %2 = vector.load %arg3[%c0_3, %c0_4] : memref<1x128xf32, #tpu.memory_space<vmem>>, vector<1x128xf32>
    %3 = arith.truncf %0 : vector<256x256xf32> to vector<256x256xbf16>
    %cst = arith.constant dense<0.000000e+00> : vector<256x128xf32>
    %4 = tpu.matmul %3, %1, %cst {dimension_numbers = #tpu.dot_dimension_numbers<[1], [0], [0], [1], [0, 0, 1, 1], [], []>} : vector<256x256xbf16>, vector<256x128xbf16>, vector<256x128xf32> -> vector<256x128xf32>
    %5 = vector.broadcast %2 : vector<1x128xf32> to vector<256x128xf32>
    %6 = arith.addf %4, %5 : vector<256x128xf32>
    %cst_5 = arith.constant 0.000000e+00 : f32
    %7 = vector.broadcast %cst_5 : f32 to vector<256x128xf32>
    %8 = arith.maximumf %6, %7 : vector<256x128xf32>
    %9 = arith.truncf %8 : vector<256x128xf32> to vector<256x128xbf16>
    %c0_6 = arith.constant 0 : index
    %c0_7 = arith.constant 0 : index
    %10 = vector.load %arg4[%c0_6, %c0_7] : memref<128x64xbf16, #tpu.memory_space<vmem>>, vector<128x64xbf16>
    %c0_8 = arith.constant 0 : index
    %c0_9 = arith.constant 0 : index
    %11 = vector.load %arg5[%c0_8, %c0_9] : memref<1x64xf32, #tpu.memory_space<vmem>>, vector<1x64xf32>
    %cst_10 = arith.constant dense<0.000000e+00> : vector<256x64xf32>
    %12 = tpu.matmul %9, %10, %cst_10 {dimension_numbers = #tpu.dot_dimension_numbers<[1], [0], [0], [1], [0, 0, 1, 1], [], []>} : vector<256x128xbf16>, vector<128x64xbf16>, vector<256x64xf32> -> vector<256x64xf32>
    %13 = vector.broadcast %11 : vector<1x64xf32> to vector<256x64xf32>
    %14 = arith.addf %12, %13 : vector<256x64xf32>
    %cst_11 = arith.constant 0.000000e+00 : f32
    %15 = vector.broadcast %cst_11 : f32 to vector<256x64xf32>
    %16 = arith.maximumf %14, %15 : vector<256x64xf32>
    %17 = arith.truncf %16 : vector<256x64xf32> to vector<256x64xbf16>
    %c0_12 = arith.constant 0 : index
    %c0_13 = arith.constant 0 : index
    %18 = vector.load %arg6[%c0_12, %c0_13] : memref<64x64xbf16, #tpu.memory_space<vmem>>, vector<64x64xbf16>
    %c0_14 = arith.constant 0 : index
    %c0_15 = arith.constant 0 : index
    %19 = vector.load %arg7[%c0_14, %c0_15] : memref<1x64xf32, #tpu.memory_space<vmem>>, vector<1x64xf32>
    %cst_16 = arith.constant dense<0.000000e+00> : vector<256x64xf32>
    %20 = tpu.matmul %17, %18, %cst_16 {dimension_numbers = #tpu.dot_dimension_numbers<[1], [0], [0], [1], [0, 0, 1, 1], [], []>} : vector<256x64xbf16>, vector<64x64xbf16>, vector<256x64xf32> -> vector<256x64xf32>
    %21 = vector.broadcast %19 : vector<1x64xf32> to vector<256x64xf32>
    %22 = arith.addf %20, %21 : vector<256x64xf32>
    %cst_17 = arith.constant 0.000000e+00 : f32
    %23 = vector.broadcast %cst_17 : f32 to vector<256x64xf32>
    %24 = arith.maximumf %22, %23 : vector<256x64xf32>
    %25 = arith.truncf %24 : vector<256x64xf32> to vector<256x64xbf16>
    %c0_18 = arith.constant 0 : index
    %c0_19 = arith.constant 0 : index
    %26 = vector.load %arg8[%c0_18, %c0_19] : memref<64x128xbf16, #tpu.memory_space<vmem>>, vector<64x128xbf16>
    %c0_20 = arith.constant 0 : index
    %c0_21 = arith.constant 0 : index
    %27 = vector.load %arg9[%c0_20, %c0_21] : memref<1x128xf32, #tpu.memory_space<vmem>>, vector<1x128xf32>
    %cst_22 = arith.constant dense<0.000000e+00> : vector<256x128xf32>
    %28 = tpu.matmul %25, %26, %cst_22 {dimension_numbers = #tpu.dot_dimension_numbers<[1], [0], [0], [1], [0, 0, 1, 1], [], []>} : vector<256x64xbf16>, vector<64x128xbf16>, vector<256x128xf32> -> vector<256x128xf32>
    %29 = vector.broadcast %27 : vector<1x128xf32> to vector<256x128xf32>
    %30 = arith.addf %28, %29 : vector<256x128xf32>
    %cst_23 = arith.constant 0.000000e+00 : f32
    %31 = vector.broadcast %cst_23 : f32 to vector<256x128xf32>
    %32 = arith.maximumf %30, %31 : vector<256x128xf32>
    %33 = arith.truncf %32 : vector<256x128xf32> to vector<256x128xbf16>
    %c0_24 = arith.constant 0 : index
    %c0_25 = arith.constant 0 : index
    %34 = vector.load %arg10[%c0_24, %c0_25] : memref<128x256xbf16, #tpu.memory_space<vmem>>, vector<128x256xbf16>
    %c0_26 = arith.constant 0 : index
    %c0_27 = arith.constant 0 : index
    %35 = vector.load %arg11[%c0_26, %c0_27] : memref<1x256xf32, #tpu.memory_space<vmem>>, vector<1x256xf32>
    %cst_28 = arith.constant dense<0.000000e+00> : vector<256x256xf32>
    %36 = tpu.matmul %33, %34, %cst_28 {dimension_numbers = #tpu.dot_dimension_numbers<[1], [0], [0], [1], [0, 0, 1, 1], [], []>} : vector<256x128xbf16>, vector<128x256xbf16>, vector<256x256xf32> -> vector<256x256xf32>
    %37 = vector.broadcast %35 : vector<1x256xf32> to vector<256x256xf32>
    %38 = arith.addf %36, %37 : vector<256x256xf32>
    %c0_29 = arith.constant 0 : index
    %c0_30 = arith.constant 0 : index
    %39 = vector.load %arg12[%c0_29, %c0_30] : memref<256x256xf32, #tpu.memory_space<vmem>>, vector<256x256xf32>
    tpu.vector_store %arg12[%c0_29, %c0_30], %38 {strides = array<i32>} : memref<256x256xf32, #tpu.memory_space<vmem>>, vector<256x256xf32>,
    return
  }
  func.func @transform_0(%arg0: i32) -> (i32, i32) {
    %c0_i32 = arith.constant 0 : i32
    %c0_i32_0 = arith.constant 0 : i32
    return %arg0, %c0_i32 : i32, i32
  }
  func.func @transform_1(%arg0: i32) -> (i32, i32) {
    %c0_i32 = arith.constant 0 : i32
    %c0_i32_0 = arith.constant 0 : i32
    %c0_i32_1 = arith.constant 0 : i32
    return %c0_i32, %c0_i32_0 : i32, i32
  }
  func.func @transform_2(%arg0: i32) -> (i32, i32) {
    %c0_i32 = arith.constant 0 : i32
    %c0_i32_0 = arith.constant 0 : i32
    %c0_i32_1 = arith.constant 0 : i32
    return %c0_i32, %c0_i32_0 : i32, i32
  }
  func.func @transform_3(%arg0: i32) -> (i32, i32) {
    %c0_i32 = arith.constant 0 : i32
    %c0_i32_0 = arith.constant 0 : i32
    %c0_i32_1 = arith.constant 0 : i32
    return %c0_i32, %c0_i32_0 : i32, i32
  }
  func.func @transform_4(%arg0: i32) -> (i32, i32) {
    %c0_i32 = arith.constant 0 : i32
    %c0_i32_0 = arith.constant 0 : i32
    %c0_i32_1 = arith.constant 0 : i32
    return %c0_i32, %c0_i32_0 : i32, i32
  }
  func.func @transform_5(%arg0: i32) -> (i32, i32) {
    %c0_i32 = arith.constant 0 : i32
    %c0_i32_0 = arith.constant 0 : i32
    %c0_i32_1 = arith.constant 0 : i32
    return %c0_i32, %c0_i32_0 : i32, i32
  }
  func.func @transform_6(%arg0: i32) -> (i32, i32) {
    %c0_i32 = arith.constant 0 : i32
    %c0_i32_0 = arith.constant 0 : i32
    %c0_i32_1 = arith.constant 0 : i32
    return %c0_i32, %c0_i32_0 : i32, i32
  }
  func.func @transform_7(%arg0: i32) -> (i32, i32) {
    %c0_i32 = arith.constant 0 : i32
    %c0_i32_0 = arith.constant 0 : i32
    %c0_i32_1 = arith.constant 0 : i32
    return %c0_i32, %c0_i32_0 : i32, i32
  }
  func.func @transform_8(%arg0: i32) -> (i32, i32) {
    %c0_i32 = arith.constant 0 : i32
    %c0_i32_0 = arith.constant 0 : i32
    %c0_i32_1 = arith.constant 0 : i32
    return %c0_i32, %c0_i32_0 : i32, i32
  }
  func.func @transform_9(%arg0: i32) -> (i32, i32) {
    %c0_i32 = arith.constant 0 : i32
    %c0_i32_0 = arith.constant 0 : i32
    %c0_i32_1 = arith.constant 0 : i32
    return %c0_i32, %c0_i32_0 : i32, i32
  }
  func.func @transform_10(%arg0: i32) -> (i32, i32) {
    %c0_i32 = arith.constant 0 : i32
    %c0_i32_0 = arith.constant 0 : i32
    %c0_i32_1 = arith.constant 0 : i32
    return %c0_i32, %c0_i32_0 : i32, i32
  }
  func.func @transform_11(%arg0: i32) -> (i32, i32) {
    %c0_i32 = arith.constant 0 : i32
    %c0_i32_0 = arith.constant 0 : i32
    return %arg0, %c0_i32 : i32, i32
  }
}

</mosaic_0001>

<bundles_post_ra>
// kernel: tpu_custom_call.1
= control target key start
LH: loop header
LB: loop body
LE: loop exit
PB: predicated region body
PF: predicated region fallthrough
CT: control target
= control target key end

     0   :  { %s3299_s0 = inlined_call_operand.hbm [shape: f32[512,256], index: 0, kind: input, shape index: {}]   ;;  %s3300_s1 = inlined_call_operand.hbm [shape: bf16[256,128], index: 1, kind: input, shape index: {}]   ;;  %s3301_s2 = inlined_call_operand.vmem [shape: f32[1,128], index: 2, kind: input, shape index: {}]   ;;  %s3302_s3 = inlined_call_operand.vmem [shape: bf16[128,64], index: 3, kind: input, shape index: {}]   ;;  %s3303_s4 = inlined_call_operand.vmem [shape: f32[1,64], index: 4, kind: input, shape index: {}]   ;;  %s3304_s5 = inlined_call_operand.vmem [shape: bf16[64,64], index: 5, kind: input, shape index: {}]   ;;  %s3305_s6 = inlined_call_operand.vmem [shape: f32[1,64], index: 6, kind: input, shape index: {}]   ;;  %s3306_s7 = inlined_call_operand.vmem [shape: bf16[64,128], index: 7, kind: input, shape index: {}]   ;;  %s3307_s8 = inlined_call_operand.vmem [shape: f32[1,128], index: 8, kind: input, shape index: {}]   ;;  %s3308_s9 = inlined_call_operand.hbm [shape: bf16[128,256], index: 9, kind: input, shape index: {}]   ;;  %s3309_s10 = inlined_call_operand.vmem [shape: f32[1,256], index: 10, kind: input, shape index: {}]   ;;  %s3310_s11 = inlined_call_operand.hbm [shape: f32[512,256], index: 11, kind: output, shape index: {}]  }
   0x1   :  { %3314 = sst [smem:[#allocation15_spill]] %s3300_s1 }
   0x2   :  { %3315 = sst [smem:[#allocation16_spill]] %s3308_s9 }
   0x3   :  { %16 = vsyncpa [#allocation3], 0 }
   0x4   :  { %18 = vsyncpa [#allocation3 + $0x1], 0 }
   0x5   :  { %19 = vsyncpa [#allocation6], 0 }
   0x6   :  { %20 = vsyncpa [#allocation4], 0 }
   0x7   :  { %22 = vsyncpa [#allocation4 + $0x1], 0  ;;  %s2626_s17 = smov 0   ;;  %s2628_s18 = smov 0  }
   0x8   :  { %s2630_s19 = smov 0   ;;  %s2632_s20 = smov 0  }
   0x9 LB: > { %3316 = sst [smem:[#allocation12_spill]] %s2550_s19  ;;  %s2647_s21 = sadd.s32 4294967295, %s2554_s20   ;;  %s2554_s20 = sphi %s2632_s20, %s3327_s20   ;;  %s2550_s19 = sphi %s2630_s19, %s3329_s19   ;;  %s2546_s18 = sphi %s2628_s18, %s3331_s18   ;;  %s2542_s17 = sphi %s2626_s17, %s3330_s17  }
   0xa   : > { %s1999_s22 = sadd.s32 4294967294, %s2554_s20   ;;  %p48_p0 = scmp.ne.s32.totalorder %s2546_s18, %s2542_s17 }
   0xb   : > { %p49_p1 = scmp.eq.s32.totalorder %s2647_s21, 0  ;;  %p282_p2 = scmp.eq.s32.totalorder %s2647_s21, 1 }
   0xc   : > { %p288_p3 = scmp.eq.s32.totalorder %s1999_s22, 1  ;;  %p2000_p5 = scmp.ge.s32.totalorder %s2554_s20, 1 }
   0xd   : > { %p2656_p4 = por %p49_p1, %p48_p0  ;;  %p295_p7 = scmp.lt.s32.totalorder %s2554_s20, 3 }
   0xe   : > { %p2661_p6 = por %p288_p3, %p48_p0  ;;  %s3319_s1 = sld [smem:[#allocation15_spill]] }
   0xf   : > { %p2669_p8 = pnand %p2000_p5, %p295_p7  ;;  %s2556_s29 = smov [#allocation5]  }
  0x10   : > { %s308_s30 = sshll.u32 %s2556_s29, 4  ;;  %s3321_s9 = sld [smem:[#allocation16_spill]]  ;;  %s309_s30 = int_to_ptr.vmem [resolvable:$true] %s308_s30 }
  0x11   : > { %p2327_p9 = pneg %p2669_p8  ;;  %s2557_s15 = smov 64  }
  0x12   : > { %s2558_s16 = smov 4   ;;  %s2559_s22 = smov [#allocation7]  }
  0x13   : > { %p2328_p10 = pnand %p2327_p9, %p49_p1  ;;  %s343_s25 = sshll.u32 %s2559_s22, 4  ;;  %s344_s25 = int_to_ptr.vmem [resolvable:$true] %s343_s25 }
  0x14   : > { %s306_s27 = sshll.u32 %s3319_s1, 4  ;;  %s2560_s26 = smov 128   ;;  %s307_s27 = int_to_ptr.hbm [resolvable:$true] %s306_s27 }
  0x15   : > { %2330 = dma.hbm_to_vmem [thread:$0]  (!%p2328_p10), %s307_s27, 2048, %s309_s30, [#allocation6], %s2557_s15, %s2557_s15, %s2558_s16  }
  0x16   : > { %s341_s14 = sshll.u32 %s3321_s9, 4  ;;  %s2561_s29 = smov 8   ;;  %s342_s14 = int_to_ptr.hbm [resolvable:$true] %s341_s14 }
  0x17   : > { %2333 = dma.hbm_to_vmem [thread:$0]  (!%p2328_p10), %s342_s14, 2048, %s344_s25, [#allocation6], %s2560_s26, %s2560_s26, %s2561_s29  }
  0x18   : > { %s2682_s12 = sadd.s32 1, %s2554_s20   ;;  %s35_s1 = sadd.s32 1, %s2550_s19 }
  0x19   : > { %3322 = sst [smem:[#allocation13_spill]] %s2682_s12  ;;  %s32_s13 = ssub.s32 %s2554_s20, %s2682_s12 }
  0x1a   : > { %p33_p12 = scmp.eq.s32.totalorder %s32_s13, 0  ;;  %p42_p13 = scmp.ne.s32.totalorder %s2550_s19, %s2546_s18 }
  0x1b   : > { %p43_p0 = scmp.eq.s32.totalorder %s2554_s20, 0  ;;  %p2344_p7 = scmp.lt.s32.totalorder %s2554_s20, 2 }
  0x1c   : > { %s2691_s9 = scalar_select %p33_p12, %s2550_s19, %s35_s1  }
  0x1d   : > { %p44_p3 = por %p43_p0, %p42_p13  ;;  %p2695_p5 = por %p282_p2, %p42_p13 }
  0x1e   : > { %3323 = sst [smem:[#allocation14_spill]] %s2691_s9  ;;  %s360_s30 = sand.u32 1, %s2550_s19  }
  0x1f   : > { %s2004_s15 = sshll.u32 %s360_s30, 9  ;;  %s2244_s14 = sshll.u32 %s2554_s20, 9 }
  0x20   : > { %s370_s25 = scalar_lea.hbm %s3299_s0, %s2244_s14  ;;  %s364_s26 = scalar_lea.vmem [#allocation2], %s2004_s15 }
  0x21   : > { %s373_s29 = sshll.u32 %s364_s26, 4  ;;  %s371_s13 = sshll.u32 %s370_s25, 4  ;;  %s374_s29 = int_to_ptr.vmem [resolvable:$true] %s373_s29  ;;  %s372_s13 = int_to_ptr.hbm [resolvable:$true] %s371_s13 }
  0x22   : > { %p2705_p9 = pnand %p2344_p7, %p44_p3  ;;  %s361_s9 = scalar_lea.sflag [#allocation3], %s360_s30 }
  0x23   : > { %s2454_s12 = sshra.s32 %s372_s13, 4  ;;  %s2461_s16 = scalar_lea.hbm %s3299_s0, 1024  ;;  %s2455_s12 = int_to_ptr.hbm [resolvable:$true] %s2454_s12 }
  0x24   : > { %s2456_s19 = scalar_lea.hbm %s2455_s12, 512  ;;  %p2458_p10 = pneg %p2705_p9 }
  0x25   : > { %p2457_p2 = scmp.ne.s32.totalorder %s2455_s12, %s2456_s19  ;;  %p2462_p0 = scmp.lt.s32.totalorder %s2455_s12, %s3299_s0 }
  0x26   : > { %p2463_p3 = scmp.lt.s32.totalorder %s2461_s16, %s2456_s19 }
  0x27   : > { %p2459_p12 = pnand %p2458_p10, %p2457_p2 }
  0x28   : > { %p2464_p7 = por %p2463_p3, %p2462_p0 }
  0x29   : > { %p2460_p13 = pneg %p2459_p12 }
  0x2b   : > { %p2465_p11 = pnand %p2464_p7, %p2460_p13 }
  0x2d   : > { %2468 = shalt.err (!%p2465_p11)
}
  0x2e   : > { %s2562_s30 = smov 256   ;;  %s2563_s26 = smov 16  }
  0x2f   : > { %2337 = dma.hbm_to_vmem [thread:$0]  (!%p2705_p9), %s372_s13, 8192, %s374_s29, %s361_s9, %s2562_s30, %s2562_s30, %s2563_s26  }
  0x30   : > { %385 = sbr.rel (%p2669_p8) target bundleno = 1159 (0x487), region = 64  ;;  %s2722_s14 = sand.u32 (!%p2669_p8), 1, %s2546_s18  }
  0x31   : > { %s2009_s12 = sshll.u32 (!%p2669_p8), %s2722_s14, 9  ;;  %s388_s19 = scalar_lea.sflag (!%p2669_p8), [#allocation3], %s2722_s14 }
  0x32   : > { %s2728_s15 = scalar_lea.vmem (!%p2669_p8), [#allocation2], %s2009_s12 }
  0x35   : > { %2529 = dma.done.wait (%p2656_p4), %s388_s19, 8192  }
  0x36   : > { %2531 = vsyncadd (%p2656_p4), %s388_s19, 4294959104 }
  0x37   : > { %2533 = dma.done.wait (%p49_p1), [#allocation6], 4096  }
  0x38   : > { %2535 = vsyncadd (%p49_p1), [#allocation6], 4294963200  ;;  %v2252_v0 = vld [vmem:[#allocation5 + $0x38] sm:$0xff]  ;;  %v2251_v2 = vld [vmem:[#allocation5 + $0x30] sm:$0xff]  ;;  %vm1139_vm0 = vcmask 523264   ;;  %s3123_s13 = scalar_lea.vmem [#allocation8], %s2009_s12 }
  0x39   : > { %v2260_v1 = vld [vmem:[#allocation5 + $0x78] sm:$0xff]  ;;  %672 = vmatpush.bf16.msra.mxu0 %v2252_v0  ;;  %2295 = vmatpush.bf16.msra.mxu2 %v2252_v0  ;;  %v2259_v3 = vld [vmem:[#allocation5 + $0x70] sm:$0xff]  ;;  %v2250_v4 = vld [vmem:[#allocation5 + $0x28] sm:$0xff]  ;;  %s2294_s12 = sshll.u32 %s2647_s21, 9  ;;  %s1904_s25 = sshll.u32 %s3123_s13, 4  ;;  %s1905_s25 = int_to_ptr.vmem [resolvable:$true] %s1904_s25 }
  0x3a   : > { %761 = vmatpush.bf16.msra.mxu1 %v2260_v1  ;;  %v2258_v5 = vld [vmem:[#allocation5 + $0x68] sm:$0xff]  ;;  %v2249_v6 = vld [vmem:[#allocation5 + $0x20] sm:$0xff]  ;;  %v2248_v8 = vld [vmem:[#allocation5 + $0x18] sm:$0xff]  ;;  %s1903_s22 = scalar_lea.hbm %s3310_s11, %s2294_s12  ;;  %s1891_s21 = scalar_lea.sflag [#allocation4], %s2722_s14 }
  0x3b   : > { %v2257_v7 = vld [vmem:[#allocation5 + $0x60] sm:$0xff]  ;;  %v2256_v9 = vld [vmem:[#allocation5 + $0x58] sm:$0xff]  ;;  %v2247_v10 = vld [vmem:[#allocation5 + $0x10] sm:$0xff]  ;;  %s1906_s30 = sshll.u32 %s1903_s22, 4  ;;  %s2504_s23 = scalar_lea.hbm %s3310_s11, 1024  ;;  %s1907_s30 = int_to_ptr.hbm [resolvable:$true] %s1906_s30 }
  0x3c   : > { %v2255_v11 = vld [vmem:[#allocation5 + $0x50] sm:$0xff]  ;;  %v2246_v12 = vld [vmem:[#allocation5 + $0x8] sm:$0xff]  ;;  %v2245_v14 = vld [vmem:[#allocation5] sm:$0xff] }
  0x3d   : > { %673 = vmatpush.bf16.msra.mxu0 %v2251_v2  ;;  %2296 = vmatpush.bf16.msra.mxu2 %v2251_v2  ;;  %v2254_v13 = vld [vmem:[#allocation5 + $0x48] sm:$0xff]  ;;  %v444_v15 = vld [vmem:[%s2728_s15] sm:$0xff]  ;;  %v446_v16 = vld [vmem:[%s2728_s15 + $0x10] sm:$0xff] }
  0x3e   : > { %762 = vmatpush.bf16.msra.mxu1 %v2259_v3  ;;  %v492_v17 = vld [vmem:[%s2728_s15 + $0x180] sm:$0xff]  ;;  %v494_v18 = vld [vmem:[%s2728_s15 + $0x190] sm:$0xff]  ;;  %v445_v20 = vld [vmem:[%s2728_s15 + $0x8] sm:$0xff]  ;;  %v541_v22 = vpack.c.bf16 %v446_v16, %v444_v15 }
  0x3f   : > { %v2253_v19 = vld [vmem:[#allocation5 + $0x40] sm:$0xff]  ;;  %v447_v21 = vld [vmem:[%s2728_s15 + $0x18] sm:$0xff]  ;;  %v565_v23 = vpack.c.bf16 %v494_v18, %v492_v17  ;;  %v450_v26 = vld [vmem:[%s2728_s15 + $0x30] sm:$0xff] }
  0x40   : > { %v542_v24 = vpack.c.bf16 %v447_v21, %v445_v20  ;;  %v448_v25 = vld [vmem:[%s2728_s15 + $0x20] sm:$0xff]  ;;  %v498_v28 = vld [vmem:[%s2728_s15 + $0x1b0] sm:$0xff]  ;;  %v449_v29 = vld [vmem:[%s2728_s15 + $0x28] sm:$0xff] }
  0x41   : > { %674 = vmatpush.bf16.msra.mxu0 %v2250_v4  ;;  %2297 = vmatpush.bf16.msra.mxu2 %v2250_v4  ;;  %v496_v27 = vld [vmem:[%s2728_s15 + $0x1a0] sm:$0xff]  ;;  %v451_v30 = vld [vmem:[%s2728_s15 + $0x38] sm:$0xff]  ;;  %v543_v31 = vpack.c.bf16 %v450_v26, %v448_v25  ;;  %v454_v35 = vld [vmem:[%s2728_s15 + $0x50] sm:$0xff] }
  0x42   : > { %763 = vmatpush.bf16.msra.mxu1 %v2258_v5  ;;  %v567_v32 = vpack.c.bf16 %v498_v28, %v496_v27  ;;  %v544_v33 = vpack.c.bf16 %v451_v30, %v449_v29  ;;  %v452_v34 = vld [vmem:[%s2728_s15 + $0x40] sm:$0xff]  ;;  %v502_v37 = vld [vmem:[%s2728_s15 + $0x1d0] sm:$0xff]  ;;  %v453_v38 = vld [vmem:[%s2728_s15 + $0x48] sm:$0xff] }
  0x43   : > { %v500_v36 = vld [vmem:[%s2728_s15 + $0x1c0] sm:$0xff]  ;;  %v455_v39 = vld [vmem:[%s2728_s15 + $0x58] sm:$0xff]  ;;  %v545_v40 = vpack.c.bf16 %v454_v35, %v452_v34  ;;  %v458_v45 = vld [vmem:[%s2728_s15 + $0x70] sm:$0xff] }
  0x44   : > { %v569_v41 = vpack.c.bf16 %v502_v37, %v500_v36  ;;  %v546_v42 = vpack.c.bf16 %v455_v39, %v453_v38  ;;  %v2268_v43 = vld [vmem:[%s3302_s3 + $0x38] sm:$0xff]  ;;  %v456_v44 = vld [vmem:[%s2728_s15 + $0x60] sm:$0xff]  ;;  %v506_v47 = vld [vmem:[%s2728_s15 + $0x1f0] sm:$0xff] }
  0x45   : > { %675 = vmatpush.bf16.msra.mxu0 %v2249_v6  ;;  %2298 = vmatpush.bf16.msra.mxu2 %v2249_v6  ;;  %v504_v46 = vld [vmem:[%s2728_s15 + $0x1e0] sm:$0xff]  ;;  %v457_v48 = vld [vmem:[%s2728_s15 + $0x68] sm:$0xff]  ;;  %v459_v49 = vld [vmem:[%s2728_s15 + $0x78] sm:$0xff]  ;;  %v547_v50 = vpack.c.bf16 %v458_v45, %v456_v44 }
  0x46   : > { %764 = vmatpush.bf16.msra.mxu1 %v2257_v7  ;;  %v571_v51 = vpack.c.bf16 %v506_v47, %v504_v46  ;;  %v548_v52 = vpack.c.bf16 %v459_v49, %v457_v48  ;;  %v2267_v53 = vld [vmem:[%s3302_s3 + $0x30] sm:$0xff]  ;;  %v2266_v54 = vld [vmem:[%s3302_s3 + $0x28] sm:$0xff]  ;;  %v460_v55 = vld [vmem:[%s2728_s15 + $0x80] sm:$0xff] }
  0x47   : > { %v462_v56 = vld [vmem:[%s2728_s15 + $0x90] sm:$0xff]  ;;  %v493_v57 = vld [vmem:[%s2728_s15 + $0x188] sm:$0xff]  ;;  %v495_v58 = vld [vmem:[%s2728_s15 + $0x198] sm:$0xff] }
  0x48   : > { %v461_v59 = vld [vmem:[%s2728_s15 + $0x88] sm:$0xff]  ;;  %v463_v60 = vld [vmem:[%s2728_s15 + $0x98] sm:$0xff]  ;;  %v549_v61 = vpack.c.bf16 %v462_v56, %v460_v55  ;;  %v566_v62 = vpack.c.bf16 %v495_v58, %v493_v57  ;;  %v2265_v0 = vld [vmem:[%s3302_s3 + $0x20] sm:$0xff] }
  0x49   : > { %676 = vmatpush.bf16.msra.mxu0 %v2248_v8  ;;  %2299 = vmatpush.bf16.msra.mxu2 %v2248_v8  ;;  %v550_v63 = vpack.c.bf16 %v463_v60, %v461_v59  ;;  %v464_v2 = vld [vmem:[%s2728_s15 + $0xa0] sm:$0xff]  ;;  %v497_v4 = vld [vmem:[%s2728_s15 + $0x1a8] sm:$0xff]  ;;  %v503_v15 = vld [vmem:[%s2728_s15 + $0x1d8] sm:$0xff] }
  0x4a   : > { %765 = vmatpush.bf16.msra.mxu1 %v2256_v9  ;;  %v465_v6 = vld [vmem:[%s2728_s15 + $0xa8] sm:$0xff]  ;;  %v471_v17 = vld [vmem:[%s2728_s15 + $0xd8] sm:$0xff]  ;;  %v2261_v28 = vld [vmem:[%s3302_s3] sm:$0xff] }
  0x4b   : > { %v469_v16 = vld [vmem:[%s2728_s15 + $0xc8] sm:$0xff]  ;;  %v507_v25 = vld [vmem:[%s2728_s15 + $0x1f8] sm:$0xff]  ;;  %v478_v34 = vld [vmem:[%s2728_s15 + $0x110] sm:$0xff] }
  0x4c   : > { %v554_v20 = vpack.c.bf16 %v471_v17, %v469_v16  ;;  %v2262_v21 = vld [vmem:[%s3302_s3 + $0x8] sm:$0xff]  ;;  %v475_v27 = vld [vmem:[%s2728_s15 + $0xf8] sm:$0xff]  ;;  %v480_v49 = vld [vmem:[%s2728_s15 + $0x120] sm:$0xff] }
  0x4d   : > { %677 = vmatpush.bf16.msra.mxu0 %v2247_v10  ;;  %2300 = vmatpush.bf16.msra.mxu2 %v2247_v10  ;;  %v473_v26 = vld [vmem:[%s2728_s15 + $0xe8] sm:$0xff]  ;;  %v479_v36 = vld [vmem:[%s2728_s15 + $0x118] sm:$0xff] }
  0x4e   : > { %766 = vmatpush.bf16.msra.mxu1 %v2255_v11  ;;  %v477_v35 = vld [vmem:[%s2728_s15 + $0x108] sm:$0xff] }
  0x4f   : > { %v558_v39 = vpack.c.bf16 %v479_v36, %v477_v35  ;;  %v2271_v36 = vld [vmem:[%s3304_s5 + $0x10] sm:$0xff] }
  0x51   : > { %678 = vmatpush.bf16.msra.mxu0 %v2246_v12  ;;  %2301 = vmatpush.bf16.msra.mxu2 %v2246_v12  ;;  %v468_v12 = vld [vmem:[%s2728_s15 + $0xc0] sm:$0xff] }
  0x52   : > { %767 = vmatpush.bf16.msra.mxu1 %v2254_v13 }
  0x55   : > { %679 = vmatpush.bf16.msra.mxu0 %v2245_v14  ;;  %2302 = vmatpush.bf16.msra.mxu2 %v2245_v14  ;;  %v501_v14 = vld [vmem:[%s2728_s15 + $0x1c8] sm:$0xff] }
  0x56   : > { %768 = vmatpush.bf16.msra.mxu1 %v2253_v19 }
  0x58   : > { %680 = vmatmul.bf16.vlgmr.msra.gmra.mxu0 %v541_v22  ;;  %740 = vmatmul.bf16.vlgmr.msra.gmra.mxu2 %v565_v23  ;;  %v472_v22 = vld [vmem:[%s2728_s15 + $0xe0] sm:$0xff]  ;;  %v474_v23 = vld [vmem:[%s2728_s15 + $0xf0] sm:$0xff] }
  0x59   : > { %2303 = vmatpush.bf16.msrb.mxu2 %v2260_v1  ;;  %769 = vmatmul.bf16.vlgmr.msra.gmra.mxu1 %v542_v24  ;;  %v2264_v1 = vld [vmem:[%s3302_s3 + $0x18] sm:$0xff]  ;;  %v505_v24 = vld [vmem:[%s2728_s15 + $0x1e8] sm:$0xff]  ;;  %v555_v29 = vpack.c.bf16 %v474_v23, %v472_v22  ;;  %v488_v23 = vld [vmem:[%s2728_s15 + $0x160] sm:$0xff] }
  0x5a   : > { %v572_v30 = vpack.c.bf16 %v507_v25, %v505_v24  ;;  %v490_v24 = vld [vmem:[%s2728_s15 + $0x170] sm:$0xff] }
  0x5d   : > { %2304 = vmatpush.bf16.msrb.mxu2 %v2259_v3  ;;  %v466_v3 = vld [vmem:[%s2728_s15 + $0xb0] sm:$0xff] }
  0x5e   : > { %v551_v8 = vpack.c.bf16 %v466_v3, %v464_v2 }
  0x61   : > { %2305 = vmatpush.bf16.msrb.mxu2 %v2258_v5  ;;  %v499_v5 = vld [vmem:[%s2728_s15 + $0x1b8] sm:$0xff] }
  0x65   : > { %2306 = vmatpush.bf16.msrb.mxu2 %v2257_v7  ;;  %v467_v7 = vld [vmem:[%s2728_s15 + $0xb8] sm:$0xff] }
  0x66   : > { %v552_v10 = vpack.c.bf16 %v467_v7, %v465_v6 }
  0x68   : > { %685 = vmatmul.bf16.gmra.mxu0 %v543_v31  ;;  %745 = vmatmul.bf16.gmra.mxu2 %v567_v32  ;;  %v556_v31 = vpack.c.bf16 %v475_v27, %v473_v26  ;;  %v2272_v32 = vld [vmem:[%s3304_s5 + $0x18] sm:$0xff]  ;;  %v489_v27 = vld [vmem:[%s2728_s15 + $0x168] sm:$0xff] }
  0x69   : > { %2307 = vmatpush.bf16.msrb.mxu2 %v2256_v9  ;;  %774 = vmatmul.bf16.gmra.mxu1 %v544_v33  ;;  %v568_v9 = vpack.c.bf16 %v499_v5, %v497_v4  ;;  %v476_v33 = vld [vmem:[%s2728_s15 + $0x100] sm:$0xff]  ;;  %v486_v5 = vld [vmem:[%s2728_s15 + $0x150] sm:$0xff] }
  0x6a   : > { %2311 = vmatpush.bf16.msra.mxu3 %v2272_v32  ;;  %v557_v37 = vpack.c.bf16 %v478_v34, %v476_v33  ;;  %v484_v4 = vld [vmem:[%s2728_s15 + $0x140] sm:$0xff] }
  0x6d   : > { %2308 = vmatpush.bf16.msrb.mxu2 %v2255_v11  ;;  %v2263_v11 = vld [vmem:[%s3302_s3 + $0x10] sm:$0xff] }
  0x6e   : > { %2312 = vmatpush.bf16.msra.mxu3 %v2271_v36 }
  0x71   : > { %2309 = vmatpush.bf16.msrb.mxu2 %v2254_v13  ;;  %v470_v13 = vld [vmem:[%s2728_s15 + $0xd0] sm:$0xff] }
  0x72   : > { %v553_v18 = vpack.c.bf16 %v470_v13, %v468_v12  ;;  %v561_v12 = vpack.c.bf16 %v486_v5, %v484_v4 }
  0x75   : > { %2310 = vmatpush.bf16.msrb.mxu2 %v2253_v19  ;;  %v570_v19 = vpack.c.bf16 %v503_v15, %v501_v14 }
  0x78   : > { %690 = vmatmul.bf16.gmra.mxu0 %v545_v40  ;;  %750 = vmatmul.bf16.gmra.mxu2 %v569_v41  ;;  %v2820_v40 = vld [vmem:[%s3301_s2] ss:$0 sm:$0xff] }
  0x79   : > { %779 = vmatmul.bf16.gmra.mxu1 %v546_v42  ;;  %966 = vmatpush.bf16.msra.mxu2 %v2268_v43 }
  0x7d   : > { %967 = vmatpush.bf16.msra.mxu2 %v2267_v53  ;;  %v481_v53 = vld [vmem:[%s2728_s15 + $0x128] sm:$0xff] }
  0x81   : > { %968 = vmatpush.bf16.msra.mxu2 %v2266_v54  ;;  %v483_v54 = vld [vmem:[%s2728_s15 + $0x138] sm:$0xff] }
  0x82   : > { %v560_v59 = vpack.c.bf16 %v483_v54, %v481_v53 }
  0x85   : > { %969 = vmatpush.bf16.msra.mxu2 %v2265_v0 }
  0x88   : > { %695 = vmatmul.bf16.gmra.mxu0 %v547_v50  ;;  %755 = vmatmul.bf16.gmra.mxu2 %v571_v51  ;;  %v482_v50 = vld [vmem:[%s2728_s15 + $0x130] sm:$0xff] }
  0x89   : > { %784 = vmatmul.bf16.gmra.mxu1 %v548_v52  ;;  %970 = vmatpush.bf16.msra.mxu2 %v2264_v1  ;;  %v559_v57 = vpack.c.bf16 %v482_v50, %v480_v49 }
  0x8d   : > { %971 = vmatpush.bf16.msra.mxu2 %v2263_v11 }
  0x91   : > { %972 = vmatpush.bf16.msra.mxu2 %v2262_v21 }
  0x95   : > { %973 = vmatpush.bf16.msra.mxu2 %v2261_v28  ;;  %v491_v28 = vld [vmem:[%s2728_s15 + $0x178] sm:$0xff] }
  0x96   : > { %v564_v33 = vpack.c.bf16 %v491_v28, %v489_v27 }
  0x98   : > { %700 = vmatmul.bf16.gmra.mxu0 %v549_v61  ;;  %829 = vmatmul.bf16.vlgmr.msrb.gmra.mxu2 %v566_v62 }
  0x99   : > { %789 = vmatmul.bf16.gmra.mxu1 %v550_v63  ;;  %1192 = vmatpush.bf16.msrb.mxu2 %v2272_v32 }
  0x9d   : > { %1193 = vmatpush.bf16.msrb.mxu2 %v2271_v36  ;;  %v2270_v36 = vld [vmem:[%s3304_s5 + $0x8] sm:$0xff] }
  0x9e   : > { %2313 = vmatpush.bf16.msra.mxu3 %v2270_v36 }
  0xa1   : > { %1194 = vmatpush.bf16.msrb.mxu2 %v2270_v36 }
  0xa8   : > { %705 = vmatmul.bf16.gmra.mxu0 %v551_v8  ;;  %834 = vmatmul.bf16.gmra.mxu2 %v568_v9  ;;  %v485_v8 = vld [vmem:[%s2728_s15 + $0x148] sm:$0xff]  ;;  %v487_v9 = vld [vmem:[%s2728_s15 + $0x158] sm:$0xff]  ;;  %s2498_s15 = sshra.s32 %s1907_s30, 4  ;;  %s2499_s15 = int_to_ptr.hbm [resolvable:$true] %s2498_s15 }
  0xa9   : > { %794 = vmatmul.bf16.gmra.mxu1 %v552_v10  ;;  %v562_v14 = vpack.c.bf16 %v487_v9, %v485_v8  ;;  %s2500_s26 = scalar_lea.hbm %s2499_s15, 512  ;;  %p2505_p11 = scmp.lt.s32.totalorder %s2499_s15, %s3310_s11 }
  0xaa   : > { %p2501_p1 = scmp.ne.s32.totalorder %s2499_s15, %s2500_s26  ;;  %p2506_p9 = scmp.lt.s32.totalorder %s2504_s23, %s2500_s26 }
  0xac   : > { %p2502_p4 = pnand %p2501_p1, %p2695_p5  ;;  %p2507_p2 = por %p2506_p9, %p2505_p11 }
  0xae   : > { %p2503_p8 = pneg %p2502_p4 }
  0xb0   : > { %p2508_p10 = pnand %p2507_p2, %p2503_p8 }
  0xb8   : > { %710 = vmatmul.bf16.gmra.mxu0 %v553_v18  ;;  %839 = vmatmul.bf16.gmra.mxu2 %v570_v19 }
  0xb9   : > { %799 = vmatmul.bf16.gmra.mxu1 %v554_v20 }
  0xc8   : > { %715 = vmatmul.bf16.gmra.mxu0 %v555_v29  ;;  %844 = vmatmul.bf16.gmra.mxu2 %v572_v30 }
  0xc9   : > { %804 = vmatmul.bf16.gmra.mxu1 %v556_v31  ;;  %v563_v31 = vpack.c.bf16 %v490_v24, %v488_v23 }
  0xd5   : > { %v681_v38 = vpop.f32.mrf.mxu0 }
  0xd6   : > { %v770_v41 = vpop.f32.mrf.mxu1  ;;  %v682_v42 = vadd.f32 %v2820_v40, %v681_v38 }
  0xd8   : > { %720 = vmatmul.bf16.gmra.mxu0 %v557_v37  ;;  %v771_v45 = vadd.f32 %v770_v41, %v682_v42 }
  0xd9   : > { %809 = vmatmul.bf16.gmra.mxu1 %v558_v39 }
  0xda   : > { %v850_v51 = vmax.f32 %v771_v45, 0.0 }
  0xdb   : > { %v2823_v43 = vpop.f32.mrf.mxu2 }
  0xdd   : > { %v683_v44 = vpop.f32.mrf.mxu0 }
  0xde   : > { %v684_v46 = vadd.f32 %v2820_v40, %v683_v44  ;;  %v772_v47 = vpop.f32.mrf.mxu1 }
  0xe0   : > { %v773_v48 = vadd.f32 %v772_v47, %v684_v46 }
  0xe2   : > { %v851_v52 = vmax.f32 %v773_v48, 0.0 }
  0xe3   : > { %v2830_v55 = vpop.f32.mrf.mxu2 }
  0xe4   : > { %v882_v56 = vpack.c.bf16 %v851_v52, %v850_v51  ;;  %v742_v51 = vadd.f32 %v2820_v40, %v2823_v43 }
  0xe5   : > { %v686_v58 = vpop.f32.mrf.mxu0 }
  0xe6   : > { %v775_v60 = vpop.f32.mrf.mxu1  ;;  %974 = vmatmul.bf16.vlgmr.msra.gmra.mxu2 %v882_v56  ;;  %v687_v61 = vadd.f32 %v2820_v40, %v686_v58 }
  0xe8   : > { %725 = vmatmul.bf16.gmra.mxu0 %v559_v57  ;;  %v776_v0 = vadd.f32 %v775_v60, %v687_v61 }
  0xe9   : > { %814 = vmatmul.bf16.gmra.mxu1 %v560_v59 }
  0xea   : > { %v852_v6 = vmax.f32 %v776_v0, 0.0 }
  0xeb   : > { %v2833_v62 = vpop.f32.mrf.mxu2 }
  0xec   : > { %v747_v43 = vadd.f32 %v2820_v40, %v2833_v62 }
  0xed   : > { %v688_v63 = vpop.f32.mrf.mxu0 }
  0xee   : > { %v689_v1 = vadd.f32 %v2820_v40, %v688_v63  ;;  %v777_v2 = vpop.f32.mrf.mxu1 }
  0xf0   : > { %v778_v3 = vadd.f32 %v777_v2, %v689_v1 }
  0xf2   : > { %v853_v7 = vmax.f32 %v778_v3, 0.0 }
  0xf3   : > { %v2840_v10 = vpop.f32.mrf.mxu2 }
  0xf4   : > { %v883_v11 = vpack.c.bf16 %v853_v7, %v852_v6 }
  0xf5   : > { %v691_v13 = vpop.f32.mrf.mxu0 }
  0xf6   : > { %v780_v15 = vpop.f32.mrf.mxu1  ;;  %979 = vmatmul.bf16.gmra.mxu2 %v883_v11  ;;  %v692_v16 = vadd.f32 %v2820_v40, %v691_v13 }
  0xf8   : > { %730 = vmatmul.bf16.gmra.mxu0 %v561_v12  ;;  %v781_v19 = vadd.f32 %v780_v15, %v692_v16 }
  0xf9   : > { %819 = vmatmul.bf16.gmra.mxu1 %v562_v14 }
  0xfa   : > { %v854_v25 = vmax.f32 %v781_v19, 0.0 }
  0xfb   : > { %v2843_v17 = vpop.f32.mrf.mxu2 }
  0xfc   : > { %v752_v62 = vadd.f32 %v2820_v40, %v2843_v17 }
  0xfd   : > { %v693_v18 = vpop.f32.mrf.mxu0 }
  0xfe   : > { %v694_v20 = vadd.f32 %v2820_v40, %v693_v18  ;;  %v782_v21 = vpop.f32.mrf.mxu1 }
 0x100   : > { %v783_v22 = vadd.f32 %v782_v21, %v694_v20 }
 0x102   : > { %v855_v26 = vmax.f32 %v783_v22, 0.0 }
 0x103   : > { %v2850_v29 = vpop.f32.mrf.mxu2 }
 0x104   : > { %v884_v30 = vpack.c.bf16 %v855_v26, %v854_v25 }
 0x105   : > { %v696_v32 = vpop.f32.mrf.mxu0 }
 0x106   : > { %v785_v34 = vpop.f32.mrf.mxu1  ;;  %984 = vmatmul.bf16.gmra.mxu2 %v884_v30  ;;  %v697_v35 = vadd.f32 %v2820_v40, %v696_v32 }
 0x108   : > { %735 = vmatmul.bf16.gmra.mxu0 %v563_v31  ;;  %v786_v39 = vadd.f32 %v785_v34, %v697_v35 }
 0x109   : > { %824 = vmatmul.bf16.gmra.mxu1 %v564_v33 }
 0x10a   : > { %v856_v45 = vmax.f32 %v786_v39, 0.0 }
 0x10b   : > { %v2856_v37 = vpop.f32.mrf.mxu2 }
 0x10c   : > { %v757_v17 = vadd.f32 %v2820_v40, %v2856_v37 }
 0x10d   : > { %v698_v38 = vpop.f32.mrf.mxu0 }
 0x10e   : > { %v699_v41 = vadd.f32 %v2820_v40, %v698_v38  ;;  %v787_v42 = vpop.f32.mrf.mxu1 }
 0x110   : > { %v788_v44 = vadd.f32 %v787_v42, %v699_v41 }
 0x112   : > { %v857_v46 = vmax.f32 %v788_v44, 0.0 }
 0x113   : > { %v2859_v47 = vpop.f32.mrf.mxu2 }
 0x114   : > { %v885_v48 = vpack.c.bf16 %v857_v46, %v856_v45 }
 0x115   : > { %v701_v49 = vpop.f32.mrf.mxu0 }
 0x116   : > { %v790_v50 = vpop.f32.mrf.mxu1  ;;  %989 = vmatmul.bf16.gmra.mxu2 %v885_v48  ;;  %v702_v52 = vadd.f32 %v2820_v40, %v701_v49 }
 0x118   : > { %v791_v57 = vadd.f32 %v790_v50, %v702_v52 }
 0x11a   : > { %v858_v61 = vmax.f32 %v791_v57, 0.0 }
 0x11b   : > { %v830_v53 = vpop.f32.mrf.mxu2 }
 0x11c   : > { %v2864_v54 = vadd.f32 %v830_v53, %v742_v51 }
 0x11d   : > { %v703_v56 = vpop.f32.mrf.mxu0 }
 0x11e   : > { %v704_v58 = vadd.f32 %v2820_v40, %v703_v56  ;;  %v792_v59 = vpop.f32.mrf.mxu1 }
 0x120   : > { %v793_v60 = vadd.f32 %v792_v59, %v704_v58 }
 0x122   : > { %v859_v63 = vmax.f32 %v793_v60, 0.0 }
 0x123   : > { %v2867_v0 = vpop.f32.mrf.mxu2 }
 0x124   : > { %v886_v1 = vpack.c.bf16 %v859_v63, %v858_v61 }
 0x125   : > { %v706_v2 = vpop.f32.mrf.mxu0 }
 0x126   : > { %v795_v3 = vpop.f32.mrf.mxu1  ;;  %994 = vmatmul.bf16.gmra.mxu2 %v886_v1  ;;  %v707_v4 = vadd.f32 %v2820_v40, %v706_v2 }
 0x128   : > { %v796_v8 = vadd.f32 %v795_v3, %v707_v4 }
 0x12a   : > { %v860_v13 = vmax.f32 %v796_v8, 0.0 }
 0x12b   : > { %v835_v5 = vpop.f32.mrf.mxu2 }
 0x12c   : > { %v2872_v6 = vadd.f32 %v835_v5, %v747_v43  ;;  %v2902_v5 = vld [vmem:[%s3303_s4] ss:$0 sm:$0xff] }
 0x12d   : > { %v708_v7 = vpop.f32.mrf.mxu0 }
 0x12e   : > { %v709_v9 = vadd.f32 %v2820_v40, %v708_v7  ;;  %v797_v11 = vpop.f32.mrf.mxu1 }
 0x130   : > { %v798_v12 = vadd.f32 %v797_v11, %v709_v9 }
 0x132   : > { %v861_v14 = vmax.f32 %v798_v12, 0.0 }
 0x133   : > { %v2875_v15 = vpop.f32.mrf.mxu2 }
 0x134   : > { %v887_v16 = vpack.c.bf16 %v861_v14, %v860_v13 }
 0x135   : > { %v711_v18 = vpop.f32.mrf.mxu0 }
 0x136   : > { %v800_v19 = vpop.f32.mrf.mxu1  ;;  %999 = vmatmul.bf16.gmra.mxu2 %v887_v16  ;;  %v712_v20 = vadd.f32 %v2820_v40, %v711_v18 }
 0x138   : > { %v801_v24 = vadd.f32 %v800_v19, %v712_v20 }
 0x13a   : > { %v862_v28 = vmax.f32 %v801_v24, 0.0 }
 0x13b   : > { %v840_v21 = vpop.f32.mrf.mxu2 }
 0x13c   : > { %v2880_v22 = vadd.f32 %v840_v21, %v752_v62 }
 0x13d   : > { %v713_v23 = vpop.f32.mrf.mxu0 }
 0x13e   : > { %v714_v25 = vadd.f32 %v2820_v40, %v713_v23  ;;  %v802_v26 = vpop.f32.mrf.mxu1 }
 0x140   : > { %v803_v27 = vadd.f32 %v802_v26, %v714_v25 }
 0x142   : > { %v863_v30 = vmax.f32 %v803_v27, 0.0 }
 0x143   : > { %v2883_v31 = vpop.f32.mrf.mxu2 }
 0x144   : > { %v888_v32 = vpack.c.bf16 %v863_v30, %v862_v28 }
 0x145   : > { %v716_v33 = vpop.f32.mrf.mxu0 }
 0x146   : > { %v805_v34 = vpop.f32.mrf.mxu1  ;;  %1004 = vmatmul.bf16.gmra.mxu2 %v888_v32  ;;  %v717_v35 = vadd.f32 %v2820_v40, %v716_v33 }
 0x148   : > { %v806_v42 = vadd.f32 %v805_v34, %v717_v35 }
 0x14a   : > { %v864_v48 = vmax.f32 %v806_v42, 0.0 }
 0x14b   : > { %v845_v38 = vpop.f32.mrf.mxu2 }
 0x14c   : > { %v2891_v39 = vadd.f32 %v845_v38, %v757_v17 }
 0x14d   : > { %v718_v41 = vpop.f32.mrf.mxu0 }
 0x14e   : > { %v719_v44 = vadd.f32 %v2820_v40, %v718_v41  ;;  %v807_v45 = vpop.f32.mrf.mxu1 }
 0x150   : > { %v808_v46 = vadd.f32 %v807_v45, %v719_v44 }
 0x152   : > { %v865_v49 = vmax.f32 %v808_v46, 0.0  ;;  %v2269_v46 = vld [vmem:[%s3304_s5] sm:$0xff] }
 0x153   : > { %v2896_v60 = vpop.f32.mrf.mxu2  ;;  %2314 = vmatpush.bf16.msra.mxu3 %v2269_v46  ;;  %1195 = vmatpush.bf16.msrb.mxu2 %v2269_v46 }
 0x154   : > { %v889_v37 = vpack.c.bf16 %v865_v49, %v864_v48 }
 0x155   : > { %v721_v50 = vpop.f32.mrf.mxu0 }
 0x156   : > { %v810_v51 = vpop.f32.mrf.mxu1  ;;  %1009 = vmatmul.bf16.gmra.mxu2 %v889_v37  ;;  %v722_v52 = vadd.f32 %v2820_v40, %v721_v50  ;;  %v2276_v50 = vld [vmem:[%s3306_s7 + $0x18] sm:$0xff] }
 0x157   : > { %1413 = vmatpush.bf16.msrb.mxu3 %v2276_v50 }
 0x158   : > { %v811_v56 = vadd.f32 %v810_v51, %v722_v52 }
 0x15a   : > { %v866_v61 = vmax.f32 %v811_v56, 0.0 }
 0x15d   : > { %v723_v53 = vpop.f32.mrf.mxu0 }
 0x15e   : > { %v724_v57 = vadd.f32 %v2820_v40, %v723_v53  ;;  %v812_v58 = vpop.f32.mrf.mxu1 }
 0x160   : > { %v813_v59 = vadd.f32 %v812_v58, %v724_v57 }
 0x162   : > { %v867_v63 = vmax.f32 %v813_v59, 0.0 }
 0x164   : > { %v890_v1 = vpack.c.bf16 %v867_v63, %v866_v61 }
 0x165   : > { %v726_v2 = vpop.f32.mrf.mxu0 }
 0x166   : > { %v815_v3 = vpop.f32.mrf.mxu1  ;;  %1014 = vmatmul.bf16.gmra.mxu2 %v890_v1  ;;  %v727_v4 = vadd.f32 %v2820_v40, %v726_v2 }
 0x168   : > { %v816_v8 = vadd.f32 %v815_v3, %v727_v4 }
 0x169   : > { %v975_v43 = vpop.f32.mrf.mxu2 }
 0x16a   : > { %v976_v12 = vadd.f32 %v2902_v5, %v975_v43  ;;  %v868_v16 = vmax.f32 %v816_v8, 0.0 }
 0x16c   : > { %v1055_v62 = vmax.f32 %v976_v12, 0.0 }
 0x16d   : > { %v728_v7 = vpop.f32.mrf.mxu0 }
 0x16e   : > { %v729_v9 = vadd.f32 %v2820_v40, %v728_v7  ;;  %v817_v11 = vpop.f32.mrf.mxu1 }
 0x170   : > { %v818_v13 = vadd.f32 %v817_v11, %v729_v9  ;;  %v744_v11 = vadd.f32 %v2820_v40, %v2830_v55  ;;  %v749_v55 = vadd.f32 %v2820_v40, %v2840_v10  ;;  %v754_v10 = vadd.f32 %v2820_v40, %v2850_v29 }
 0x171   : > { %v977_v14 = vpop.f32.mrf.mxu2 }
 0x172   : > { %v869_v18 = vmax.f32 %v818_v13, 0.0  ;;  %v978_v19 = vadd.f32 %v2902_v5, %v977_v14  ;;  %v833_v12 = vadd.f32 %v2867_v0, %v744_v11  ;;  %v838_v0 = vadd.f32 %v2875_v15, %v749_v55 }
 0x173   : > { %v843_v15 = vadd.f32 %v2883_v31, %v754_v10  ;;  %v2231_v10 = vld [vmem:[#allocation7 + $0x70] sm:$0xf] }
 0x174   : > { %v1056_v20 = vmax.f32 %v978_v19, 0.0  ;;  %v891_v21 = vpack.c.bf16 %v869_v18, %v868_v16  ;;  %v875_v13 = vmax.f32 %v833_v12, 0.0  ;;  %v874_v18 = vmax.f32 %v2864_v54, 0.0 }
 0x175   : > { %v731_v23 = vpop.f32.mrf.mxu0 }
 0x176   : > { %v2907_v24 = vpack.c.bf16 %v1056_v20, %v1055_v62  ;;  %v820_v25 = vpop.f32.mrf.mxu1  ;;  %1019 = vmatmul.bf16.gmra.mxu2 %v891_v21  ;;  %v732_v27 = vadd.f32 %v2820_v40, %v731_v23  ;;  %v894_v21 = vpack.c.bf16 %v875_v13, %v874_v18 }
 0x178   : > { %v821_v30 = vadd.f32 %v820_v25, %v732_v27 }
 0x179   : > { %v980_v26 = vpop.f32.mrf.mxu2 }
 0x17a   : > { %v981_v34 = vadd.f32 %v2902_v5, %v980_v26  ;;  %v870_v36 = vmax.f32 %v821_v30, 0.0  ;;  %v877_v26 = vmax.f32 %v838_v0, 0.0 }
 0x17c   : > { %v1057_v42 = vmax.f32 %v981_v34, 0.0 }
 0x17d   : > { %v733_v28 = vpop.f32.mrf.mxu0 }
 0x17e   : > { %v734_v32 = vadd.f32 %v2820_v40, %v733_v28  ;;  %v822_v33 = vpop.f32.mrf.mxu1  ;;  %v876_v28 = vmax.f32 %v2872_v6, 0.0  ;;  %v879_v6 = vmax.f32 %v843_v15, 0.0  ;;  %v2292_v15 = vld [vmem:[#allocation7 + $0x74] sm:$0xf0] }
 0x180   : > { %v823_v17 = vadd.f32 %v822_v33, %v734_v32  ;;  %v895_v34 = vpack.c.bf16 %v877_v26, %v876_v28 }
 0x181   : > { %v982_v35 = vpop.f32.mrf.mxu2 }
 0x182   : > { %v871_v38 = vmax.f32 %v823_v17, 0.0  ;;  %v983_v41 = vadd.f32 %v2902_v5, %v982_v35 }
 0x184   : > { %v1058_v44 = vmax.f32 %v983_v41, 0.0  ;;  %v892_v45 = vpack.c.bf16 %v871_v38, %v870_v36  ;;  %v2275_v36 = vld [vmem:[%s3306_s7 + $0x10] sm:$0xff] }
 0x185   : > { %v736_v48 = vpop.f32.mrf.mxu0  ;;  %1414 = vmatpush.bf16.msrb.mxu3 %v2275_v36  ;;  %v2232_v36 = vor.u32 %v2292_v15, %v2231_v10 }
 0x186   : > { %v2916_v49 = vpack.c.bf16 %v1058_v44, %v1057_v42  ;;  %v825_v37 = vpop.f32.mrf.mxu1  ;;  %1024 = vmatmul.bf16.gmra.mxu2 %v892_v45  ;;  %v737_v52 = vadd.f32 %v2820_v40, %v736_v48  ;;  %v878_v42 = vmax.f32 %v2880_v22, 0.0  ;;  %v880_v22 = vmax.f32 %v2891_v39, 0.0 }
 0x187   : > { %1648 = vmatpush.bf16.msrb.mxu0 %v2232_v36 }
 0x188   : > { %v826_v56 = vadd.f32 %v825_v37, %v737_v52  ;;  %v896_v48 = vpack.c.bf16 %v879_v6, %v878_v42  ;;  %v759_v37 = vadd.f32 %v2820_v40, %v2859_v47  ;;  %v2291_v6 = vld [vmem:[#allocation7 + $0x74] sm:$0xf] }
 0x189   : > { %v985_v51 = vpop.f32.mrf.mxu2 }
 0x18a   : > { %v986_v59 = vadd.f32 %v2902_v5, %v985_v51  ;;  %v872_v1 = vmax.f32 %v826_v56, 0.0  ;;  %v848_v50 = vadd.f32 %v2896_v60, %v759_v37 }
 0x18c   : > { %v1059_v43 = vmax.f32 %v986_v59, 0.0  ;;  %v881_v51 = vmax.f32 %v848_v50, 0.0 }
 0x18d   : > { %v738_v53 = vpop.f32.mrf.mxu0 }
 0x18e   : > { %v739_v57 = vadd.f32 %v2820_v40, %v738_v53  ;;  %v827_v58 = vpop.f32.mrf.mxu1  ;;  %v897_v59 = vpack.c.bf16 %v881_v51, %v880_v22 }
 0x190   : > { %v828_v61 = vadd.f32 %v827_v58, %v739_v57 }
 0x191   : > { %v987_v63 = vpop.f32.mrf.mxu2 }
 0x192   : > { %v873_v2 = vmax.f32 %v828_v61, 0.0  ;;  %v988_v3 = vadd.f32 %v2902_v5, %v987_v63 }
 0x194   : > { %v1060_v4 = vmax.f32 %v988_v3, 0.0  ;;  %v893_v7 = vpack.c.bf16 %v873_v2, %v872_v1 }
 0x196   : > { %v2925_v8 = vpack.c.bf16 %v1060_v4, %v1059_v43  ;;  %1029 = vmatmul.bf16.gmra.mxu2 %v893_v7  ;;  %v2274_v43 = vld [vmem:[%s3306_s7 + $0x8] sm:$0xff] }
 0x197   : > { %1415 = vmatpush.bf16.msrb.mxu3 %v2274_v43  ;;  %v2223_v43 = vld [vmem:[#allocation7 + $0x60] sm:$0xf] }
 0x199   : > { %v990_v9 = vpop.f32.mrf.mxu2 }
 0x19a   : > { %v991_v14 = vadd.f32 %v2902_v5, %v990_v9 }
 0x19c   : > { %v1061_v62 = vmax.f32 %v991_v14, 0.0 }
 0x1a1   : > { %v992_v16 = vpop.f32.mrf.mxu2 }
 0x1a2   : > { %v993_v19 = vadd.f32 %v2902_v5, %v992_v16 }
 0x1a4   : > { %v1062_v20 = vmax.f32 %v993_v19, 0.0 }
 0x1a6   : > { %1034 = vmatmul.bf16.gmra.mxu2 %v894_v21  ;;  %v1090_v23 = vpack.c.bf16 %v1062_v20, %v1061_v62 }
 0x1a8   : > { %2128 = vmatmul.msk.bf16.vlgmr.msra.gmra.mxu3 %vm1139_vm0, %v1090_v23 }
 0x1a9   : > { %v995_v25 = vpop.f32.mrf.mxu2 }
 0x1aa   : > { %v996_v27 = vadd.f32 %v2902_v5, %v995_v25 }
 0x1ac   : > { %v1063_v32 = vmax.f32 %v996_v27, 0.0 }
 0x1b1   : > { %v997_v54 = vpop.f32.mrf.mxu2 }
 0x1b2   : > { %v998_v30 = vadd.f32 %v2902_v5, %v997_v54 }
 0x1b4   : > { %v1064_v33 = vmax.f32 %v998_v30, 0.0 }
 0x1b6   : > { %1039 = vmatmul.bf16.gmra.mxu2 %v895_v34  ;;  %v1091_v17 = vpack.c.bf16 %v1064_v33, %v1063_v32  ;;  %v2273_v34 = vld [vmem:[%s3306_s7] sm:$0xff] }
 0x1b7   : > { %1416 = vmatpush.bf16.msrb.mxu3 %v2273_v34 }
 0x1b8   : > { %2129 = vmatmul.msk.bf16.gmra.mxu3 %vm1139_vm0, %v1091_v17 }
 0x1b9   : > { %v1000_v35 = vpop.f32.mrf.mxu2 }
 0x1ba   : > { %v1001_v38 = vadd.f32 %v2902_v5, %v1000_v35 }
 0x1bc   : > { %v1065_v45 = vmax.f32 %v1001_v38, 0.0  ;;  %v2233_v38 = vld [vmem:[#allocation7 + $0x78] sm:$0xf0] }
 0x1bd   : > { %v2236_v42 = vor.u32 %v2291_v6, %v2233_v38 }
 0x1bf   : > { %1737 = vmatpush.bf16.msrb.mxu1 %v2236_v42 }
 0x1c1   : > { %v1002_v41 = vpop.f32.mrf.mxu2 }
 0x1c2   : > { %v1003_v44 = vadd.f32 %v2902_v5, %v1002_v41  ;;  %v2988_v41 = vld [vmem:[%s3305_s6] ss:$0 sm:$0xff] }
 0x1c4   : > { %v1066_v46 = vmax.f32 %v1003_v44, 0.0 }
 0x1c6   : > { %1044 = vmatmul.bf16.gmra.mxu2 %v896_v48  ;;  %v1092_v29 = vpack.c.bf16 %v1066_v46, %v1065_v45 }
 0x1c8   : > { %2130 = vmatmul.msk.bf16.gmra.mxu3 %vm1139_vm0, %v1092_v29 }
 0x1c9   : > { %v1005_v31 = vpop.f32.mrf.mxu2 }
 0x1ca   : > { %v1006_v52 = vadd.f32 %v2902_v5, %v1005_v31 }
 0x1cc   : > { %v1067_v57 = vmax.f32 %v1006_v52, 0.0 }
 0x1d1   : > { %v1007_v53 = vpop.f32.mrf.mxu2 }
 0x1d2   : > { %v1008_v56 = vadd.f32 %v2902_v5, %v1007_v53 }
 0x1d4   : > { %v1068_v58 = vmax.f32 %v1008_v56, 0.0 }
 0x1d6   : > { %1049 = vmatmul.bf16.gmra.mxu2 %v897_v59  ;;  %v1093_v61 = vpack.c.bf16 %v1068_v58, %v1067_v57 }
 0x1d8   : > { %2131 = vmatmul.msk.bf16.gmra.mxu3 %vm1139_vm0, %v1093_v61 }
 0x1d9   : > { %v1010_v63 = vpop.f32.mrf.mxu2 }
 0x1da   : > { %v1011_v40 = vadd.f32 %v2902_v5, %v1010_v63 }
 0x1dc   : > { %v1069_v1 = vmax.f32 %v1011_v40, 0.0 }
 0x1e1   : > { %v1012_v47 = vpop.f32.mrf.mxu2 }
 0x1e2   : > { %v1013_v60 = vadd.f32 %v2902_v5, %v1012_v47 }
 0x1e4   : > { %v1070_v2 = vmax.f32 %v1013_v60, 0.0 }
 0x1e6   : > { %v1094_v3 = vpack.c.bf16 %v1070_v2, %v1069_v1  ;;  %2125 = vmatmul.msk.bf16.vlgmr.msrb.gmra.mxu2 %vm1139_vm0, %v2907_v24 }
 0x1e8   : > { %2132 = vmatmul.msk.bf16.gmra.mxu3 %vm1139_vm0, %v1094_v3 }
 0x1e9   : > { %v1015_v39 = vpop.f32.mrf.mxu2 }
 0x1ea   : > { %v1016_v4 = vadd.f32 %v2902_v5, %v1015_v39 }
 0x1ec   : > { %v1071_v11 = vmax.f32 %v1016_v4, 0.0  ;;  %v2290_v4 = vld [vmem:[#allocation7 + $0x64] sm:$0xf0] }
 0x1f1   : > { %v1017_v7 = vpop.f32.mrf.mxu2 }
 0x1f2   : > { %v1018_v9 = vadd.f32 %v2902_v5, %v1017_v7  ;;  %v2224_v7 = vor.u32 %v2290_v4, %v2223_v43 }
 0x1f4   : > { %v1072_v12 = vmax.f32 %v1018_v9, 0.0  ;;  %v2289_v9 = vld [vmem:[#allocation7 + $0x64] sm:$0xf]  ;;  %1649 = vmatpush.bf16.msrb.mxu0 %v2224_v7 }
 0x1f6   : > { %v1095_v13 = vpack.c.bf16 %v1072_v12, %v1071_v11  ;;  %2126 = vmatmul.msk.bf16.gmra.mxu2 %vm1139_vm0, %v2916_v49  ;;  %v2225_v11 = vld [vmem:[#allocation7 + $0x68] sm:$0xf0] }
 0x1f8   : > { %2133 = vmatmul.msk.bf16.gmra.mxu3 %vm1139_vm0, %v1095_v13  ;;  %v2228_v13 = vor.u32 %v2289_v9, %v2225_v11 }
 0x1f9   : > { %v1020_v24 = vpop.f32.mrf.mxu2 }
 0x1fa   : > { %v1021_v14 = vadd.f32 %v2902_v5, %v1020_v24  ;;  %1738 = vmatpush.bf16.msrb.mxu1 %v2228_v13 }
 0x1fc   : > { %v1073_v19 = vmax.f32 %v1021_v14, 0.0 }
 0x201   : > { %v1022_v16 = vpop.f32.mrf.mxu2 }
 0x202   : > { %v1023_v18 = vadd.f32 %v2902_v5, %v1022_v16 }
 0x204   : > { %v1074_v62 = vmax.f32 %v1023_v18, 0.0 }
 0x206   : > { %v1096_v20 = vpack.c.bf16 %v1074_v62, %v1073_v19  ;;  %2127 = vmatmul.msk.bf16.gmra.mxu2 %vm1139_vm0, %v2925_v8 }
 0x208   : > { %2134 = vmatmul.msk.bf16.gmra.mxu3 %vm1139_vm0, %v1096_v20 }
 0x209   : > { %v1025_v21 = vpop.f32.mrf.mxu2 }
 0x20a   : > { %v1026_v23 = vadd.f32 %v2902_v5, %v1025_v21 }
 0x20c   : > { %v1075_v55 = vmax.f32 %v1026_v23, 0.0 }
 0x211   : > { %v1027_v49 = vpop.f32.mrf.mxu2 }
 0x212   : > { %v1028_v25 = vadd.f32 %v2902_v5, %v1027_v49 }
 0x214   : > { %v1076_v0 = vmax.f32 %v1028_v25, 0.0 }
 0x216   : > { %v1097_v26 = vpack.c.bf16 %v1076_v0, %v1075_v55 }
 0x218   : > { %2135 = vmatmul.msk.bf16.gmra.mxu3 %vm1139_vm0, %v1097_v26 }
 0x219   : > { %v1030_v27 = vpop.f32.mrf.mxu2 }
 0x21a   : > { %v1031_v54 = vadd.f32 %v2902_v5, %v1030_v27 }
 0x21c   : > { %v1077_v8 = vmax.f32 %v1031_v54, 0.0 }
 0x221   : > { %v1032_v28 = vpop.f32.mrf.mxu2 }
 0x222   : > { %v1033_v30 = vadd.f32 %v2902_v5, %v1032_v28  ;;  %v2215_v28 = vld [vmem:[#allocation7 + $0x50] sm:$0xf] }
 0x224   : > { %v1078_v32 = vmax.f32 %v1033_v30, 0.0  ;;  %v2288_v30 = vld [vmem:[#allocation7 + $0x54] sm:$0xf0] }
 0x226   : > { %v1098_v33 = vpack.c.bf16 %v1078_v32, %v1077_v8  ;;  %v2216_v8 = vor.u32 %v2288_v30, %v2215_v28  ;;  %v2287_v32 = vld [vmem:[#allocation7 + $0x54] sm:$0xf] }
 0x228   : > { %2136 = vmatmul.msk.bf16.gmra.mxu3 %vm1139_vm0, %v1098_v33  ;;  %v2217_v33 = vld [vmem:[#allocation7 + $0x58] sm:$0xf0]  ;;  %1650 = vmatpush.bf16.msrb.mxu0 %v2216_v8 }
 0x229   : > { %v1035_v17 = vpop.f32.mrf.mxu2  ;;  %v2220_v34 = vor.u32 %v2287_v32, %v2217_v33 }
 0x22a   : > { %v1036_v44 = vadd.f32 %v2902_v5, %v1035_v17 }
 0x22b   : > { %v1212_v35 = vpop.f32.mrf.mxu3  ;;  %1739 = vmatpush.bf16.msrb.mxu1 %v2220_v34 }
 0x22c   : > { %v1213_v46 = vadd.f32 %v2988_v41, %v1212_v35  ;;  %v1079_v31 = vmax.f32 %v1036_v44, 0.0 }
 0x22e   : > { %v1283_v51 = vmax.f32 %v1213_v46, 0.0 }
 0x231   : > { %v1037_v45 = vpop.f32.mrf.mxu2 }
 0x232   : > { %v1038_v48 = vadd.f32 %v2902_v5, %v1037_v45 }
 0x233   : > { %v1214_v29 = vpop.f32.mrf.mxu3 }
 0x234   : > { %v1080_v37 = vmax.f32 %v1038_v48, 0.0  ;;  %v1215_v50 = vadd.f32 %v2988_v41, %v1214_v29 }
 0x236   : > { %v1099_v52 = vpack.c.bf16 %v1080_v37, %v1079_v31  ;;  %v1284_v53 = vmax.f32 %v1215_v50, 0.0 }
 0x238   : > { %v2994_v22 = vpack.c.bf16 %v1284_v53, %v1283_v51  ;;  %2137 = vmatmul.msk.bf16.gmra.mxu3 %vm1139_vm0, %v1099_v52 }
 0x239   : > { %v1040_v56 = vpop.f32.mrf.mxu2 }
 0x23a   : > { %v1041_v58 = vadd.f32 %v2902_v5, %v1040_v56 }
 0x23b   : > { %v1217_v57 = vpop.f32.mrf.mxu3 }
 0x23c   : > { %v1218_v61 = vadd.f32 %v2988_v41, %v1217_v57  ;;  %v1081_v47 = vmax.f32 %v1041_v58, 0.0 }
 0x23e   : > { %v1285_v2 = vmax.f32 %v1218_v61, 0.0 }
 0x241   : > { %v1042_v59 = vpop.f32.mrf.mxu2 }
 0x242   : > { %v1043_v63 = vadd.f32 %v2902_v5, %v1042_v59 }
 0x243   : > { %v1219_v40 = vpop.f32.mrf.mxu3 }
 0x244   : > { %v1082_v60 = vmax.f32 %v1043_v63, 0.0  ;;  %v1220_v1 = vadd.f32 %v2988_v41, %v1219_v40  ;;  %v2207_v63 = vld [vmem:[#allocation7 + $0x40] sm:$0xf]  ;;  %v2286_v40 = vld [vmem:[#allocation7 + $0x44] sm:$0xf0] }
 0x246   : > { %v1100_v3 = vpack.c.bf16 %v1082_v60, %v1081_v47  ;;  %v1286_v39 = vmax.f32 %v1220_v1, 0.0  ;;  %v2208_v47 = vor.u32 %v2286_v40, %v2207_v63  ;;  %v2285_v60 = vld [vmem:[#allocation7 + $0x44] sm:$0xf]  ;;  %v2209_v1 = vld [vmem:[#allocation7 + $0x48] sm:$0xf0] }
 0x248   : > { %v3001_v12 = vpack.c.bf16 %v1286_v39, %v1285_v2  ;;  %2138 = vmatmul.msk.bf16.gmra.mxu3 %vm1139_vm0, %v1100_v3  ;;  %v2212_v3 = vor.u32 %v2285_v60, %v2209_v1  ;;  %1651 = vmatpush.bf16.msrb.mxu0 %v2208_v47  ;;  %v2183_v47 = vld [vmem:[#allocation7 + $0x10] sm:$0xf]  ;;  %v2280_v60 = vld [vmem:[#allocation7 + $0x14] sm:$0xf0]  ;;  %v2279_v1 = vld [vmem:[#allocation7 + $0x14] sm:$0xf] }
 0x249   : > { %v1045_v24 = vpop.f32.mrf.mxu2 }
 0x24a   : > { %v1046_v16 = vadd.f32 %v2902_v5, %v1045_v24  ;;  %1740 = vmatpush.bf16.msrb.mxu1 %v2212_v3  ;;  %v2184_v3 = vor.u32 %v2280_v60, %v2183_v47 }
 0x24b   : > { %v1222_v14 = vpop.f32.mrf.mxu3 }
 0x24c   : > { %v1223_v19 = vadd.f32 %v2988_v41, %v1222_v14  ;;  %v1083_v21 = vmax.f32 %v1046_v16, 0.0 }
 0x24e   : > { %v1287_v25 = vmax.f32 %v1223_v19, 0.0 }
 0x251   : > { %v1047_v18 = vpop.f32.mrf.mxu2 }
 0x252   : > { %v1048_v62 = vadd.f32 %v2902_v5, %v1047_v18 }
 0x253   : > { %v1224_v20 = vpop.f32.mrf.mxu3 }
 0x254   : > { %v1084_v23 = vmax.f32 %v1048_v62, 0.0  ;;  %v1225_v49 = vadd.f32 %v2988_v41, %v1224_v20 }
 0x256   : > { %v1101_v55 = vpack.c.bf16 %v1084_v23, %v1083_v21  ;;  %v1288_v0 = vmax.f32 %v1225_v49, 0.0  ;;  %v2199_v21 = vld [vmem:[#allocation7 + $0x30] sm:$0xf]  ;;  %v2284_v23 = vld [vmem:[#allocation7 + $0x34] sm:$0xf0] }
 0x257   : > { %v2283_v49 = vld [vmem:[#allocation7 + $0x34] sm:$0xf] }
 0x258   : > { %v3008_v26 = vpack.c.bf16 %v1288_v0, %v1287_v25  ;;  %2139 = vmatmul.msk.bf16.gmra.mxu3 %vm1139_vm0, %v1101_v55  ;;  %v2200_v55 = vor.u32 %v2284_v23, %v2199_v21  ;;  %v2201_v0 = vld [vmem:[#allocation7 + $0x38] sm:$0xf0] }
 0x259   : > { %v1050_v27 = vpop.f32.mrf.mxu2 }
 0x25a   : > { %v1051_v17 = vadd.f32 %v2902_v5, %v1050_v27  ;;  %v2204_v27 = vor.u32 %v2283_v49, %v2201_v0  ;;  %1652 = vmatpush.bf16.msrb.mxu0 %v2200_v55 }
 0x25b   : > { %v1227_v54 = vpop.f32.mrf.mxu3 }
 0x25c   : > { %v1228_v10 = vadd.f32 %v2988_v41, %v1227_v54  ;;  %v1085_v6 = vmax.f32 %v1051_v17, 0.0  ;;  %1741 = vmatpush.bf16.msrb.mxu1 %v2204_v27 }
 0x25e   : > { %v1289_v44 = vmax.f32 %v1228_v10, 0.0 }
 0x261   : > { %v1052_v35 = vpop.f32.mrf.mxu2 }
 0x262   : > { %v1053_v15 = vadd.f32 %v2902_v5, %v1052_v35 }
 0x263   : > { %v1229_v36 = vpop.f32.mrf.mxu3 }
 0x264   : > { %v1086_v38 = vmax.f32 %v1053_v15, 0.0  ;;  %v1230_v42 = vadd.f32 %v2988_v41, %v1229_v36 }
 0x266   : > { %v1102_v45 = vpack.c.bf16 %v1086_v38, %v1085_v6  ;;  %v1290_v46 = vmax.f32 %v1230_v42, 0.0  ;;  %v2191_v42 = vld [vmem:[#allocation7 + $0x20] sm:$0xf] }
 0x268   : > { %v3015_v48 = vpack.c.bf16 %v1290_v46, %v1289_v44  ;;  %2140 = vmatmul.msk.bf16.gmra.mxu3 %vm1139_vm0, %v1102_v45  ;;  %v2282_v44 = vld [vmem:[#allocation7 + $0x24] sm:$0xf0]  ;;  %v2281_v46 = vld [vmem:[#allocation7 + $0x24] sm:$0xf] }
 0x269   : > { %v1197_v29 = vpop.f32.mrf.mxu2  ;;  %v2192_v45 = vor.u32 %v2282_v44, %v2191_v42  ;;  %v3078_v42 = vld [vmem:[%s3307_s8] ss:$0 sm:$0xff] }
 0x26a   : > { %v1198_v37 = vadd.f32 %v2988_v41, %v1197_v29  ;;  %v2193_v29 = vld [vmem:[#allocation7 + $0x28] sm:$0xf0] }
 0x26b   : > { %v1232_v31 = vpop.f32.mrf.mxu3  ;;  %1653 = vmatpush.bf16.msrb.mxu0 %v2192_v45 }
 0x26c   : > { %v1233_v51 = vadd.f32 %v2988_v41, %v1232_v31  ;;  %v1277_v53 = vmax.f32 %v1198_v37, 0.0  ;;  %v2196_v31 = vor.u32 %v2281_v46, %v2193_v29 }
 0x26e   : > { %v1291_v58 = vmax.f32 %v1233_v51, 0.0  ;;  %1742 = vmatpush.bf16.msrb.mxu1 %v2196_v31 }
 0x26f   : > { %1654 = vmatpush.bf16.msrb.mxu0 %v2184_v3 }
 0x271   : > { %v1199_v50 = vpop.f32.mrf.mxu2 }
 0x272   : > { %v1200_v5 = vadd.f32 %v2988_v41, %v1199_v50 }
 0x273   : > { %v1234_v52 = vpop.f32.mrf.mxu3 }
 0x274   : > { %v1278_v56 = vmax.f32 %v1200_v5, 0.0  ;;  %v1235_v57 = vadd.f32 %v2988_v41, %v1234_v52 }
 0x276   : > { %v1309_v59 = vpack.c.bf16 %v1278_v56, %v1277_v53  ;;  %v1292_v61 = vmax.f32 %v1235_v57, 0.0 }
 0x278   : > { %v3022_v2 = vpack.c.bf16 %v1292_v61, %v1291_v58  ;;  %2157 = vmatmul.msk.bf16.vlgmr.msrb.gmra.mxu3 %vm1139_vm0, %v1309_v59 }
 0x279   : > { %v1202_v39 = vpop.f32.mrf.mxu2 }
 0x27a   : > { %v1203_v4 = vadd.f32 %v2988_v41, %v1202_v39  ;;  %v2185_v39 = vld [vmem:[#allocation7 + $0x18] sm:$0xf0] }
 0x27b   : > { %v1237_v43 = vpop.f32.mrf.mxu3 }
 0x27c   : > { %v1238_v9 = vadd.f32 %v2988_v41, %v1237_v43  ;;  %v1279_v24 = vmax.f32 %v1203_v4, 0.0  ;;  %v2188_v43 = vor.u32 %v2279_v1, %v2185_v39 }
 0x27e   : > { %v1293_v18 = vmax.f32 %v1238_v9, 0.0  ;;  %1743 = vmatpush.bf16.msrb.mxu1 %v2188_v43 }
 0x281   : > { %v1204_v7 = vpop.f32.mrf.mxu2 }
 0x282   : > { %v1205_v11 = vadd.f32 %v2988_v41, %v1204_v7 }
 0x283   : > { %v1239_v13 = vpop.f32.mrf.mxu3 }
 0x284   : > { %v1280_v14 = vmax.f32 %v1205_v11, 0.0  ;;  %v1240_v16 = vadd.f32 %v2988_v41, %v1239_v13 }
 0x286   : > { %v1310_v19 = vpack.c.bf16 %v1280_v14, %v1279_v24  ;;  %v1294_v62 = vmax.f32 %v1240_v16, 0.0  ;;  %v2175_v14 = vld [vmem:[#allocation7] sm:$0xf]  ;;  %v2278_v16 = vld [vmem:[#allocation7 + $0x4] sm:$0xf0] }
 0x288   : > { %v3029_v20 = vpack.c.bf16 %v1294_v62, %v1293_v18  ;;  %2158 = vmatmul.msk.bf16.gmra.mxu3 %vm1139_vm0, %v1310_v19  ;;  %v2176_v18 = vor.u32 %v2278_v16, %v2175_v14  ;;  %v2277_v19 = vld [vmem:[#allocation7 + $0x4] sm:$0xf]  ;;  %v2177_v62 = vld [vmem:[#allocation7 + $0x8] sm:$0xf0] }
 0x289   : > { %v1207_v25 = vpop.f32.mrf.mxu2  ;;  %v2180_v21 = vor.u32 %v2277_v19, %v2177_v62 }
 0x28a   : > { %v1208_v28 = vadd.f32 %v2988_v41, %v1207_v25  ;;  %1655 = vmatpush.bf16.msrb.mxu0 %v2176_v18 }
 0x28b   : > { %v1242_v54 = vpop.f32.mrf.mxu3  ;;  %1744 = vmatpush.bf16.msrb.mxu1 %v2180_v21 }
 0x28c   : > { %v1243_v8 = vadd.f32 %v2988_v41, %v1242_v54  ;;  %v1281_v34 = vmax.f32 %v1208_v28, 0.0 }
 0x28e   : > { %v1295_v10 = vmax.f32 %v1243_v8, 0.0 }
 0x291   : > { %v1209_v30 = vpop.f32.mrf.mxu2 }
 0x292   : > { %v1210_v32 = vadd.f32 %v2988_v41, %v1209_v30 }
 0x293   : > { %v1244_v33 = vpop.f32.mrf.mxu3 }
 0x294   : > { %v1282_v17 = vmax.f32 %v1210_v32, 0.0  ;;  %v1245_v35 = vadd.f32 %v2988_v41, %v1244_v33 }
 0x296   : > { %v1311_v15 = vpack.c.bf16 %v1282_v17, %v1281_v34  ;;  %v1296_v36 = vmax.f32 %v1245_v35, 0.0 }
 0x298   : > { %v3036_v6 = vpack.c.bf16 %v1296_v36, %v1295_v10  ;;  %2159 = vmatmul.msk.bf16.gmra.mxu3 %vm1139_vm0, %v1311_v15 }
 0x29b   : > { %v1247_v38 = vpop.f32.mrf.mxu3 }
 0x29c   : > { %v1248_v37 = vadd.f32 %v2988_v41, %v1247_v38 }
 0x29e   : > { %v1297_v5 = vmax.f32 %v1248_v37, 0.0 }
 0x2a3   : > { %v1249_v50 = vpop.f32.mrf.mxu3 }
 0x2a4   : > { %v1250_v51 = vadd.f32 %v2988_v41, %v1249_v50 }
 0x2a6   : > { %v1298_v52 = vmax.f32 %v1250_v51, 0.0 }
 0x2a8   : > { %v3041_v53 = vpack.c.bf16 %v1298_v52, %v1297_v5  ;;  %2160 = vmatmul.msk.bf16.gmra.mxu3 %vm1139_vm0, %v2994_v22 }
 0x2ab   : > { %v1252_v56 = vpop.f32.mrf.mxu3 }
 0x2ac   : > { %v1253_v57 = vadd.f32 %v2988_v41, %v1252_v56 }
 0x2ae   : > { %v1299_v61 = vmax.f32 %v1253_v57, 0.0 }
 0x2b3   : > { %v1254_v58 = vpop.f32.mrf.mxu3 }
 0x2b4   : > { %v1255_v59 = vadd.f32 %v2988_v41, %v1254_v58 }
 0x2b6   : > { %v1300_v63 = vmax.f32 %v1255_v59, 0.0 }
 0x2b8   : > { %v3047_v40 = vpack.c.bf16 %v1300_v63, %v1299_v61  ;;  %2161 = vmatmul.msk.bf16.gmra.mxu3 %vm1139_vm0, %v3001_v12 }
 0x2bb   : > { %v1257_v22 = vpop.f32.mrf.mxu3 }
 0x2bc   : > { %v1258_v4 = vadd.f32 %v2988_v41, %v1257_v22 }
 0x2be   : > { %v1301_v11 = vmax.f32 %v1258_v4, 0.0 }
 0x2c3   : > { %v1259_v7 = vpop.f32.mrf.mxu3 }
 0x2c4   : > { %v1260_v9 = vadd.f32 %v2988_v41, %v1259_v7 }
 0x2c6   : > { %v1302_v13 = vmax.f32 %v1260_v9, 0.0 }
 0x2c8   : > { %v3053_v24 = vpack.c.bf16 %v1302_v13, %v1301_v11  ;;  %2162 = vmatmul.msk.bf16.gmra.mxu3 %vm1139_vm0, %v3008_v26 }
 0x2cb   : > { %v1262_v12 = vpop.f32.mrf.mxu3 }
 0x2cc   : > { %v1263_v23 = vadd.f32 %v2988_v41, %v1262_v12 }
 0x2ce   : > { %v1303_v55 = vmax.f32 %v1263_v23, 0.0 }
 0x2d3   : > { %v1264_v49 = vpop.f32.mrf.mxu3 }
 0x2d4   : > { %v1265_v25 = vadd.f32 %v2988_v41, %v1264_v49 }
 0x2d6   : > { %v1304_v0 = vmax.f32 %v1265_v25, 0.0 }
 0x2d8   : > { %v3059_v27 = vpack.c.bf16 %v1304_v0, %v1303_v55  ;;  %2163 = vmatmul.msk.bf16.gmra.mxu3 %vm1139_vm0, %v3015_v48 }
 0x2db   : > { %v1267_v26 = vpop.f32.mrf.mxu3 }
 0x2dc   : > { %v1268_v54 = vadd.f32 %v2988_v41, %v1267_v26 }
 0x2de   : > { %v1305_v8 = vmax.f32 %v1268_v54, 0.0 }
 0x2e3   : > { %v1269_v28 = vpop.f32.mrf.mxu3 }
 0x2e4   : > { %v1270_v30 = vadd.f32 %v2988_v41, %v1269_v28 }
 0x2e6   : > { %v1306_v32 = vmax.f32 %v1270_v30, 0.0 }
 0x2e8   : > { %v3065_v33 = vpack.c.bf16 %v1306_v32, %v1305_v8  ;;  %2164 = vmatmul.msk.bf16.gmra.mxu3 %vm1139_vm0, %v3022_v2 }
 0x2eb   : > { %v1272_v34 = vpop.f32.mrf.mxu3 }
 0x2ec   : > { %v1273_v17 = vadd.f32 %v2988_v41, %v1272_v34 }
 0x2ee   : > { %v1307_v48 = vmax.f32 %v1273_v17, 0.0  ;;  %v1562_v17 = vld [vmem:[%s3309_s10] sm:$0x3] }
 0x2f3   : > { %v1274_v35 = vpop.f32.mrf.mxu3 }
 0x2f4   : > { %v1275_v10 = vadd.f32 %v2988_v41, %v1274_v35 }
 0x2f6   : > { %v1308_v15 = vmax.f32 %v1275_v10, 0.0 }
 0x2f8   : > { %v3071_v36 = vpack.c.bf16 %v1308_v15, %v1307_v48  ;;  %2165 = vmatmul.msk.bf16.gmra.mxu3 %vm1139_vm0, %v3029_v20  ;;  %v3115_v15 = vperm.slane %v1562_v17, 0 }
 0x2fb   : > { %v1418_v38 = vpop.f32.mrf.mxu3 }
 0x2fc   : > { %v1419_v2 = vadd.f32 %v3078_v42, %v1418_v38 }
 0x2fe   : > { %v1498_v46 = vmax.f32 %v1419_v2, 0.0 }
 0x303   : > { %v1420_v44 = vpop.f32.mrf.mxu3 }
 0x304   : > { %v1421_v45 = vadd.f32 %v3078_v42, %v1420_v44 }
 0x306   : > { %v1499_v41 = vmax.f32 %v1421_v45, 0.0 }
 0x308   : > { %v1530_v29 = vpack.c.bf16 %v1499_v41, %v1498_v46  ;;  %2166 = vmatmul.msk.bf16.gmra.mxu3 %vm1139_vm0, %v3036_v6 }
 0x30a   : > { %1656 = vmatmul.bf16.vlgmr.msrb.gmra.mxu0 %v1530_v29  ;;  %1745 = vmatmul.bf16.vlgmr.msrb.gmra.mxu1 %v1530_v29 }
 0x30b   : > { %v1423_v20 = vpop.f32.mrf.mxu3 }
 0x30c   : > { %v1424_v31 = vadd.f32 %v3078_v42, %v1423_v20 }
 0x30e   : > { %v1500_v51 = vmax.f32 %v1424_v31, 0.0 }
 0x313   : > { %v1425_v37 = vpop.f32.mrf.mxu3 }
 0x314   : > { %v1426_v50 = vadd.f32 %v3078_v42, %v1425_v37 }
 0x316   : > { %v1501_v5 = vmax.f32 %v1426_v50, 0.0 }
 0x318   : > { %2167 = vmatmul.msk.bf16.gmra.mxu3 %vm1139_vm0, %v3041_v53  ;;  %v1531_v52 = vpack.c.bf16 %v1501_v5, %v1500_v51 }
 0x31a   : > { %1661 = vmatmul.bf16.gmra.mxu0 %v1531_v52  ;;  %1750 = vmatmul.bf16.gmra.mxu1 %v1531_v52 }
 0x31b   : > { %v1428_v56 = vpop.f32.mrf.mxu3 }
 0x31c   : > { %v1429_v57 = vadd.f32 %v3078_v42, %v1428_v56 }
 0x31e   : > { %v1502_v59 = vmax.f32 %v1429_v57, 0.0 }
 0x323   : > { %v1430_v6 = vpop.f32.mrf.mxu3 }
 0x324   : > { %v1431_v58 = vadd.f32 %v3078_v42, %v1430_v6 }
 0x326   : > { %v1503_v61 = vmax.f32 %v1431_v58, 0.0 }
 0x328   : > { %2168 = vmatmul.msk.bf16.gmra.mxu3 %vm1139_vm0, %v3047_v40  ;;  %v1532_v63 = vpack.c.bf16 %v1503_v61, %v1502_v59 }
 0x32a   : > { %1666 = vmatmul.bf16.gmra.mxu0 %v1532_v63  ;;  %1755 = vmatmul.bf16.gmra.mxu1 %v1532_v63 }
 0x32b   : > { %v1433_v47 = vpop.f32.mrf.mxu3 }
 0x32c   : > { %v1434_v53 = vadd.f32 %v3078_v42, %v1433_v47 }
 0x32e   : > { %v1504_v3 = vmax.f32 %v1434_v53, 0.0 }
 0x333   : > { %v1435_v60 = vpop.f32.mrf.mxu3 }
 0x334   : > { %v1436_v1 = vadd.f32 %v3078_v42, %v1435_v60 }
 0x336   : > { %v1505_v39 = vmax.f32 %v1436_v1, 0.0 }
 0x338   : > { %2169 = vmatmul.msk.bf16.gmra.mxu3 %vm1139_vm0, %v3053_v24  ;;  %v1533_v43 = vpack.c.bf16 %v1505_v39, %v1504_v3 }
 0x33a   : > { %1671 = vmatmul.bf16.gmra.mxu0 %v1533_v43  ;;  %1760 = vmatmul.bf16.gmra.mxu1 %v1533_v43 }
 0x33b   : > { %v1438_v22 = vpop.f32.mrf.mxu3 }
 0x33c   : > { %v1439_v40 = vadd.f32 %v3078_v42, %v1438_v22 }
 0x33e   : > { %v1506_v9 = vmax.f32 %v1439_v40, 0.0 }
 0x343   : > { %v1440_v4 = vpop.f32.mrf.mxu3 }
 0x344   : > { %v1441_v7 = vadd.f32 %v3078_v42, %v1440_v4 }
 0x346   : > { %v1507_v11 = vmax.f32 %v1441_v7, 0.0 }
 0x348   : > { %v1534_v13 = vpack.c.bf16 %v1507_v11, %v1506_v9  ;;  %2170 = vmatmul.msk.bf16.gmra.mxu3 %vm1139_vm0, %v3059_v27 }
 0x34a   : > { %1676 = vmatmul.bf16.gmra.mxu0 %v1534_v13  ;;  %1765 = vmatmul.bf16.gmra.mxu1 %v1534_v13 }
 0x34b   : > { %v1443_v12 = vpop.f32.mrf.mxu3 }
 0x34c   : > { %v1444_v24 = vadd.f32 %v3078_v42, %v1443_v12 }
 0x34e   : > { %v1508_v18 = vmax.f32 %v1444_v24, 0.0 }
 0x353   : > { %v1445_v14 = vpop.f32.mrf.mxu3 }
 0x354   : > { %v1446_v16 = vadd.f32 %v3078_v42, %v1445_v14 }
 0x356   : > { %v1509_v19 = vmax.f32 %v1446_v16, 0.0 }
 0x358   : > { %v1535_v62 = vpack.c.bf16 %v1509_v19, %v1508_v18  ;;  %2171 = vmatmul.msk.bf16.gmra.mxu3 %vm1139_vm0, %v3065_v33 }
 0x35a   : > { %1681 = vmatmul.bf16.gmra.mxu0 %v1535_v62  ;;  %1770 = vmatmul.bf16.gmra.mxu1 %v1535_v62 }
 0x35b   : > { %v1448_v21 = vpop.f32.mrf.mxu3 }
 0x35c   : > { %v1449_v23 = vadd.f32 %v3078_v42, %v1448_v21 }
 0x35e   : > { %v1510_v55 = vmax.f32 %v1449_v23, 0.0 }
 0x363   : > { %v1450_v49 = vpop.f32.mrf.mxu3 }
 0x364   : > { %v1451_v25 = vadd.f32 %v3078_v42, %v1450_v49 }
 0x366   : > { %v1511_v0 = vmax.f32 %v1451_v25, 0.0 }
 0x368   : > { %v1536_v27 = vpack.c.bf16 %v1511_v0, %v1510_v55  ;;  %2172 = vmatmul.msk.bf16.gmra.mxu3 %vm1139_vm0, %v3071_v36  ;;  %v3117_v36 = vperm.slane %v1562_v17, 1 }
 0x36a   : > { %1686 = vmatmul.bf16.gmra.mxu0 %v1536_v27  ;;  %1775 = vmatmul.bf16.gmra.mxu1 %v1536_v27 }
 0x36b   : > { %v1453_v26 = vpop.f32.mrf.mxu3 }
 0x36c   : > { %v1454_v54 = vadd.f32 %v3078_v42, %v1453_v26 }
 0x36e   : > { %v1512_v8 = vmax.f32 %v1454_v54, 0.0 }
 0x373   : > { %v1455_v28 = vpop.f32.mrf.mxu3 }
 0x374   : > { %v1456_v30 = vadd.f32 %v3078_v42, %v1455_v28 }
 0x376   : > { %v1513_v32 = vmax.f32 %v1456_v30, 0.0 }
 0x378   : > { %v1537_v33 = vpack.c.bf16 %v1513_v32, %v1512_v8 }
 0x37a   : > { %1691 = vmatmul.bf16.gmra.mxu0 %v1537_v33  ;;  %1780 = vmatmul.bf16.gmra.mxu1 %v1537_v33 }
 0x37b   : > { %v1458_v34 = vpop.f32.mrf.mxu3 }
 0x37c   : > { %v1459_v35 = vadd.f32 %v3078_v42, %v1458_v34 }
 0x37e   : > { %v1514_v38 = vmax.f32 %v1459_v35, 0.0 }
 0x383   : > { %v1460_v10 = vpop.f32.mrf.mxu3 }
 0x384   : > { %v1461_v48 = vadd.f32 %v3078_v42, %v1460_v10 }
 0x386   : > { %v1515_v2 = vmax.f32 %v1461_v48, 0.0 }
 0x387   : > { %v1657_v44 = vpop.f32.mrf.mxu0  ;;  %v1746_v45 = vpop.f32.mrf.mxu1 }
 0x388   : > { %v1538_v46 = vpack.c.bf16 %v1515_v2, %v1514_v38  ;;  %v1658_v41 = vadd.f32 %v1657_v44, %v3115_v15  ;;  %v1747_v29 = vadd.f32 %v1746_v45, %v3117_v36 }
 0x38a   : > { %1826 = vst [vmem:[%s3123_s13] sm:$0xff] %v1658_v41  ;;  %1696 = vmatmul.bf16.gmra.mxu0 %v1538_v46  ;;  %1785 = vmatmul.bf16.gmra.mxu1 %v1538_v46 }
 0x38b   : > { %1827 = vst [vmem:[%s3123_s13 + $0x8] sm:$0xff] %v1747_v29  ;;  %v1463_v20 = vpop.f32.mrf.mxu3 }
 0x38c   : > { %v1464_v5 = vadd.f32 %v3078_v42, %v1463_v20 }
 0x38e   : > { %v1516_v57 = vmax.f32 %v1464_v5, 0.0 }
 0x38f   : > { %v1659_v31 = vpop.f32.mrf.mxu0  ;;  %v1748_v37 = vpop.f32.mrf.mxu1 }
 0x390   : > { %v1660_v50 = vadd.f32 %v1659_v31, %v3115_v15  ;;  %v1749_v51 = vadd.f32 %v1748_v37, %v3117_v36 }
 0x392   : > { %1828 = vst [vmem:[%s3123_s13 + $0x10] sm:$0xff] %v1660_v50 }
 0x393   : > { %1829 = vst [vmem:[%s3123_s13 + $0x18] sm:$0xff] %v1749_v51  ;;  %v1465_v52 = vpop.f32.mrf.mxu3 }
 0x394   : > { %v1466_v56 = vadd.f32 %v3078_v42, %v1465_v52 }
 0x396   : > { %v1517_v6 = vmax.f32 %v1466_v56, 0.0 }
 0x397   : > { %v1662_v58 = vpop.f32.mrf.mxu0  ;;  %v1751_v59 = vpop.f32.mrf.mxu1 }
 0x398   : > { %v1539_v61 = vpack.c.bf16 %v1517_v6, %v1516_v57  ;;  %v1663_v63 = vadd.f32 %v1662_v58, %v3115_v15  ;;  %v1752_v47 = vadd.f32 %v1751_v59, %v3117_v36 }
 0x39a   : > { %1830 = vst [vmem:[%s3123_s13 + $0x20] sm:$0xff] %v1663_v63  ;;  %1701 = vmatmul.bf16.gmra.mxu0 %v1539_v61  ;;  %1790 = vmatmul.bf16.gmra.mxu1 %v1539_v61 }
 0x39b   : > { %1831 = vst [vmem:[%s3123_s13 + $0x28] sm:$0xff] %v1752_v47  ;;  %v1468_v53 = vpop.f32.mrf.mxu3 }
 0x39c   : > { %v1469_v43 = vadd.f32 %v3078_v42, %v1468_v53 }
 0x39e   : > { %v1518_v4 = vmax.f32 %v1469_v43, 0.0 }
 0x39f   : > { %v1664_v60 = vpop.f32.mrf.mxu0  ;;  %v1753_v1 = vpop.f32.mrf.mxu1 }
 0x3a0   : > { %v1665_v3 = vadd.f32 %v1664_v60, %v3115_v15  ;;  %v1754_v39 = vadd.f32 %v1753_v1, %v3117_v36 }
 0x3a2   : > { %1832 = vst [vmem:[%s3123_s13 + $0x30] sm:$0xff] %v1665_v3 }
 0x3a3   : > { %1833 = vst [vmem:[%s3123_s13 + $0x38] sm:$0xff] %v1754_v39  ;;  %v1470_v22 = vpop.f32.mrf.mxu3 }
 0x3a4   : > { %v1471_v40 = vadd.f32 %v3078_v42, %v1470_v22 }
 0x3a6   : > { %v1519_v7 = vmax.f32 %v1471_v40, 0.0 }
 0x3a7   : > { %v1667_v9 = vpop.f32.mrf.mxu0  ;;  %v1756_v11 = vpop.f32.mrf.mxu1 }
 0x3a8   : > { %v1540_v13 = vpack.c.bf16 %v1519_v7, %v1518_v4  ;;  %v1668_v12 = vadd.f32 %v1667_v9, %v3115_v15  ;;  %v1757_v24 = vadd.f32 %v1756_v11, %v3117_v36 }
 0x3aa   : > { %1834 = vst [vmem:[%s3123_s13 + $0x40] sm:$0xff] %v1668_v12  ;;  %1706 = vmatmul.bf16.gmra.mxu0 %v1540_v13  ;;  %1795 = vmatmul.bf16.gmra.mxu1 %v1540_v13 }
 0x3ab   : > { %1835 = vst [vmem:[%s3123_s13 + $0x48] sm:$0xff] %v1757_v24  ;;  %v1473_v14 = vpop.f32.mrf.mxu3 }
 0x3ac   : > { %v1474_v21 = vadd.f32 %v3078_v42, %v1473_v14 }
 0x3ae   : > { %v1520_v25 = vmax.f32 %v1474_v21, 0.0 }
 0x3af   : > { %v1669_v16 = vpop.f32.mrf.mxu0  ;;  %v1758_v18 = vpop.f32.mrf.mxu1 }
 0x3b0   : > { %v1670_v19 = vadd.f32 %v1669_v16, %v3115_v15  ;;  %v1759_v62 = vadd.f32 %v1758_v18, %v3117_v36 }
 0x3b2   : > { %1836 = vst [vmem:[%s3123_s13 + $0x50] sm:$0xff] %v1670_v19 }
 0x3b3   : > { %1837 = vst [vmem:[%s3123_s13 + $0x58] sm:$0xff] %v1759_v62  ;;  %v1475_v23 = vpop.f32.mrf.mxu3 }
 0x3b4   : > { %v1476_v49 = vadd.f32 %v3078_v42, %v1475_v23 }
 0x3b6   : > { %v1521_v55 = vmax.f32 %v1476_v49, 0.0 }
 0x3b7   : > { %v1672_v0 = vpop.f32.mrf.mxu0  ;;  %v1761_v27 = vpop.f32.mrf.mxu1 }
 0x3b8   : > { %v1541_v26 = vpack.c.bf16 %v1521_v55, %v1520_v25  ;;  %v1673_v54 = vadd.f32 %v1672_v0, %v3115_v15  ;;  %v1762_v28 = vadd.f32 %v1761_v27, %v3117_v36 }
 0x3ba   : > { %1838 = vst [vmem:[%s3123_s13 + $0x60] sm:$0xff] %v1673_v54  ;;  %1711 = vmatmul.bf16.gmra.mxu0 %v1541_v26  ;;  %1800 = vmatmul.bf16.gmra.mxu1 %v1541_v26 }
 0x3bb   : > { %1839 = vst [vmem:[%s3123_s13 + $0x68] sm:$0xff] %v1762_v28  ;;  %v1478_v30 = vpop.f32.mrf.mxu3 }
 0x3bc   : > { %v1479_v17 = vadd.f32 %v3078_v42, %v1478_v30 }
 0x3be   : > { %v1522_v48 = vmax.f32 %v1479_v17, 0.0 }
 0x3bf   : > { %v1674_v8 = vpop.f32.mrf.mxu0  ;;  %v1763_v32 = vpop.f32.mrf.mxu1 }
 0x3c0   : > { %v1675_v33 = vadd.f32 %v1674_v8, %v3115_v15  ;;  %v1764_v34 = vadd.f32 %v1763_v32, %v3117_v36 }
 0x3c2   : > { %1840 = vst [vmem:[%s3123_s13 + $0x70] sm:$0xff] %v1675_v33 }
 0x3c3   : > { %1841 = vst [vmem:[%s3123_s13 + $0x78] sm:$0xff] %v1764_v34  ;;  %v1480_v35 = vpop.f32.mrf.mxu3 }
 0x3c4   : > { %v1481_v10 = vadd.f32 %v3078_v42, %v1480_v35 }
 0x3c6   : > { %v1523_v38 = vmax.f32 %v1481_v10, 0.0 }
 0x3c7   : > { %v1677_v2 = vpop.f32.mrf.mxu0  ;;  %v1766_v44 = vpop.f32.mrf.mxu1 }
 0x3c8   : > { %v1542_v45 = vpack.c.bf16 %v1523_v38, %v1522_v48  ;;  %v1678_v46 = vadd.f32 %v1677_v2, %v3115_v15  ;;  %v1767_v41 = vadd.f32 %v1766_v44, %v3117_v36 }
 0x3ca   : > { %1842 = vst [vmem:[%s3123_s13 + $0x80] sm:$0xff] %v1678_v46  ;;  %1716 = vmatmul.bf16.gmra.mxu0 %v1542_v45  ;;  %1805 = vmatmul.bf16.gmra.mxu1 %v1542_v45 }
 0x3cb   : > { %1843 = vst [vmem:[%s3123_s13 + $0x88] sm:$0xff] %v1767_v41  ;;  %v1483_v29 = vpop.f32.mrf.mxu3 }
 0x3cc   : > { %v1484_v51 = vadd.f32 %v3078_v42, %v1483_v29 }
 0x3ce   : > { %v1524_v56 = vmax.f32 %v1484_v51, 0.0 }
 0x3cf   : > { %v1679_v20 = vpop.f32.mrf.mxu0  ;;  %v1768_v31 = vpop.f32.mrf.mxu1 }
 0x3d0   : > { %v1680_v37 = vadd.f32 %v1679_v20, %v3115_v15  ;;  %v1769_v50 = vadd.f32 %v1768_v31, %v3117_v36 }
 0x3d2   : > { %1844 = vst [vmem:[%s3123_s13 + $0x90] sm:$0xff] %v1680_v37 }
 0x3d3   : > { %1845 = vst [vmem:[%s3123_s13 + $0x98] sm:$0xff] %v1769_v50  ;;  %v1485_v5 = vpop.f32.mrf.mxu3 }
 0x3d4   : > { %v1486_v52 = vadd.f32 %v3078_v42, %v1485_v5 }
 0x3d6   : > { %v1525_v57 = vmax.f32 %v1486_v52, 0.0 }
 0x3d7   : > { %v1682_v6 = vpop.f32.mrf.mxu0  ;;  %v1771_v58 = vpop.f32.mrf.mxu1 }
 0x3d8   : > { %v1543_v59 = vpack.c.bf16 %v1525_v57, %v1524_v56  ;;  %v1683_v61 = vadd.f32 %v1682_v6, %v3115_v15  ;;  %v1772_v63 = vadd.f32 %v1771_v58, %v3117_v36 }
 0x3da   : > { %1846 = vst [vmem:[%s3123_s13 + $0xa0] sm:$0xff] %v1683_v61  ;;  %1721 = vmatmul.bf16.gmra.mxu0 %v1543_v59  ;;  %1810 = vmatmul.bf16.gmra.mxu1 %v1543_v59 }
 0x3db   : > { %1847 = vst [vmem:[%s3123_s13 + $0xa8] sm:$0xff] %v1772_v63  ;;  %v1488_v47 = vpop.f32.mrf.mxu3 }
 0x3dc   : > { %v1489_v39 = vadd.f32 %v3078_v42, %v1488_v47 }
 0x3de   : > { %v1526_v40 = vmax.f32 %v1489_v39, 0.0 }
 0x3df   : > { %v1684_v53 = vpop.f32.mrf.mxu0  ;;  %v1773_v60 = vpop.f32.mrf.mxu1 }
 0x3e0   : > { %v1685_v1 = vadd.f32 %v1684_v53, %v3115_v15  ;;  %v1774_v3 = vadd.f32 %v1773_v60, %v3117_v36 }
 0x3e2   : > { %1848 = vst [vmem:[%s3123_s13 + $0xb0] sm:$0xff] %v1685_v1 }
 0x3e3   : > { %1849 = vst [vmem:[%s3123_s13 + $0xb8] sm:$0xff] %v1774_v3  ;;  %v1490_v43 = vpop.f32.mrf.mxu3 }
 0x3e4   : > { %v1491_v22 = vadd.f32 %v3078_v42, %v1490_v43 }
 0x3e6   : > { %v1527_v4 = vmax.f32 %v1491_v22, 0.0 }
 0x3e7   : > { %v1687_v7 = vpop.f32.mrf.mxu0  ;;  %v1776_v9 = vpop.f32.mrf.mxu1 }
 0x3e8   : > { %v1544_v11 = vpack.c.bf16 %v1527_v4, %v1526_v40  ;;  %v1688_v13 = vadd.f32 %v1687_v7, %v3115_v15  ;;  %v1777_v12 = vadd.f32 %v1776_v9, %v3117_v36 }
 0x3ea   : > { %1850 = vst [vmem:[%s3123_s13 + $0xc0] sm:$0xff] %v1688_v13  ;;  %1726 = vmatmul.bf16.gmra.mxu0 %v1544_v11  ;;  %1815 = vmatmul.bf16.gmra.mxu1 %v1544_v11 }
 0x3eb   : > { %1851 = vst [vmem:[%s3123_s13 + $0xc8] sm:$0xff] %v1777_v12  ;;  %v1493_v24 = vpop.f32.mrf.mxu3 }
 0x3ec   : > { %v1494_v62 = vadd.f32 %v3078_v42, %v1493_v24 }
 0x3ee   : > { %v1528_v49 = vmax.f32 %v1494_v62, 0.0 }
 0x3ef   : > { %v1689_v14 = vpop.f32.mrf.mxu0  ;;  %v1778_v16 = vpop.f32.mrf.mxu1 }
 0x3f0   : > { %v1690_v18 = vadd.f32 %v1689_v14, %v3115_v15  ;;  %v1779_v19 = vadd.f32 %v1778_v16, %v3117_v36 }
 0x3f2   : > { %1852 = vst [vmem:[%s3123_s13 + $0xd0] sm:$0xff] %v1690_v18 }
 0x3f3   : > { %1853 = vst [vmem:[%s3123_s13 + $0xd8] sm:$0xff] %v1779_v19  ;;  %v1495_v21 = vpop.f32.mrf.mxu3 }
 0x3f4   : > { %v1496_v23 = vadd.f32 %v3078_v42, %v1495_v21 }
 0x3f6   : > { %v1529_v25 = vmax.f32 %v1496_v23, 0.0 }
 0x3f7   : > { %v1692_v55 = vpop.f32.mrf.mxu0  ;;  %v1781_v0 = vpop.f32.mrf.mxu1 }
 0x3f8   : > { %v1545_v27 = vpack.c.bf16 %v1529_v25, %v1528_v49  ;;  %v1693_v26 = vadd.f32 %v1692_v55, %v3115_v15  ;;  %v1782_v54 = vadd.f32 %v1781_v0, %v3117_v36 }
 0x3fa   : > { %1854 = vst [vmem:[%s3123_s13 + $0xe0] sm:$0xff] %v1693_v26  ;;  %1731 = vmatmul.bf16.gmra.mxu0 %v1545_v27  ;;  %1820 = vmatmul.bf16.gmra.mxu1 %v1545_v27 }
 0x3fb   : > { %1855 = vst [vmem:[%s3123_s13 + $0xe8] sm:$0xff] %v1782_v54 }
 0x3ff   : > { %v1694_v28 = vpop.f32.mrf.mxu0  ;;  %v1783_v42 = vpop.f32.mrf.mxu1 }
 0x400   : > { %v1695_v30 = vadd.f32 %v1694_v28, %v3115_v15  ;;  %v1784_v8 = vadd.f32 %v1783_v42, %v3117_v36 }
 0x402   : > { %1856 = vst [vmem:[%s3123_s13 + $0xf0] sm:$0xff] %v1695_v30 }
 0x403   : > { %1857 = vst [vmem:[%s3123_s13 + $0xf8] sm:$0xff] %v1784_v8 }
 0x407   : > { %v1697_v32 = vpop.f32.mrf.mxu0  ;;  %v1786_v33 = vpop.f32.mrf.mxu1 }
 0x408   : > { %v1698_v34 = vadd.f32 %v1697_v32, %v3115_v15  ;;  %v1787_v17 = vadd.f32 %v1786_v33, %v3117_v36 }
 0x40a   : > { %1858 = vst [vmem:[%s3123_s13 + $0x100] sm:$0xff] %v1698_v34 }
 0x40b   : > { %1859 = vst [vmem:[%s3123_s13 + $0x108] sm:$0xff] %v1787_v17 }
 0x40f   : > { %v1699_v35 = vpop.f32.mrf.mxu0  ;;  %v1788_v10 = vpop.f32.mrf.mxu1 }
 0x410   : > { %v1700_v48 = vadd.f32 %v1699_v35, %v3115_v15  ;;  %v1789_v38 = vadd.f32 %v1788_v10, %v3117_v36 }
 0x412   : > { %1860 = vst [vmem:[%s3123_s13 + $0x110] sm:$0xff] %v1700_v48 }
 0x413   : > { %1861 = vst [vmem:[%s3123_s13 + $0x118] sm:$0xff] %v1789_v38 }
 0x417   : > { %v1702_v2 = vpop.f32.mrf.mxu0  ;;  %v1791_v44 = vpop.f32.mrf.mxu1 }
 0x418   : > { %v1703_v45 = vadd.f32 %v1702_v2, %v3115_v15  ;;  %v1792_v46 = vadd.f32 %v1791_v44, %v3117_v36 }
 0x41a   : > { %1862 = vst [vmem:[%s3123_s13 + $0x120] sm:$0xff] %v1703_v45 }
 0x41b   : > { %1863 = vst [vmem:[%s3123_s13 + $0x128] sm:$0xff] %v1792_v46 }
 0x41f   : > { %v1704_v41 = vpop.f32.mrf.mxu0  ;;  %v1793_v29 = vpop.f32.mrf.mxu1 }
 0x420   : > { %v1705_v20 = vadd.f32 %v1704_v41, %v3115_v15  ;;  %v1794_v31 = vadd.f32 %v1793_v29, %v3117_v36 }
 0x422   : > { %1864 = vst [vmem:[%s3123_s13 + $0x130] sm:$0xff] %v1705_v20 }
 0x423   : > { %1865 = vst [vmem:[%s3123_s13 + $0x138] sm:$0xff] %v1794_v31 }
 0x427   : > { %v1707_v37 = vpop.f32.mrf.mxu0  ;;  %v1796_v50 = vpop.f32.mrf.mxu1 }
 0x428   : > { %v1708_v51 = vadd.f32 %v1707_v37, %v3115_v15  ;;  %v1797_v5 = vadd.f32 %v1796_v50, %v3117_v36 }
 0x42a   : > { %1866 = vst [vmem:[%s3123_s13 + $0x140] sm:$0xff] %v1708_v51 }
 0x42b   : > { %1867 = vst [vmem:[%s3123_s13 + $0x148] sm:$0xff] %v1797_v5 }
 0x42f   : > { %v1709_v52 = vpop.f32.mrf.mxu0  ;;  %v1798_v56 = vpop.f32.mrf.mxu1 }
 0x430   : > { %v1710_v57 = vadd.f32 %v1709_v52, %v3115_v15  ;;  %v1799_v6 = vadd.f32 %v1798_v56, %v3117_v36 }
 0x432   : > { %1868 = vst [vmem:[%s3123_s13 + $0x150] sm:$0xff] %v1710_v57 }
 0x433   : > { %1869 = vst [vmem:[%s3123_s13 + $0x158] sm:$0xff] %v1799_v6 }
 0x437   : > { %v1712_v58 = vpop.f32.mrf.mxu0  ;;  %v1801_v59 = vpop.f32.mrf.mxu1 }
 0x438   : > { %v1713_v61 = vadd.f32 %v1712_v58, %v3115_v15  ;;  %v1802_v63 = vadd.f32 %v1801_v59, %v3117_v36 }
 0x43a   : > { %1870 = vst [vmem:[%s3123_s13 + $0x160] sm:$0xff] %v1713_v61 }
 0x43b   : > { %1871 = vst [vmem:[%s3123_s13 + $0x168] sm:$0xff] %v1802_v63 }
 0x43f   : > { %v1714_v47 = vpop.f32.mrf.mxu0  ;;  %v1803_v53 = vpop.f32.mrf.mxu1 }
 0x440   : > { %v1715_v60 = vadd.f32 %v1714_v47, %v3115_v15  ;;  %v1804_v1 = vadd.f32 %v1803_v53, %v3117_v36 }
 0x442   : > { %1872 = vst [vmem:[%s3123_s13 + $0x170] sm:$0xff] %v1715_v60 }
 0x443   : > { %1873 = vst [vmem:[%s3123_s13 + $0x178] sm:$0xff] %v1804_v1 }
 0x447   : > { %v1717_v3 = vpop.f32.mrf.mxu0  ;;  %v1806_v39 = vpop.f32.mrf.mxu1 }
 0x448   : > { %v1718_v43 = vadd.f32 %v1717_v3, %v3115_v15  ;;  %v1807_v22 = vadd.f32 %v1806_v39, %v3117_v36 }
 0x44a   : > { %1874 = vst [vmem:[%s3123_s13 + $0x180] sm:$0xff] %v1718_v43 }
 0x44b   : > { %1875 = vst [vmem:[%s3123_s13 + $0x188] sm:$0xff] %v1807_v22 }
 0x44f   : > { %v1719_v40 = vpop.f32.mrf.mxu0  ;;  %v1808_v4 = vpop.f32.mrf.mxu1 }
 0x450   : > { %v1720_v7 = vadd.f32 %v1719_v40, %v3115_v15  ;;  %v1809_v9 = vadd.f32 %v1808_v4, %v3117_v36 }
 0x452   : > { %1876 = vst [vmem:[%s3123_s13 + $0x190] sm:$0xff] %v1720_v7 }
 0x453   : > { %1877 = vst [vmem:[%s3123_s13 + $0x198] sm:$0xff] %v1809_v9 }
 0x457   : > { %v1722_v11 = vpop.f32.mrf.mxu0  ;;  %v1811_v13 = vpop.f32.mrf.mxu1 }
 0x458   : > { %v1723_v12 = vadd.f32 %v1722_v11, %v3115_v15  ;;  %v1812_v24 = vadd.f32 %v1811_v13, %v3117_v36 }
 0x45a   : > { %1878 = vst [vmem:[%s3123_s13 + $0x1a0] sm:$0xff] %v1723_v12 }
 0x45b   : > { %1879 = vst [vmem:[%s3123_s13 + $0x1a8] sm:$0xff] %v1812_v24 }
 0x45f   : > { %v1724_v14 = vpop.f32.mrf.mxu0  ;;  %v1813_v16 = vpop.f32.mrf.mxu1 }
 0x460   : > { %v1725_v18 = vadd.f32 %v1724_v14, %v3115_v15  ;;  %v1814_v19 = vadd.f32 %v1813_v16, %v3117_v36 }
 0x462   : > { %1880 = vst [vmem:[%s3123_s13 + $0x1b0] sm:$0xff] %v1725_v18 }
 0x463   : > { %1881 = vst [vmem:[%s3123_s13 + $0x1b8] sm:$0xff] %v1814_v19 }
 0x467   : > { %v1727_v62 = vpop.f32.mrf.mxu0  ;;  %v1816_v21 = vpop.f32.mrf.mxu1 }
 0x468   : > { %v1728_v23 = vadd.f32 %v1727_v62, %v3115_v15  ;;  %v1817_v49 = vadd.f32 %v1816_v21, %v3117_v36 }
 0x46a   : > { %1882 = vst [vmem:[%s3123_s13 + $0x1c0] sm:$0xff] %v1728_v23 }
 0x46b   : > { %1883 = vst [vmem:[%s3123_s13 + $0x1c8] sm:$0xff] %v1817_v49 }
 0x46f   : > { %v1729_v25 = vpop.f32.mrf.mxu0  ;;  %v1818_v55 = vpop.f32.mrf.mxu1 }
 0x470   : > { %v1730_v0 = vadd.f32 %v1729_v25, %v3115_v15  ;;  %v1819_v27 = vadd.f32 %v1818_v55, %v3117_v36 }
 0x472   : > { %1884 = vst [vmem:[%s3123_s13 + $0x1d0] sm:$0xff] %v1730_v0 }
 0x473   : > { %1885 = vst [vmem:[%s3123_s13 + $0x1d8] sm:$0xff] %v1819_v27 }
 0x477   : > { %v1732_v26 = vpop.f32.mrf.mxu0  ;;  %v1821_v54 = vpop.f32.mrf.mxu1 }
 0x478   : > { %v1733_v28 = vadd.f32 %v1732_v26, %v3115_v15  ;;  %v1822_v42 = vadd.f32 %v1821_v54, %v3117_v36 }
 0x47a   : > { %1886 = vst [vmem:[%s3123_s13 + $0x1e0] sm:$0xff] %v1733_v28 }
 0x47b   : > { %1887 = vst [vmem:[%s3123_s13 + $0x1e8] sm:$0xff] %v1822_v42 }
 0x47f   : > { %v1734_v30 = vpop.f32.mrf.mxu0  ;;  %v1823_v8 = vpop.f32.mrf.mxu1 }
 0x480   : > { %v1735_v32 = vadd.f32 %v1734_v30, %v3115_v15  ;;  %v1824_v33 = vadd.f32 %v1823_v8, %v3117_v36 }
 0x482   : > { %1888 = vst [vmem:[%s3123_s13 + $0x1f0] sm:$0xff] %v1735_v32 }
 0x483   : > { %1889 = vst [vmem:[%s3123_s13 + $0x1f8] sm:$0xff] %v1824_v33 }
 0x484   : > { %2511 = shalt.err (!%p2508_p10)
}
 0x485   : > { %s2564_s14 = smov 256   ;;  %s2565_s13 = smov 16  }
 0x486   : > { %2325 = dma.vmem_to_hbm [thread:$0]  (%p2695_p5), %s1905_s25, 8192, %s1907_s30, %s1891_s21, %s2564_s14, %s2564_s14, %s2565_s13  }
 0x487 PF: > { %s1921_s12 = sand.u32 1, %s2542_s17   ;;  %p3326_p12 = scmp.ge.s32.totalorder %s2554_s20, 2 }
 0x488   : > { %s1922_s1 = scalar_lea.sflag [#allocation4], %s1921_s12 }
 0x489   : > { %p2339_p13 = pnand %p3326_p12, %p2661_p6 }
 0x48b   : > { %p2340_p0 = pneg %p2339_p13 }
 0x48d   : > { %2537 = dma.done.wait (%p2340_p0), %s1922_s1, 8192  }
 0x48e   : > { %2539 = vsyncadd (%p2340_p0), %s1922_s1, 4294959104  ;;  %s3327_s20 = sld [smem:[#allocation13_spill]]  ;;  %s3330_s17 = smov %s2546_s18 }
 0x48f   : > { %s3328_s16 = sld [smem:[#allocation12_spill]] }
 0x490   : > { %s3329_s19 = sld [smem:[#allocation14_spill]] }
 0x494   : > { %p25_p3 = scmp.ge.s32.totalorder %s3327_s20, 4  }
 0x495   : > { %s3331_s18 = smov %s3328_s16 }
 0x496   :  { %27 = sbr.rel (!%p25_p3) target bundleno = 9 (0x9), region = 117 }
 0x49b   :  { %1928 = vsyncpa [#allocation3], 1 }
 0x49c   :  { %1930 = vsyncpa [#allocation3 + $0x1], 1 }
 0x49d   :  { %1931 = vsyncpa [#allocation6], 1 }
 0x49e   :  { %1932 = vsyncpa [#allocation4], 1 }
 0x49f   :  { %1934 = vsyncpa [#allocation4 + $0x1], 1 }

// kernel: tpu_custom_call.1
= control target key start
LH: loop header
LB: loop body
LE: loop exit
PB: predicated region body
PF: predicated region fallthrough
CT: control target
= control target key end

     0   :  { %s3299_s0 = inlined_call_operand.hbm [shape: f32[512,256], index: 0, kind: input, shape index: {}]   ;;  %s3300_s1 = inlined_call_operand.hbm [shape: bf16[256,128], index: 1, kind: input, shape index: {}]   ;;  %s3301_s2 = inlined_call_operand.vmem [shape: f32[1,128], index: 2, kind: input, shape index: {}]   ;;  %s3302_s3 = inlined_call_operand.vmem [shape: bf16[128,64], index: 3, kind: input, shape index: {}]   ;;  %s3303_s4 = inlined_call_operand.vmem [shape: f32[1,64], index: 4, kind: input, shape index: {}]   ;;  %s3304_s5 = inlined_call_operand.vmem [shape: bf16[64,64], index: 5, kind: input, shape index: {}]   ;;  %s3305_s6 = inlined_call_operand.vmem [shape: f32[1,64], index: 6, kind: input, shape index: {}]   ;;  %s3306_s7 = inlined_call_operand.vmem [shape: bf16[64,128], index: 7, kind: input, shape index: {}]   ;;  %s3307_s8 = inlined_call_operand.vmem [shape: f32[1,128], index: 8, kind: input, shape index: {}]   ;;  %s3308_s9 = inlined_call_operand.hbm [shape: bf16[128,256], index: 9, kind: input, shape index: {}]   ;;  %s3309_s10 = inlined_call_operand.vmem [shape: f32[1,256], index: 10, kind: input, shape index: {}]   ;;  %s3310_s11 = inlined_call_operand.hbm [shape: f32[512,256], index: 11, kind: output, shape index: {}]  }
   0x1   :  { %3314 = sst [smem:[#allocation15_spill]] %s3300_s1 }
   0x2   :  { %3315 = sst [smem:[#allocation16_spill]] %s3308_s9 }
   0x3   :  { %16 = vsyncpa [#allocation3], 0 }
   0x4   :  { %18 = vsyncpa [#allocation3 + $0x1], 0 }
   0x5   :  { %19 = vsyncpa [#allocation6], 0 }
   0x6   :  { %20 = vsyncpa [#allocation4], 0 }
   0x7   :  { %22 = vsyncpa [#allocation4 + $0x1], 0  ;;  %s2626_s17 = smov 0   ;;  %s2628_s18 = smov 0  }
   0x8   :  { %s2630_s19 = smov 0   ;;  %s2632_s20 = smov 0  }
   0x9 LB: > { %3316 = sst [smem:[#allocation12_spill]] %s2550_s19  ;;  %s2647_s21 = sadd.s32 4294967295, %s2554_s20   ;;  %s2554_s20 = sphi %s2632_s20, %s3327_s20   ;;  %s2550_s19 = sphi %s2630_s19, %s3329_s19   ;;  %s2546_s18 = sphi %s2628_s18, %s3331_s18   ;;  %s2542_s17 = sphi %s2626_s17, %s3330_s17  }
   0xa   : > { %s1999_s22 = sadd.s32 4294967294, %s2554_s20   ;;  %p48_p0 = scmp.ne.s32.totalorder %s2546_s18, %s2542_s17 }
   0xb   : > { %p49_p1 = scmp.eq.s32.totalorder %s2647_s21, 0  ;;  %p282_p2 = scmp.eq.s32.totalorder %s2647_s21, 1 }
   0xc   : > { %p288_p3 = scmp.eq.s32.totalorder %s1999_s22, 1  ;;  %p2000_p5 = scmp.ge.s32.totalorder %s2554_s20, 1 }
   0xd   : > { %p2656_p4 = por %p49_p1, %p48_p0  ;;  %p295_p7 = scmp.lt.s32.totalorder %s2554_s20, 3 }
   0xe   : > { %p2661_p6 = por %p288_p3, %p48_p0  ;;  %s3319_s1 = sld [smem:[#allocation15_spill]] }
   0xf   : > { %p2669_p8 = pnand %p2000_p5, %p295_p7  ;;  %s2556_s29 = smov [#allocation5]  }
  0x10   : > { %s308_s30 = sshll.u32 %s2556_s29, 4  ;;  %s3321_s9 = sld [smem:[#allocation16_spill]]  ;;  %s309_s30 = int_to_ptr.vmem [resolvable:$true] %s308_s30 }
  0x11   : > { %p2327_p9 = pneg %p2669_p8  ;;  %s2557_s15 = smov 64  }
  0x12   : > { %s2558_s16 = smov 4   ;;  %s2559_s22 = smov [#allocation7]  }
  0x13   : > { %p2328_p10 = pnand %p2327_p9, %p49_p1  ;;  %s343_s25 = sshll.u32 %s2559_s22, 4  ;;  %s344_s25 = int_to_ptr.vmem [resolvable:$true] %s343_s25 }
  0x14   : > { %s306_s27 = sshll.u32 %s3319_s1, 4  ;;  %s2560_s26 = smov 128   ;;  %s307_s27 = int_to_ptr.hbm [resolvable:$true] %s306_s27 }
  0x15   : > { %2330 = dma.hbm_to_vmem [thread:$0]  (!%p2328_p10), %s307_s27, 2048, %s309_s30, [#allocation6], %s2557_s15, %s2557_s15, %s2558_s16  }
  0x16   : > { %s341_s14 = sshll.u32 %s3321_s9, 4  ;;  %s2561_s29 = smov 8   ;;  %s342_s14 = int_to_ptr.hbm [resolvable:$true] %s341_s14 }
  0x17   : > { %2333 = dma.hbm_to_vmem [thread:$0]  (!%p2328_p10), %s342_s14, 2048, %s344_s25, [#allocation6], %s2560_s26, %s2560_s26, %s2561_s29  }
  0x18   : > { %s2682_s12 = sadd.s32 1, %s2554_s20   ;;  %s35_s1 = sadd.s32 1, %s2550_s19 }
  0x19   : > { %3322 = sst [smem:[#allocation13_spill]] %s2682_s12  ;;  %s32_s13 = ssub.s32 %s2554_s20, %s2682_s12 }
  0x1a   : > { %p33_p12 = scmp.eq.s32.totalorder %s32_s13, 0  ;;  %p42_p13 = scmp.ne.s32.totalorder %s2550_s19, %s2546_s18 }
  0x1b   : > { %p43_p0 = scmp.eq.s32.totalorder %s2554_s20, 0  ;;  %p2344_p7 = scmp.lt.s32.totalorder %s2554_s20, 2 }
  0x1c   : > { %s2691_s9 = scalar_select %p33_p12, %s2550_s19, %s35_s1  }
  0x1d   : > { %p44_p3 = por %p43_p0, %p42_p13  ;;  %p2695_p5 = por %p282_p2, %p42_p13 }
  0x1e   : > { %3323 = sst [smem:[#allocation14_spill]] %s2691_s9  ;;  %s360_s30 = sand.u32 1, %s2550_s19  }
  0x1f   : > { %s2004_s15 = sshll.u32 %s360_s30, 9  ;;  %s2244_s14 = sshll.u32 %s2554_s20, 9 }
  0x20   : > { %s370_s25 = scalar_lea.hbm %s3299_s0, %s2244_s14  ;;  %s364_s26 = scalar_lea.vmem [#allocation2], %s2004_s15 }
  0x21   : > { %s373_s29 = sshll.u32 %s364_s26, 4  ;;  %s371_s13 = sshll.u32 %s370_s25, 4  ;;  %s374_s29 = int_to_ptr.vmem [resolvable:$true] %s373_s29  ;;  %s372_s13 = int_to_ptr.hbm [resolvable:$true] %s371_s13 }
  0x22   : > { %p2705_p9 = pnand %p2344_p7, %p44_p3  ;;  %s361_s9 = scalar_lea.sflag [#allocation3], %s360_s30 }
  0x23   : > { %s2454_s12 = sshra.s32 %s372_s13, 4  ;;  %s2461_s16 = scalar_lea.hbm %s3299_s0, 1024  ;;  %s2455_s12 = int_to_ptr.hbm [resolvable:$true] %s2454_s12 }
  0x24   : > { %s2456_s19 = scalar_lea.hbm %s2455_s12, 512  ;;  %p2458_p10 = pneg %p2705_p9 }
  0x25   : > { %p2457_p2 = scmp.ne.s32.totalorder %s2455_s12, %s2456_s19  ;;  %p2462_p0 = scmp.lt.s32.totalorder %s2455_s12, %s3299_s0 }
  0x26   : > { %p2463_p3 = scmp.lt.s32.totalorder %s2461_s16, %s2456_s19 }
  0x27   : > { %p2459_p12 = pnand %p2458_p10, %p2457_p2 }
  0x28   : > { %p2464_p7 = por %p2463_p3, %p2462_p0 }
  0x29   : > { %p2460_p13 = pneg %p2459_p12 }
  0x2b   : > { %p2465_p11 = pnand %p2464_p7, %p2460_p13 }
  0x2d   : > { %2468 = shalt.err (!%p2465_p11)
}
  0x2e   : > { %s2562_s30 = smov 256   ;;  %s2563_s26 = smov 16  }
  0x2f   : > { %2337 = dma.hbm_to_vmem [thread:$0]  (!%p2705_p9), %s372_s13, 8192, %s374_s29, %s361_s9, %s2562_s30, %s2562_s30, %s2563_s26  }
  0x30   : > { %385 = sbr.rel (%p2669_p8) target bundleno = 1159 (0x487), region = 64  ;;  %s2722_s14 = sand.u32 (!%p2669_p8), 1, %s2546_s18  }
  0x31   : > { %s2009_s12 = sshll.u32 (!%p2669_p8), %s2722_s14, 9  ;;  %s388_s19 = scalar_lea.sflag (!%p2669_p8), [#allocation3], %s2722_s14 }
  0x32   : > { %s2728_s15 = scalar_lea.vmem (!%p2669_p8), [#allocation2], %s2009_s12 }
  0x35   : > { %2529 = dma.done.wait (%p2656_p4), %s388_s19, 8192  }
  0x36   : > { %2531 = vsyncadd (%p2656_p4), %s388_s19, 4294959104 }
  0x37   : > { %2533 = dma.done.wait (%p49_p1), [#allocation6], 4096  }
  0x38   : > { %2535 = vsyncadd (%p49_p1), [#allocation6], 4294963200  ;;  %v2252_v0 = vld [vmem:[#allocation5 + $0x38] sm:$0xff]  ;;  %v2251_v2 = vld [vmem:[#allocation5 + $0x30] sm:$0xff]  ;;  %vm1139_vm0 = vcmask 523264   ;;  %s3123_s13 = scalar_lea.vmem [#allocation8], %s2009_s12 }
  0x39   : > { %v2260_v1 = vld [vmem:[#allocation5 + $0x78] sm:$0xff]  ;;  %672 = vmatpush.bf16.msra.mxu0 %v2252_v0  ;;  %2295 = vmatpush.bf16.msra.mxu2 %v2252_v0  ;;  %v2259_v3 = vld [vmem:[#allocation5 + $0x70] sm:$0xff]  ;;  %v2250_v4 = vld [vmem:[#allocation5 + $0x28] sm:$0xff]  ;;  %s2294_s12 = sshll.u32 %s2647_s21, 9  ;;  %s1904_s25 = sshll.u32 %s3123_s13, 4  ;;  %s1905_s25 = int_to_ptr.vmem [resolvable:$true] %s1904_s25 }
  0x3a   : > { %761 = vmatpush.bf16.msra.mxu1 %v2260_v1  ;;  %v2258_v5 = vld [vmem:[#allocation5 + $0x68] sm:$0xff]  ;;  %v2249_v6 = vld [vmem:[#allocation5 + $0x20] sm:$0xff]  ;;  %v2248_v8 = vld [vmem:[#allocation5 + $0x18] sm:$0xff]  ;;  %s1903_s22 = scalar_lea.hbm %s3310_s11, %s2294_s12  ;;  %s1891_s21 = scalar_lea.sflag [#allocation4], %s2722_s14 }
  0x3b   : > { %v2257_v7 = vld [vmem:[#allocation5 + $0x60] sm:$0xff]  ;;  %v2256_v9 = vld [vmem:[#allocation5 + $0x58] sm:$0xff]  ;;  %v2247_v10 = vld [vmem:[#allocation5 + $0x10] sm:$0xff]  ;;  %s1906_s30 = sshll.u32 %s1903_s22, 4  ;;  %s2504_s23 = scalar_lea.hbm %s3310_s11, 1024  ;;  %s1907_s30 = int_to_ptr.hbm [resolvable:$true] %s1906_s30 }
  0x3c   : > { %v2255_v11 = vld [vmem:[#allocation5 + $0x50] sm:$0xff]  ;;  %v2246_v12 = vld [vmem:[#allocation5 + $0x8] sm:$0xff]  ;;  %v2245_v14 = vld [vmem:[#allocation5] sm:$0xff] }
  0x3d   : > { %673 = vmatpush.bf16.msra.mxu0 %v2251_v2  ;;  %2296 = vmatpush.bf16.msra.mxu2 %v2251_v2  ;;  %v2254_v13 = vld [vmem:[#allocation5 + $0x48] sm:$0xff]  ;;  %v444_v15 = vld [vmem:[%s2728_s15] sm:$0xff]  ;;  %v446_v16 = vld [vmem:[%s2728_s15 + $0x10] sm:$0xff] }
  0x3e   : > { %762 = vmatpush.bf16.msra.mxu1 %v2259_v3  ;;  %v492_v17 = vld [vmem:[%s2728_s15 + $0x180] sm:$0xff]  ;;  %v494_v18 = vld [vmem:[%s2728_s15 + $0x190] sm:$0xff]  ;;  %v445_v20 = vld [vmem:[%s2728_s15 + $0x8] sm:$0xff]  ;;  %v541_v22 = vpack.c.bf16 %v446_v16, %v444_v15 }
  0x3f   : > { %v2253_v19 = vld [vmem:[#allocation5 + $0x40] sm:$0xff]  ;;  %v447_v21 = vld [vmem:[%s2728_s15 + $0x18] sm:$0xff]  ;;  %v565_v23 = vpack.c.bf16 %v494_v18, %v492_v17  ;;  %v450_v26 = vld [vmem:[%s2728_s15 + $0x30] sm:$0xff] }
  0x40   : > { %v542_v24 = vpack.c.bf16 %v447_v21, %v445_v20  ;;  %v448_v25 = vld [vmem:[%s2728_s15 + $0x20] sm:$0xff]  ;;  %v498_v28 = vld [vmem:[%s2728_s15 + $0x1b0] sm:$0xff]  ;;  %v449_v29 = vld [vmem:[%s2728_s15 + $0x28] sm:$0xff] }
  0x41   : > { %674 = vmatpush.bf16.msra.mxu0 %v2250_v4  ;;  %2297 = vmatpush.bf16.msra.mxu2 %v2250_v4  ;;  %v496_v27 = vld [vmem:[%s2728_s15 + $0x1a0] sm:$0xff]  ;;  %v451_v30 = vld [vmem:[%s2728_s15 + $0x38] sm:$0xff]  ;;  %v543_v31 = vpack.c.bf16 %v450_v26, %v448_v25  ;;  %v454_v35 = vld [vmem:[%s2728_s15 + $0x50] sm:$0xff] }
  0x42   : > { %763 = vmatpush.bf16.msra.mxu1 %v2258_v5  ;;  %v567_v32 = vpack.c.bf16 %v498_v28, %v496_v27  ;;  %v544_v33 = vpack.c.bf16 %v451_v30, %v449_v29  ;;  %v452_v34 = vld [vmem:[%s2728_s15 + $0x40] sm:$0xff]  ;;  %v502_v37 = vld [vmem:[%s2728_s15 + $0x1d0] sm:$0xff]  ;;  %v453_v38 = vld [vmem:[%s2728_s15 + $0x48] sm:$0xff] }
  0x43   : > { %v500_v36 = vld [vmem:[%s2728_s15 + $0x1c0] sm:$0xff]  ;;  %v455_v39 = vld [vmem:[%s2728_s15 + $0x58] sm:$0xff]  ;;  %v545_v40 = vpack.c.bf16 %v454_v35, %v452_v34  ;;  %v458_v45 = vld [vmem:[%s2728_s15 + $0x70] sm:$0xff] }
  0x44   : > { %v569_v41 = vpack.c.bf16 %v502_v37, %v500_v36  ;;  %v546_v42 = vpack.c.bf16 %v455_v39, %v453_v38  ;;  %v2268_v43 = vld [vmem:[%s3302_s3 + $0x38] sm:$0xff]  ;;  %v456_v44 = vld [vmem:[%s2728_s15 + $0x60] sm:$0xff]  ;;  %v506_v47 = vld [vmem:[%s2728_s15 + $0x1f0] sm:$0xff] }
  0x45   : > { %675 = vmatpush.bf16.msra.mxu0 %v2249_v6  ;;  %2298 = vmatpush.bf16.msra.mxu2 %v2249_v6  ;;  %v504_v46 = vld [vmem:[%s2728_s15 + $0x1e0] sm:$0xff]  ;;  %v457_v48 = vld [vmem:[%s2728_s15 + $0x68] sm:$0xff]  ;;  %v459_v49 = vld [vmem:[%s2728_s15 + $0x78] sm:$0xff]  ;;  %v547_v50 = vpack.c.bf16 %v458_v45, %v456_v44 }
  0x46   : > { %764 = vmatpush.bf16.msra.mxu1 %v2257_v7  ;;  %v571_v51 = vpack.c.bf16 %v506_v47, %v504_v46  ;;  %v548_v52 = vpack.c.bf16 %v459_v49, %v457_v48  ;;  %v2267_v53 = vld [vmem:[%s3302_s3 + $0x30] sm:$0xff]  ;;  %v2266_v54 = vld [vmem:[%s3302_s3 + $0x28] sm:$0xff]  ;;  %v460_v55 = vld [vmem:[%s2728_s15 + $0x80] sm:$0xff] }
  0x47   : > { %v462_v56 = vld [vmem:[%s2728_s15 + $0x90] sm:$0xff]  ;;  %v493_v57 = vld [vmem:[%s2728_s15 + $0x188] sm:$0xff]  ;;  %v495_v58 = vld [vmem:[%s2728_s15 + $0x198] sm:$0xff] }
  0x48   : > { %v461_v59 = vld [vmem:[%s2728_s15 + $0x88] sm:$0xff]  ;;  %v463_v60 = vld [vmem:[%s2728_s15 + $0x98] sm:$0xff]  ;;  %v549_v61 = vpack.c.bf16 %v462_v56, %v460_v55  ;;  %v566_v62 = vpack.c.bf16 %v495_v58, %v493_v57  ;;  %v2265_v0 = vld [vmem:[%s3302_s3 + $0x20] sm:$0xff] }
  0x49   : > { %676 = vmatpush.bf16.msra.mxu0 %v2248_v8  ;;  %2299 = vmatpush.bf16.msra.mxu2 %v2248_v8  ;;  %v550_v63 = vpack.c.bf16 %v463_v60, %v461_v59  ;;  %v464_v2 = vld [vmem:[%s2728_s15 + $0xa0] sm:$0xff]  ;;  %v497_v4 = vld [vmem:[%s2728_s15 + $0x1a8] sm:$0xff]  ;;  %v503_v15 = vld [vmem:[%s2728_s15 + $0x1d8] sm:$0xff] }
  0x4a   : > { %765 = vmatpush.bf16.msra.mxu1 %v2256_v9  ;;  %v465_v6 = vld [vmem:[%s2728_s15 + $0xa8] sm:$0xff]  ;;  %v471_v17 = vld [vmem:[%s2728_s15 + $0xd8] sm:$0xff]  ;;  %v2261_v28 = vld [vmem:[%s3302_s3] sm:$0xff] }
  0x4b   : > { %v469_v16 = vld [vmem:[%s2728_s15 + $0xc8] sm:$0xff]  ;;  %v507_v25 = vld [vmem:[%s2728_s15 + $0x1f8] sm:$0xff]  ;;  %v478_v34 = vld [vmem:[%s2728_s15 + $0x110] sm:$0xff] }
  0x4c   : > { %v554_v20 = vpack.c.bf16 %v471_v17, %v469_v16  ;;  %v2262_v21 = vld [vmem:[%s3302_s3 + $0x8] sm:$0xff]  ;;  %v475_v27 = vld [vmem:[%s2728_s15 + $0xf8] sm:$0xff]  ;;  %v480_v49 = vld [vmem:[%s2728_s15 + $0x120] sm:$0xff] }
  0x4d   : > { %677 = vmatpush.bf16.msra.mxu0 %v2247_v10  ;;  %2300 = vmatpush.bf16.msra.mxu2 %v2247_v10  ;;  %v473_v26 = vld [vmem:[%s2728_s15 + $0xe8] sm:$0xff]  ;;  %v479_v36 = vld [vmem:[%s2728_s15 + $0x118] sm:$0xff] }
  0x4e   : > { %766 = vmatpush.bf16.msra.mxu1 %v2255_v11  ;;  %v477_v35 = vld [vmem:[%s2728_s15 + $0x108] sm:$0xff] }
  0x4f   : > { %v558_v39 = vpack.c.bf16 %v479_v36, %v477_v35  ;;  %v2271_v36 = vld [vmem:[%s3304_s5 + $0x10] sm:$0xff] }
  0x51   : > { %678 = vmatpush.bf16.msra.mxu0 %v2246_v12  ;;  %2301 = vmatpush.bf16.msra.mxu2 %v2246_v12  ;;  %v468_v12 = vld [vmem:[%s2728_s15 + $0xc0] sm:$0xff] }
  0x52   : > { %767 = vmatpush.bf16.msra.mxu1 %v2254_v13 }
  0x55   : > { %679 = vmatpush.bf16.msra.mxu0 %v2245_v14  ;;  %2302 = vmatpush.bf16.msra.mxu2 %v2245_v14  ;;  %v501_v14 = vld [vmem:[%s2728_s15 + $0x1c8] sm:$0xff] }
  0x56   : > { %768 = vmatpush.bf16.msra.mxu1 %v2253_v19 }
  0x58   : > { %680 = vmatmul.bf16.vlgmr.msra.gmra.mxu0 %v541_v22  ;;  %740 = vmatmul.bf16.vlgmr.msra.gmra.mxu2 %v565_v23  ;;  %v472_v22 = vld [vmem:[%s2728_s15 + $0xe0] sm:$0xff]  ;;  %v474_v23 = vld [vmem:[%s2728_s15 + $0xf0] sm:$0xff] }
  0x59   : > { %2303 = vmatpush.bf16.msrb.mxu2 %v2260_v1  ;;  %769 = vmatmul.bf16.vlgmr.msra.gmra.mxu1 %v542_v24  ;;  %v2264_v1 = vld [vmem:[%s3302_s3 + $0x18] sm:$0xff]  ;;  %v505_v24 = vld [vmem:[%s2728_s15 + $0x1e8] sm:$0xff]  ;;  %v555_v29 = vpack.c.bf16 %v474_v23, %v472_v22  ;;  %v488_v23 = vld [vmem:[%s2728_s15 + $0x160] sm:$0xff] }
  0x5a   : > { %v572_v30 = vpack.c.bf16 %v507_v25, %v505_v24  ;;  %v490_v24 = vld [vmem:[%s2728_s15 + $0x170] sm:$0xff] }
  0x5d   : > { %2304 = vmatpush.bf16.msrb.mxu2 %v2259_v3  ;;  %v466_v3 = vld [vmem:[%s2728_s15 + $0xb0] sm:$0xff] }
  0x5e   : > { %v551_v8 = vpack.c.bf16 %v466_v3, %v464_v2 }
  0x61   : > { %2305 = vmatpush.bf16.msrb.mxu2 %v2258_v5  ;;  %v499_v5 = vld [vmem:[%s2728_s15 + $0x1b8] sm:$0xff] }
  0x65   : > { %2306 = vmatpush.bf16.msrb.mxu2 %v2257_v7  ;;  %v467_v7 = vld [vmem:[%s2728_s15 + $0xb8] sm:$0xff] }
  0x66   : > { %v552_v10 = vpack.c.bf16 %v467_v7, %v465_v6 }
  0x68   : > { %685 = vmatmul.bf16.gmra.mxu0 %v543_v31  ;;  %745 = vmatmul.bf16.gmra.mxu2 %v567_v32  ;;  %v556_v31 = vpack.c.bf16 %v475_v27, %v473_v26  ;;  %v2272_v32 = vld [vmem:[%s3304_s5 + $0x18] sm:$0xff]  ;;  %v489_v27 = vld [vmem:[%s2728_s15 + $0x168] sm:$0xff] }
  0x69   : > { %2307 = vmatpush.bf16.msrb.mxu2 %v2256_v9  ;;  %774 = vmatmul.bf16.gmra.mxu1 %v544_v33  ;;  %v568_v9 = vpack.c.bf16 %v499_v5, %v497_v4  ;;  %v476_v33 = vld [vmem:[%s2728_s15 + $0x100] sm:$0xff]  ;;  %v486_v5 = vld [vmem:[%s2728_s15 + $0x150] sm:$0xff] }
  0x6a   : > { %2311 = vmatpush.bf16.msra.mxu3 %v2272_v32  ;;  %v557_v37 = vpack.c.bf16 %v478_v34, %v476_v33  ;;  %v484_v4 = vld [vmem:[%s2728_s15 + $0x140] sm:$0xff] }
  0x6d   : > { %2308 = vmatpush.bf16.msrb.mxu2 %v2255_v11  ;;  %v2263_v11 = vld [vmem:[%s3302_s3 + $0x10] sm:$0xff] }
  0x6e   : > { %2312 = vmatpush.bf16.msra.mxu3 %v2271_v36 }
  0x71   : > { %2309 = vmatpush.bf16.msrb.mxu2 %v2254_v13  ;;  %v470_v13 = vld [vmem:[%s2728_s15 + $0xd0] sm:$0xff] }
  0x72   : > { %v553_v18 = vpack.c.bf16 %v470_v13, %v468_v12  ;;  %v561_v12 = vpack.c.bf16 %v486_v5, %v484_v4 }
  0x75   : > { %2310 = vmatpush.bf16.msrb.mxu2 %v2253_v19  ;;  %v570_v19 = vpack.c.bf16 %v503_v15, %v501_v14 }
  0x78   : > { %690 = vmatmul.bf16.gmra.mxu0 %v545_v40  ;;  %750 = vmatmul.bf16.gmra.mxu2 %v569_v41  ;;  %v2820_v40 = vld [vmem:[%s3301_s2] ss:$0 sm:$0xff] }
  0x79   : > { %779 = vmatmul.bf16.gmra.mxu1 %v546_v42  ;;  %966 = vmatpush.bf16.msra.mxu2 %v2268_v43 }
  0x7d   : > { %967 = vmatpush.bf16.msra.mxu2 %v2267_v53  ;;  %v481_v53 = vld [vmem:[%s2728_s15 + $0x128] sm:$0xff] }
  0x81   : > { %968 = vmatpush.bf16.msra.mxu2 %v2266_v54  ;;  %v483_v54 = vld [vmem:[%s2728_s15 + $0x138] sm:$0xff] }
  0x82   : > { %v560_v59 = vpack.c.bf16 %v483_v54, %v481_v53 }
  0x85   : > { %969 = vmatpush.bf16.msra.mxu2 %v2265_v0 }
  0x88   : > { %695 = vmatmul.bf16.gmra.mxu0 %v547_v50  ;;  %755 = vmatmul.bf16.gmra.mxu2 %v571_v51  ;;  %v482_v50 = vld [vmem:[%s2728_s15 + $0x130] sm:$0xff] }
  0x89   : > { %784 = vmatmul.bf16.gmra.mxu1 %v548_v52  ;;  %970 = vmatpush.bf16.msra.mxu2 %v2264_v1  ;;  %v559_v57 = vpack.c.bf16 %v482_v50, %v480_v49 }
  0x8d   : > { %971 = vmatpush.bf16.msra.mxu2 %v2263_v11 }
  0x91   : > { %972 = vmatpush.bf16.msra.mxu2 %v2262_v21 }
  0x95   : > { %973 = vmatpush.bf16.msra.mxu2 %v2261_v28  ;;  %v491_v28 = vld [vmem:[%s2728_s15 + $0x178] sm:$0xff] }
  0x96   : > { %v564_v33 = vpack.c.bf16 %v491_v28, %v489_v27 }
  0x98   : > { %700 = vmatmul.bf16.gmra.mxu0 %v549_v61  ;;  %829 = vmatmul.bf16.vlgmr.msrb.gmra.mxu2 %v566_v62 }
  0x99   : > { %789 = vmatmul.bf16.gmra.mxu1 %v550_v63  ;;  %1192 = vmatpush.bf16.msrb.mxu2 %v2272_v32 }
  0x9d   : > { %1193 = vmatpush.bf16.msrb.mxu2 %v2271_v36  ;;  %v2270_v36 = vld [vmem:[%s3304_s5 + $0x8] sm:$0xff] }
  0x9e   : > { %2313 = vmatpush.bf16.msra.mxu3 %v2270_v36 }
  0xa1   : > { %1194 = vmatpush.bf16.msrb.mxu2 %v2270_v36 }
  0xa8   : > { %705 = vmatmul.bf16.gmra.mxu0 %v551_v8  ;;  %834 = vmatmul.bf16.gmra.mxu2 %v568_v9  ;;  %v485_v8 = vld [vmem:[%s2728_s15 + $0x148] sm:$0xff]  ;;  %v487_v9 = vld [vmem:[%s2728_s15 + $0x158] sm:$0xff]  ;;  %s2498_s15 = sshra.s32 %s1907_s30, 4  ;;  %s2499_s15 = int_to_ptr.hbm [resolvable:$true] %s2498_s15 }
  0xa9   : > { %794 = vmatmul.bf16.gmra.mxu1 %v552_v10  ;;  %v562_v14 = vpack.c.bf16 %v487_v9, %v485_v8  ;;  %s2500_s26 = scalar_lea.hbm %s2499_s15, 512  ;;  %p2505_p11 = scmp.lt.s32.totalorder %s2499_s15, %s3310_s11 }
  0xaa   : > { %p2501_p1 = scmp.ne.s32.totalorder %s2499_s15, %s2500_s26  ;;  %p2506_p9 = scmp.lt.s32.totalorder %s2504_s23, %s2500_s26 }
  0xac   : > { %p2502_p4 = pnand %p2501_p1, %p2695_p5  ;;  %p2507_p2 = por %p2506_p9, %p2505_p11 }
  0xae   : > { %p2503_p8 = pneg %p2502_p4 }
  0xb0   : > { %p2508_p10 = pnand %p2507_p2, %p2503_p8 }
  0xb8   : > { %710 = vmatmul.bf16.gmra.mxu0 %v553_v18  ;;  %839 = vmatmul.bf16.gmra.mxu2 %v570_v19 }
  0xb9   : > { %799 = vmatmul.bf16.gmra.mxu1 %v554_v20 }
  0xc8   : > { %715 = vmatmul.bf16.gmra.mxu0 %v555_v29  ;;  %844 = vmatmul.bf16.gmra.mxu2 %v572_v30 }
  0xc9   : > { %804 = vmatmul.bf16.gmra.mxu1 %v556_v31  ;;  %v563_v31 = vpack.c.bf16 %v490_v24, %v488_v23 }
  0xd5   : > { %v681_v38 = vpop.f32.mrf.mxu0 }
  0xd6   : > { %v770_v41 = vpop.f32.mrf.mxu1  ;;  %v682_v42 = vadd.f32 %v2820_v40, %v681_v38 }
  0xd8   : > { %720 = vmatmul.bf16.gmra.mxu0 %v557_v37  ;;  %v771_v45 = vadd.f32 %v770_v41, %v682_v42 }
  0xd9   : > { %809 = vmatmul.bf16.gmra.mxu1 %v558_v39 }
  0xda   : > { %v850_v51 = vmax.f32 %v771_v45, 0.0 }
  0xdb   : > { %v2823_v43 = vpop.f32.mrf.mxu2 }
  0xdd   : > { %v683_v44 = vpop.f32.mrf.mxu0 }
  0xde   : > { %v684_v46 = vadd.f32 %v2820_v40, %v683_v44  ;;  %v772_v47 = vpop.f32.mrf.mxu1 }
  0xe0   : > { %v773_v48 = vadd.f32 %v772_v47, %v684_v46 }
  0xe2   : > { %v851_v52 = vmax.f32 %v773_v48, 0.0 }
  0xe3   : > { %v2830_v55 = vpop.f32.mrf.mxu2 }
  0xe4   : > { %v882_v56 = vpack.c.bf16 %v851_v52, %v850_v51  ;;  %v742_v51 = vadd.f32 %v2820_v40, %v2823_v43 }
  0xe5   : > { %v686_v58 = vpop.f32.mrf.mxu0 }
  0xe6   : > { %v775_v60 = vpop.f32.mrf.mxu1  ;;  %974 = vmatmul.bf16.vlgmr.msra.gmra.mxu2 %v882_v56  ;;  %v687_v61 = vadd.f32 %v2820_v40, %v686_v58 }
  0xe8   : > { %725 = vmatmul.bf16.gmra.mxu0 %v559_v57  ;;  %v776_v0 = vadd.f32 %v775_v60, %v687_v61 }
  0xe9   : > { %814 = vmatmul.bf16.gmra.mxu1 %v560_v59 }
  0xea   : > { %v852_v6 = vmax.f32 %v776_v0, 0.0 }
  0xeb   : > { %v2833_v62 = vpop.f32.mrf.mxu2 }
  0xec   : > { %v747_v43 = vadd.f32 %v2820_v40, %v2833_v62 }
  0xed   : > { %v688_v63 = vpop.f32.mrf.mxu0 }
  0xee   : > { %v689_v1 = vadd.f32 %v2820_v40, %v688_v63  ;;  %v777_v2 = vpop.f32.mrf.mxu1 }
  0xf0   : > { %v778_v3 = vadd.f32 %v777_v2, %v689_v1 }
  0xf2   : > { %v853_v7 = vmax.f32 %v778_v3, 0.0 }
  0xf3   : > { %v2840_v10 = vpop.f32.mrf.mxu2 }
  0xf4   : > { %v883_v11 = vpack.c.bf16 %v853_v7, %v852_v6 }
  0xf5   : > { %v691_v13 = vpop.f32.mrf.mxu0 }
  0xf6   : > { %v780_v15 = vpop.f32.mrf.mxu1  ;;  %979 = vmatmul.bf16.gmra.mxu2 %v883_v11  ;;  %v692_v16 = vadd.f32 %v2820_v40, %v691_v13 }
  0xf8   : > { %730 = vmatmul.bf16.gmra.mxu0 %v561_v12  ;;  %v781_v19 = vadd.f32 %v780_v15, %v692_v16 }
  0xf9   : > { %819 = vmatmul.bf16.gmra.mxu1 %v562_v14 }
  0xfa   : > { %v854_v25 = vmax.f32 %v781_v19, 0.0 }
  0xfb   : > { %v2843_v17 = vpop.f32.mrf.mxu2 }
  0xfc   : > { %v752_v62 = vadd.f32 %v2820_v40, %v2843_v17 }
  0xfd   : > { %v693_v18 = vpop.f32.mrf.mxu0 }
  0xfe   : > { %v694_v20 = vadd.f32 %v2820_v40, %v693_v18  ;;  %v782_v21 = vpop.f32.mrf.mxu1 }
 0x100   : > { %v783_v22 = vadd.f32 %v782_v21, %v694_v20 }
 0x102   : > { %v855_v26 = vmax.f32 %v783_v22, 0.0 }
 0x103   : > { %v2850_v29 = vpop.f32.mrf.mxu2 }
 0x104   : > { %v884_v30 = vpack.c.bf16 %v855_v26, %v854_v25 }
 0x105   : > { %v696_v32 = vpop.f32.mrf.mxu0 }
 0x106   : > { %v785_v34 = vpop.f32.mrf.mxu1  ;;  %984 = vmatmul.bf16.gmra.mxu2 %v884_v30  ;;  %v697_v35 = vadd.f32 %v2820_v40, %v696_v32 }
 0x108   : > { %735 = vmatmul.bf16.gmra.mxu0 %v563_v31  ;;  %v786_v39 = vadd.f32 %v785_v34, %v697_v35 }
 0x109   : > { %824 = vmatmul.bf16.gmra.mxu1 %v564_v33 }
 0x10a   : > { %v856_v45 = vmax.f32 %v786_v39, 0.0 }
 0x10b   : > { %v2856_v37 = vpop.f32.mrf.mxu2 }
 0x10c   : > { %v757_v17 = vadd.f32 %v2820_v40, %v2856_v37 }
 0x10d   : > { %v698_v38 = vpop.f32.mrf.mxu0 }
 0x10e   : > { %v699_v41 = vadd.f32 %v2820_v40, %v698_v38  ;;  %v787_v42 = vpop.f32.mrf.mxu1 }
 0x110   : > { %v788_v44 = vadd.f32 %v787_v42, %v699_v41 }
 0x112   : > { %v857_v46 = vmax.f32 %v788_v44, 0.0 }
 0x113   : > { %v2859_v47 = vpop.f32.mrf.mxu2 }
 0x114   : > { %v885_v48 = vpack.c.bf16 %v857_v46, %v856_v45 }
 0x115   : > { %v701_v49 = vpop.f32.mrf.mxu0 }
 0x116   : > { %v790_v50 = vpop.f32.mrf.mxu1  ;;  %989 = vmatmul.bf16.gmra.mxu2 %v885_v48  ;;  %v702_v52 = vadd.f32 %v2820_v40, %v701_v49 }
 0x118   : > { %v791_v57 = vadd.f32 %v790_v50, %v702_v52 }
 0x11a   : > { %v858_v61 = vmax.f32 %v791_v57, 0.0 }
 0x11b   : > { %v830_v53 = vpop.f32.mrf.mxu2 }
 0x11c   : > { %v2864_v54 = vadd.f32 %v830_v53, %v742_v51 }
 0x11d   : > { %v703_v56 = vpop.f32.mrf.mxu0 }
 0x11e   : > { %v704_v58 = vadd.f32 %v2820_v40, %v703_v56  ;;  %v792_v59 = vpop.f32.mrf.mxu1 }
 0x120   : > { %v793_v60 = vadd.f32 %v792_v59, %v704_v58 }
 0x122   : > { %v859_v63 = vmax.f32 %v793_v60, 0.0 }
 0x123   : > { %v2867_v0 = vpop.f32.mrf.mxu2 }
 0x124   : > { %v886_v1 = vpack.c.bf16 %v859_v63, %v858_v61 }
 0x125   : > { %v706_v2 = vpop.f32.mrf.mxu0 }
 0x126   : > { %v795_v3 = vpop.f32.mrf.mxu1  ;;  %994 = vmatmul.bf16.gmra.mxu2 %v886_v1  ;;  %v707_v4 = vadd.f32 %v2820_v40, %v706_v2 }
 0x128   : > { %v796_v8 = vadd.f32 %v795_v3, %v707_v4 }
 0x12a   : > { %v860_v13 = vmax.f32 %v796_v8, 0.0 }
 0x12b   : > { %v835_v5 = vpop.f32.mrf.mxu2 }
 0x12c   : > { %v2872_v6 = vadd.f32 %v835_v5, %v747_v43  ;;  %v2902_v5 = vld [vmem:[%s3303_s4] ss:$0 sm:$0xff] }
 0x12d   : > { %v708_v7 = vpop.f32.mrf.mxu0 }
 0x12e   : > { %v709_v9 = vadd.f32 %v2820_v40, %v708_v7  ;;  %v797_v11 = vpop.f32.mrf.mxu1 }
 0x130   : > { %v798_v12 = vadd.f32 %v797_v11, %v709_v9 }
 0x132   : > { %v861_v14 = vmax.f32 %v798_v12, 0.0 }
 0x133   : > { %v2875_v15 = vpop.f32.mrf.mxu2 }
 0x134   : > { %v887_v16 = vpack.c.bf16 %v861_v14, %v860_v13 }
 0x135   : > { %v711_v18 = vpop.f32.mrf.mxu0 }
 0x136   : > { %v800_v19 = vpop.f32.mrf.mxu1  ;;  %999 = vmatmul.bf16.gmra.mxu2 %v887_v16  ;;  %v712_v20 = vadd.f32 %v2820_v40, %v711_v18 }
 0x138   : > { %v801_v24 = vadd.f32 %v800_v19, %v712_v20 }
 0x13a   : > { %v862_v28 = vmax.f32 %v801_v24, 0.0 }
 0x13b   : > { %v840_v21 = vpop.f32.mrf.mxu2 }
 0x13c   : > { %v2880_v22 = vadd.f32 %v840_v21, %v752_v62 }
 0x13d   : > { %v713_v23 = vpop.f32.mrf.mxu0 }
 0x13e   : > { %v714_v25 = vadd.f32 %v2820_v40, %v713_v23  ;;  %v802_v26 = vpop.f32.mrf.mxu1 }
 0x140   : > { %v803_v27 = vadd.f32 %v802_v26, %v714_v25 }
 0x142   : > { %v863_v30 = vmax.f32 %v803_v27, 0.0 }
 0x143   : > { %v2883_v31 = vpop.f32.mrf.mxu2 }
 0x144   : > { %v888_v32 = vpack.c.bf16 %v863_v30, %v862_v28 }
 0x145   : > { %v716_v33 = vpop.f32.mrf.mxu0 }
 0x146   : > { %v805_v34 = vpop.f32.mrf.mxu1  ;;  %1004 = vmatmul.bf16.gmra.mxu2 %v888_v32  ;;  %v717_v35 = vadd.f32 %v2820_v40, %v716_v33 }
 0x148   : > { %v806_v42 = vadd.f32 %v805_v34, %v717_v35 }
 0x14a   : > { %v864_v48 = vmax.f32 %v806_v42, 0.0 }
 0x14b   : > { %v845_v38 = vpop.f32.mrf.mxu2 }
 0x14c   : > { %v2891_v39 = vadd.f32 %v845_v38, %v757_v17 }
 0x14d   : > { %v718_v41 = vpop.f32.mrf.mxu0 }
 0x14e   : > { %v719_v44 = vadd.f32 %v2820_v40, %v718_v41  ;;  %v807_v45 = vpop.f32.mrf.mxu1 }
 0x150   : > { %v808_v46 = vadd.f32 %v807_v45, %v719_v44 }
 0x152   : > { %v865_v49 = vmax.f32 %v808_v46, 0.0  ;;  %v2269_v46 = vld [vmem:[%s3304_s5] sm:$0xff] }
 0x153   : > { %v2896_v60 = vpop.f32.mrf.mxu2  ;;  %2314 = vmatpush.bf16.msra.mxu3 %v2269_v46  ;;  %1195 = vmatpush.bf16.msrb.mxu2 %v2269_v46 }
 0x154   : > { %v889_v37 = vpack.c.bf16 %v865_v49, %v864_v48 }
 0x155   : > { %v721_v50 = vpop.f32.mrf.mxu0 }
 0x156   : > { %v810_v51 = vpop.f32.mrf.mxu1  ;;  %1009 = vmatmul.bf16.gmra.mxu2 %v889_v37  ;;  %v722_v52 = vadd.f32 %v2820_v40, %v721_v50  ;;  %v2276_v50 = vld [vmem:[%s3306_s7 + $0x18] sm:$0xff] }
 0x157   : > { %1413 = vmatpush.bf16.msrb.mxu3 %v2276_v50 }
 0x158   : > { %v811_v56 = vadd.f32 %v810_v51, %v722_v52 }
 0x15a   : > { %v866_v61 = vmax.f32 %v811_v56, 0.0 }
 0x15d   : > { %v723_v53 = vpop.f32.mrf.mxu0 }
 0x15e   : > { %v724_v57 = vadd.f32 %v2820_v40, %v723_v53  ;;  %v812_v58 = vpop.f32.mrf.mxu1 }
 0x160   : > { %v813_v59 = vadd.f32 %v812_v58, %v724_v57 }
 0x162   : > { %v867_v63 = vmax.f32 %v813_v59, 0.0 }
 0x164   : > { %v890_v1 = vpack.c.bf16 %v867_v63, %v866_v61 }
 0x165   : > { %v726_v2 = vpop.f32.mrf.mxu0 }
 0x166   : > { %v815_v3 = vpop.f32.mrf.mxu1  ;;  %1014 = vmatmul.bf16.gmra.mxu2 %v890_v1  ;;  %v727_v4 = vadd.f32 %v2820_v40, %v726_v2 }
 0x168   : > { %v816_v8 = vadd.f32 %v815_v3, %v727_v4 }
 0x169   : > { %v975_v43 = vpop.f32.mrf.mxu2 }
 0x16a   : > { %v976_v12 = vadd.f32 %v2902_v5, %v975_v43  ;;  %v868_v16 = vmax.f32 %v816_v8, 0.0 }
 0x16c   : > { %v1055_v62 = vmax.f32 %v976_v12, 0.0 }
 0x16d   : > { %v728_v7 = vpop.f32.mrf.mxu0 }
 0x16e   : > { %v729_v9 = vadd.f32 %v2820_v40, %v728_v7  ;;  %v817_v11 = vpop.f32.mrf.mxu1 }
 0x170   : > { %v818_v13 = vadd.f32 %v817_v11, %v729_v9  ;;  %v744_v11 = vadd.f32 %v2820_v40, %v2830_v55  ;;  %v749_v55 = vadd.f32 %v2820_v40, %v2840_v10  ;;  %v754_v10 = vadd.f32 %v2820_v40, %v2850_v29 }
 0x171   : > { %v977_v14 = vpop.f32.mrf.mxu2 }
 0x172   : > { %v869_v18 = vmax.f32 %v818_v13, 0.0  ;;  %v978_v19 = vadd.f32 %v2902_v5, %v977_v14  ;;  %v833_v12 = vadd.f32 %v2867_v0, %v744_v11  ;;  %v838_v0 = vadd.f32 %v2875_v15, %v749_v55 }
 0x173   : > { %v843_v15 = vadd.f32 %v2883_v31, %v754_v10  ;;  %v2231_v10 = vld [vmem:[#allocation7 + $0x70] sm:$0xf] }
 0x174   : > { %v1056_v20 = vmax.f32 %v978_v19, 0.0  ;;  %v891_v21 = vpack.c.bf16 %v869_v18, %v868_v16  ;;  %v875_v13 = vmax.f32 %v833_v12, 0.0  ;;  %v874_v18 = vmax.f32 %v2864_v54, 0.0 }
 0x175   : > { %v731_v23 = vpop.f32.mrf.mxu0 }
 0x176   : > { %v2907_v24 = vpack.c.bf16 %v1056_v20, %v1055_v62  ;;  %v820_v25 = vpop.f32.mrf.mxu1  ;;  %1019 = vmatmul.bf16.gmra.mxu2 %v891_v21  ;;  %v732_v27 = vadd.f32 %v2820_v40, %v731_v23  ;;  %v894_v21 = vpack.c.bf16 %v875_v13, %v874_v18 }
 0x178   : > { %v821_v30 = vadd.f32 %v820_v25, %v732_v27 }
 0x179   : > { %v980_v26 = vpop.f32.mrf.mxu2 }
 0x17a   : > { %v981_v34 = vadd.f32 %v2902_v5, %v980_v26  ;;  %v870_v36 = vmax.f32 %v821_v30, 0.0  ;;  %v877_v26 = vmax.f32 %v838_v0, 0.0 }
 0x17c   : > { %v1057_v42 = vmax.f32 %v981_v34, 0.0 }
 0x17d   : > { %v733_v28 = vpop.f32.mrf.mxu0 }
 0x17e   : > { %v734_v32 = vadd.f32 %v2820_v40, %v733_v28  ;;  %v822_v33 = vpop.f32.mrf.mxu1  ;;  %v876_v28 = vmax.f32 %v2872_v6, 0.0  ;;  %v879_v6 = vmax.f32 %v843_v15, 0.0  ;;  %v2292_v15 = vld [vmem:[#allocation7 + $0x74] sm:$0xf0] }
 0x180   : > { %v823_v17 = vadd.f32 %v822_v33, %v734_v32  ;;  %v895_v34 = vpack.c.bf16 %v877_v26, %v876_v28 }
 0x181   : > { %v982_v35 = vpop.f32.mrf.mxu2 }
 0x182   : > { %v871_v38 = vmax.f32 %v823_v17, 0.0  ;;  %v983_v41 = vadd.f32 %v2902_v5, %v982_v35 }
 0x184   : > { %v1058_v44 = vmax.f32 %v983_v41, 0.0  ;;  %v892_v45 = vpack.c.bf16 %v871_v38, %v870_v36  ;;  %v2275_v36 = vld [vmem:[%s3306_s7 + $0x10] sm:$0xff] }
 0x185   : > { %v736_v48 = vpop.f32.mrf.mxu0  ;;  %1414 = vmatpush.bf16.msrb.mxu3 %v2275_v36  ;;  %v2232_v36 = vor.u32 %v2292_v15, %v2231_v10 }
 0x186   : > { %v2916_v49 = vpack.c.bf16 %v1058_v44, %v1057_v42  ;;  %v825_v37 = vpop.f32.mrf.mxu1  ;;  %1024 = vmatmul.bf16.gmra.mxu2 %v892_v45  ;;  %v737_v52 = vadd.f32 %v2820_v40, %v736_v48  ;;  %v878_v42 = vmax.f32 %v2880_v22, 0.0  ;;  %v880_v22 = vmax.f32 %v2891_v39, 0.0 }
 0x187   : > { %1648 = vmatpush.bf16.msrb.mxu0 %v2232_v36 }
 0x188   : > { %v826_v56 = vadd.f32 %v825_v37, %v737_v52  ;;  %v896_v48 = vpack.c.bf16 %v879_v6, %v878_v42  ;;  %v759_v37 = vadd.f32 %v2820_v40, %v2859_v47  ;;  %v2291_v6 = vld [vmem:[#allocation7 + $0x74] sm:$0xf] }
 0x189   : > { %v985_v51 = vpop.f32.mrf.mxu2 }
 0x18a   : > { %v986_v59 = vadd.f32 %v2902_v5, %v985_v51  ;;  %v872_v1 = vmax.f32 %v826_v56, 0.0  ;;  %v848_v50 = vadd.f32 %v2896_v60, %v759_v37 }
 0x18c   : > { %v1059_v43 = vmax.f32 %v986_v59, 0.0  ;;  %v881_v51 = vmax.f32 %v848_v50, 0.0 }
 0x18d   : > { %v738_v53 = vpop.f32.mrf.mxu0 }
 0x18e   : > { %v739_v57 = vadd.f32 %v2820_v40, %v738_v53  ;;  %v827_v58 = vpop.f32.mrf.mxu1  ;;  %v897_v59 = vpack.c.bf16 %v881_v51, %v880_v22 }
 0x190   : > { %v828_v61 = vadd.f32 %v827_v58, %v739_v57 }
 0x191   : > { %v987_v63 = vpop.f32.mrf.mxu2 }
 0x192   : > { %v873_v2 = vmax.f32 %v828_v61, 0.0  ;;  %v988_v3 = vadd.f32 %v2902_v5, %v987_v63 }
 0x194   : > { %v1060_v4 = vmax.f32 %v988_v3, 0.0  ;;  %v893_v7 = vpack.c.bf16 %v873_v2, %v872_v1 }
 0x196   : > { %v2925_v8 = vpack.c.bf16 %v1060_v4, %v1059_v43  ;;  %1029 = vmatmul.bf16.gmra.mxu2 %v893_v7  ;;  %v2274_v43 = vld [vmem:[%s3306_s7 + $0x8] sm:$0xff] }
 0x197   : > { %1415 = vmatpush.bf16.msrb.mxu3 %v2274_v43  ;;  %v2223_v43 = vld [vmem:[#allocation7 + $0x60] sm:$0xf] }
 0x199   : > { %v990_v9 = vpop.f32.mrf.mxu2 }
 0x19a   : > { %v991_v14 = vadd.f32 %v2902_v5, %v990_v9 }
 0x19c   : > { %v1061_v62 = vmax.f32 %v991_v14, 0.0 }
 0x1a1   : > { %v992_v16 = vpop.f32.mrf.mxu2 }
 0x1a2   : > { %v993_v19 = vadd.f32 %v2902_v5, %v992_v16 }
 0x1a4   : > { %v1062_v20 = vmax.f32 %v993_v19, 0.0 }
 0x1a6   : > { %1034 = vmatmul.bf16.gmra.mxu2 %v894_v21  ;;  %v1090_v23 = vpack.c.bf16 %v1062_v20, %v1061_v62 }
 0x1a8   : > { %2128 = vmatmul.msk.bf16.vlgmr.msra.gmra.mxu3 %vm1139_vm0, %v1090_v23 }
 0x1a9   : > { %v995_v25 = vpop.f32.mrf.mxu2 }
 0x1aa   : > { %v996_v27 = vadd.f32 %v2902_v5, %v995_v25 }
 0x1ac   : > { %v1063_v32 = vmax.f32 %v996_v27, 0.0 }
 0x1b1   : > { %v997_v54 = vpop.f32.mrf.mxu2 }
 0x1b2   : > { %v998_v30 = vadd.f32 %v2902_v5, %v997_v54 }
 0x1b4   : > { %v1064_v33 = vmax.f32 %v998_v30, 0.0 }
 0x1b6   : > { %1039 = vmatmul.bf16.gmra.mxu2 %v895_v34  ;;  %v1091_v17 = vpack.c.bf16 %v1064_v33, %v1063_v32  ;;  %v2273_v34 = vld [vmem:[%s3306_s7] sm:$0xff] }
 0x1b7   : > { %1416 = vmatpush.bf16.msrb.mxu3 %v2273_v34 }
 0x1b8   : > { %2129 = vmatmul.msk.bf16.gmra.mxu3 %vm1139_vm0, %v1091_v17 }
 0x1b9   : > { %v1000_v35 = vpop.f32.mrf.mxu2 }
 0x1ba   : > { %v1001_v38 = vadd.f32 %v2902_v5, %v1000_v35 }
 0x1bc   : > { %v1065_v45 = vmax.f32 %v1001_v38, 0.0  ;;  %v2233_v38 = vld [vmem:[#allocation7 + $0x78] sm:$0xf0] }
 0x1bd   : > { %v2236_v42 = vor.u32 %v2291_v6, %v2233_v38 }
 0x1bf   : > { %1737 = vmatpush.bf16.msrb.mxu1 %v2236_v42 }
 0x1c1   : > { %v1002_v41 = vpop.f32.mrf.mxu2 }
 0x1c2   : > { %v1003_v44 = vadd.f32 %v2902_v5, %v1002_v41  ;;  %v2988_v41 = vld [vmem:[%s3305_s6] ss:$0 sm:$0xff] }
 0x1c4   : > { %v1066_v46 = vmax.f32 %v1003_v44, 0.0 }
 0x1c6   : > { %1044 = vmatmul.bf16.gmra.mxu2 %v896_v48  ;;  %v1092_v29 = vpack.c.bf16 %v1066_v46, %v1065_v45 }
 0x1c8   : > { %2130 = vmatmul.msk.bf16.gmra.mxu3 %vm1139_vm0, %v1092_v29 }
 0x1c9   : > { %v1005_v31 = vpop.f32.mrf.mxu2 }
 0x1ca   : > { %v1006_v52 = vadd.f32 %v2902_v5, %v1005_v31 }
 0x1cc   : > { %v1067_v57 = vmax.f32 %v1006_v52, 0.0 }
 0x1d1   : > { %v1007_v53 = vpop.f32.mrf.mxu2 }
 0x1d2   : > { %v1008_v56 = vadd.f32 %v2902_v5, %v1007_v53 }
 0x1d4   : > { %v1068_v58 = vmax.f32 %v1008_v56, 0.0 }
 0x1d6   : > { %1049 = vmatmul.bf16.gmra.mxu2 %v897_v59  ;;  %v1093_v61 = vpack.c.bf16 %v1068_v58, %v1067_v57 }
 0x1d8   : > { %2131 = vmatmul.msk.bf16.gmra.mxu3 %vm1139_vm0, %v1093_v61 }
 0x1d9   : > { %v1010_v63 = vpop.f32.mrf.mxu2 }
 0x1da   : > { %v1011_v40 = vadd.f32 %v2902_v5, %v1010_v63 }
 0x1dc   : > { %v1069_v1 = vmax.f32 %v1011_v40, 0.0 }
 0x1e1   : > { %v1012_v47 = vpop.f32.mrf.mxu2 }
 0x1e2   : > { %v1013_v60 = vadd.f32 %v2902_v5, %v1012_v47 }
 0x1e4   : > { %v1070_v2 = vmax.f32 %v1013_v60, 0.0 }
 0x1e6   : > { %v1094_v3 = vpack.c.bf16 %v1070_v2, %v1069_v1  ;;  %2125 = vmatmul.msk.bf16.vlgmr.msrb.gmra.mxu2 %vm1139_vm0, %v2907_v24 }
 0x1e8   : > { %2132 = vmatmul.msk.bf16.gmra.mxu3 %vm1139_vm0, %v1094_v3 }
 0x1e9   : > { %v1015_v39 = vpop.f32.mrf.mxu2 }
 0x1ea   : > { %v1016_v4 = vadd.f32 %v2902_v5, %v1015_v39 }
 0x1ec   : > { %v1071_v11 = vmax.f32 %v1016_v4, 0.0  ;;  %v2290_v4 = vld [vmem:[#allocation7 + $0x64] sm:$0xf0] }
 0x1f1   : > { %v1017_v7 = vpop.f32.mrf.mxu2 }
 0x1f2   : > { %v1018_v9 = vadd.f32 %v2902_v5, %v1017_v7  ;;  %v2224_v7 = vor.u32 %v2290_v4, %v2223_v43 }
 0x1f4   : > { %v1072_v12 = vmax.f32 %v1018_v9, 0.0  ;;  %v2289_v9 = vld [vmem:[#allocation7 + $0x64] sm:$0xf]  ;;  %1649 = vmatpush.bf16.msrb.mxu0 %v2224_v7 }
 0x1f6   : > { %v1095_v13 = vpack.c.bf16 %v1072_v12, %v1071_v11  ;;  %2126 = vmatmul.msk.bf16.gmra.mxu2 %vm1139_vm0, %v2916_v49  ;;  %v2225_v11 = vld [vmem:[#allocation7 + $0x68] sm:$0xf0] }
 0x1f8   : > { %2133 = vmatmul.msk.bf16.gmra.mxu3 %vm1139_vm0, %v1095_v13  ;;  %v2228_v13 = vor.u32 %v2289_v9, %v2225_v11 }
 0x1f9   : > { %v1020_v24 = vpop.f32.mrf.mxu2 }
 0x1fa   : > { %v1021_v14 = vadd.f32 %v2902_v5, %v1020_v24  ;;  %1738 = vmatpush.bf16.msrb.mxu1 %v2228_v13 }
 0x1fc   : > { %v1073_v19 = vmax.f32 %v1021_v14, 0.0 }
 0x201   : > { %v1022_v16 = vpop.f32.mrf.mxu2 }
 0x202   : > { %v1023_v18 = vadd.f32 %v2902_v5, %v1022_v16 }
 0x204   : > { %v1074_v62 = vmax.f32 %v1023_v18, 0.0 }
 0x206   : > { %v1096_v20 = vpack.c.bf16 %v1074_v62, %v1073_v19  ;;  %2127 = vmatmul.msk.bf16.gmra.mxu2 %vm1139_vm0, %v2925_v8 }
 0x208   : > { %2134 = vmatmul.msk.bf16.gmra.mxu3 %vm1139_vm0, %v1096_v20 }
 0x209   : > { %v1025_v21 = vpop.f32.mrf.mxu2 }
 0x20a   : > { %v1026_v23 = vadd.f32 %v2902_v5, %v1025_v21 }
 0x20c   : > { %v1075_v55 = vmax.f32 %v1026_v23, 0.0 }
 0x211   : > { %v1027_v49 = vpop.f32.mrf.mxu2 }
 0x212   : > { %v1028_v25 = vadd.f32 %v2902_v5, %v1027_v49 }
 0x214   : > { %v1076_v0 = vmax.f32 %v1028_v25, 0.0 }
 0x216   : > { %v1097_v26 = vpack.c.bf16 %v1076_v0, %v1075_v55 }
 0x218   : > { %2135 = vmatmul.msk.bf16.gmra.mxu3 %vm1139_vm0, %v1097_v26 }
 0x219   : > { %v1030_v27 = vpop.f32.mrf.mxu2 }
 0x21a   : > { %v1031_v54 = vadd.f32 %v2902_v5, %v1030_v27 }
 0x21c   : > { %v1077_v8 = vmax.f32 %v1031_v54, 0.0 }
 0x221   : > { %v1032_v28 = vpop.f32.mrf.mxu2 }
 0x222   : > { %v1033_v30 = vadd.f32 %v2902_v5, %v1032_v28  ;;  %v2215_v28 = vld [vmem:[#allocation7 + $0x50] sm:$0xf] }
 0x224   : > { %v1078_v32 = vmax.f32 %v1033_v30, 0.0  ;;  %v2288_v30 = vld [vmem:[#allocation7 + $0x54] sm:$0xf0] }
 0x226   : > { %v1098_v33 = vpack.c.bf16 %v1078_v32, %v1077_v8  ;;  %v2216_v8 = vor.u32 %v2288_v30, %v2215_v28  ;;  %v2287_v32 = vld [vmem:[#allocation7 + $0x54] sm:$0xf] }
 0x228   : > { %2136 = vmatmul.msk.bf16.gmra.mxu3 %vm1139_vm0, %v1098_v33  ;;  %v2217_v33 = vld [vmem:[#allocation7 + $0x58] sm:$0xf0]  ;;  %1650 = vmatpush.bf16.msrb.mxu0 %v2216_v8 }
 0x229   : > { %v1035_v17 = vpop.f32.mrf.mxu2  ;;  %v2220_v34 = vor.u32 %v2287_v32, %v2217_v33 }
 0x22a   : > { %v1036_v44 = vadd.f32 %v2902_v5, %v1035_v17 }
 0x22b   : > { %v1212_v35 = vpop.f32.mrf.mxu3  ;;  %1739 = vmatpush.bf16.msrb.mxu1 %v2220_v34 }
 0x22c   : > { %v1213_v46 = vadd.f32 %v2988_v41, %v1212_v35  ;;  %v1079_v31 = vmax.f32 %v1036_v44, 0.0 }
 0x22e   : > { %v1283_v51 = vmax.f32 %v1213_v46, 0.0 }
 0x231   : > { %v1037_v45 = vpop.f32.mrf.mxu2 }
 0x232   : > { %v1038_v48 = vadd.f32 %v2902_v5, %v1037_v45 }
 0x233   : > { %v1214_v29 = vpop.f32.mrf.mxu3 }
 0x234   : > { %v1080_v37 = vmax.f32 %v1038_v48, 0.0  ;;  %v1215_v50 = vadd.f32 %v2988_v41, %v1214_v29 }
 0x236   : > { %v1099_v52 = vpack.c.bf16 %v1080_v37, %v1079_v31  ;;  %v1284_v53 = vmax.f32 %v1215_v50, 0.0 }
 0x238   : > { %v2994_v22 = vpack.c.bf16 %v1284_v53, %v1283_v51  ;;  %2137 = vmatmul.msk.bf16.gmra.mxu3 %vm1139_vm0, %v1099_v52 }
 0x239   : > { %v1040_v56 = vpop.f32.mrf.mxu2 }
 0x23a   : > { %v1041_v58 = vadd.f32 %v2902_v5, %v1040_v56 }
 0x23b   : > { %v1217_v57 = vpop.f32.mrf.mxu3 }
 0x23c   : > { %v1218_v61 = vadd.f32 %v2988_v41, %v1217_v57  ;;  %v1081_v47 = vmax.f32 %v1041_v58, 0.0 }
 0x23e   : > { %v1285_v2 = vmax.f32 %v1218_v61, 0.0 }
 0x241   : > { %v1042_v59 = vpop.f32.mrf.mxu2 }
 0x242   : > { %v1043_v63 = vadd.f32 %v2902_v5, %v1042_v59 }
 0x243   : > { %v1219_v40 = vpop.f32.mrf.mxu3 }
 0x244   : > { %v1082_v60 = vmax.f32 %v1043_v63, 0.0  ;;  %v1220_v1 = vadd.f32 %v2988_v41, %v1219_v40  ;;  %v2207_v63 = vld [vmem:[#allocation7 + $0x40] sm:$0xf]  ;;  %v2286_v40 = vld [vmem:[#allocation7 + $0x44] sm:$0xf0] }
 0x246   : > { %v1100_v3 = vpack.c.bf16 %v1082_v60, %v1081_v47  ;;  %v1286_v39 = vmax.f32 %v1220_v1, 0.0  ;;  %v2208_v47 = vor.u32 %v2286_v40, %v2207_v63  ;;  %v2285_v60 = vld [vmem:[#allocation7 + $0x44] sm:$0xf]  ;;  %v2209_v1 = vld [vmem:[#allocation7 + $0x48] sm:$0xf0] }
 0x248   : > { %v3001_v12 = vpack.c.bf16 %v1286_v39, %v1285_v2  ;;  %2138 = vmatmul.msk.bf16.gmra.mxu3 %vm1139_vm0, %v1100_v3  ;;  %v2212_v3 = vor.u32 %v2285_v60, %v2209_v1  ;;  %1651 = vmatpush.bf16.msrb.mxu0 %v2208_v47  ;;  %v2183_v47 = vld [vmem:[#allocation7 + $0x10] sm:$0xf]  ;;  %v2280_v60 = vld [vmem:[#allocation7 + $0x14] sm:$0xf0]  ;;  %v2279_v1 = vld [vmem:[#allocation7 + $0x14] sm:$0xf] }
 0x249   : > { %v1045_v24 = vpop.f32.mrf.mxu2 }
 0x24a   : > { %v1046_v16 = vadd.f32 %v2902_v5, %v1045_v24  ;;  %1740 = vmatpush.bf16.msrb.mxu1 %v2212_v3  ;;  %v2184_v3 = vor.u32 %v2280_v60, %v2183_v47 }
 0x24b   : > { %v1222_v14 = vpop.f32.mrf.mxu3 }
 0x24c   : > { %v1223_v19 = vadd.f32 %v2988_v41, %v1222_v14  ;;  %v1083_v21 = vmax.f32 %v1046_v16, 0.0 }
 0x24e   : > { %v1287_v25 = vmax.f32 %v1223_v19, 0.0 }
 0x251   : > { %v1047_v18 = vpop.f32.mrf.mxu2 }
 0x252   : > { %v1048_v62 = vadd.f32 %v2902_v5, %v1047_v18 }
 0x253   : > { %v1224_v20 = vpop.f32.mrf.mxu3 }
 0x254   : > { %v1084_v23 = vmax.f32 %v1048_v62, 0.0  ;;  %v1225_v49 = vadd.f32 %v2988_v41, %v1224_v20 }
 0x256   : > { %v1101_v55 = vpack.c.bf16 %v1084_v23, %v1083_v21  ;;  %v1288_v0 = vmax.f32 %v1225_v49, 0.0  ;;  %v2199_v21 = vld [vmem:[#allocation7 + $0x30] sm:$0xf]  ;;  %v2284_v23 = vld [vmem:[#allocation7 + $0x34] sm:$0xf0] }
 0x257   : > { %v2283_v49 = vld [vmem:[#allocation7 + $0x34] sm:$0xf] }
 0x258   : > { %v3008_v26 = vpack.c.bf16 %v1288_v0, %v1287_v25  ;;  %2139 = vmatmul.msk.bf16.gmra.mxu3 %vm1139_vm0, %v1101_v55  ;;  %v2200_v55 = vor.u32 %v2284_v23, %v2199_v21  ;;  %v2201_v0 = vld [vmem:[#allocation7 + $0x38] sm:$0xf0] }
 0x259   : > { %v1050_v27 = vpop.f32.mrf.mxu2 }
 0x25a   : > { %v1051_v17 = vadd.f32 %v2902_v5, %v1050_v27  ;;  %v2204_v27 = vor.u32 %v2283_v49, %v2201_v0  ;;  %1652 = vmatpush.bf16.msrb.mxu0 %v2200_v55 }
 0x25b   : > { %v1227_v54 = vpop.f32.mrf.mxu3 }
 0x25c   : > { %v1228_v10 = vadd.f32 %v2988_v41, %v1227_v54  ;;  %v1085_v6 = vmax.f32 %v1051_v17, 0.0  ;;  %1741 = vmatpush.bf16.msrb.mxu1 %v2204_v27 }
 0x25e   : > { %v1289_v44 = vmax.f32 %v1228_v10, 0.0 }
 0x261   : > { %v1052_v35 = vpop.f32.mrf.mxu2 }
 0x262   : > { %v1053_v15 = vadd.f32 %v2902_v5, %v1052_v35 }
 0x263   : > { %v1229_v36 = vpop.f32.mrf.mxu3 }
 0x264   : > { %v1086_v38 = vmax.f32 %v1053_v15, 0.0  ;;  %v1230_v42 = vadd.f32 %v2988_v41, %v1229_v36 }
 0x266   : > { %v1102_v45 = vpack.c.bf16 %v1086_v38, %v1085_v6  ;;  %v1290_v46 = vmax.f32 %v1230_v42, 0.0  ;;  %v2191_v42 = vld [vmem:[#allocation7 + $0x20] sm:$0xf] }
 0x268   : > { %v3015_v48 = vpack.c.bf16 %v1290_v46, %v1289_v44  ;;  %2140 = vmatmul.msk.bf16.gmra.mxu3 %vm1139_vm0, %v1102_v45  ;;  %v2282_v44 = vld [vmem:[#allocation7 + $0x24] sm:$0xf0]  ;;  %v2281_v46 = vld [vmem:[#allocation7 + $0x24] sm:$0xf] }
 0x269   : > { %v1197_v29 = vpop.f32.mrf.mxu2  ;;  %v2192_v45 = vor.u32 %v2282_v44, %v2191_v42  ;;  %v3078_v42 = vld [vmem:[%s3307_s8] ss:$0 sm:$0xff] }
 0x26a   : > { %v1198_v37 = vadd.f32 %v2988_v41, %v1197_v29  ;;  %v2193_v29 = vld [vmem:[#allocation7 + $0x28] sm:$0xf0] }
 0x26b   : > { %v1232_v31 = vpop.f32.mrf.mxu3  ;;  %1653 = vmatpush.bf16.msrb.mxu0 %v2192_v45 }
 0x26c   : > { %v1233_v51 = vadd.f32 %v2988_v41, %v1232_v31  ;;  %v1277_v53 = vmax.f32 %v1198_v37, 0.0  ;;  %v2196_v31 = vor.u32 %v2281_v46, %v2193_v29 }
 0x26e   : > { %v1291_v58 = vmax.f32 %v1233_v51, 0.0  ;;  %1742 = vmatpush.bf16.msrb.mxu1 %v2196_v31 }
 0x26f   : > { %1654 = vmatpush.bf16.msrb.mxu0 %v2184_v3 }
 0x271   : > { %v1199_v50 = vpop.f32.mrf.mxu2 }
 0x272   : > { %v1200_v5 = vadd.f32 %v2988_v41, %v1199_v50 }
 0x273   : > { %v1234_v52 = vpop.f32.mrf.mxu3 }
 0x274   : > { %v1278_v56 = vmax.f32 %v1200_v5, 0.0  ;;  %v1235_v57 = vadd.f32 %v2988_v41, %v1234_v52 }
 0x276   : > { %v1309_v59 = vpack.c.bf16 %v1278_v56, %v1277_v53  ;;  %v1292_v61 = vmax.f32 %v1235_v57, 0.0 }
 0x278   : > { %v3022_v2 = vpack.c.bf16 %v1292_v61, %v1291_v58  ;;  %2157 = vmatmul.msk.bf16.vlgmr.msrb.gmra.mxu3 %vm1139_vm0, %v1309_v59 }
 0x279   : > { %v1202_v39 = vpop.f32.mrf.mxu2 }
 0x27a   : > { %v1203_v4 = vadd.f32 %v2988_v41, %v1202_v39  ;;  %v2185_v39 = vld [vmem:[#allocation7 + $0x18] sm:$0xf0] }
 0x27b   : > { %v1237_v43 = vpop.f32.mrf.mxu3 }
 0x27c   : > { %v1238_v9 = vadd.f32 %v2988_v41, %v1237_v43  ;;  %v1279_v24 = vmax.f32 %v1203_v4, 0.0  ;;  %v2188_v43 = vor.u32 %v2279_v1, %v2185_v39 }
 0x27e   : > { %v1293_v18 = vmax.f32 %v1238_v9, 0.0  ;;  %1743 = vmatpush.bf16.msrb.mxu1 %v2188_v43 }
 0x281   : > { %v1204_v7 = vpop.f32.mrf.mxu2 }
 0x282   : > { %v1205_v11 = vadd.f32 %v2988_v41, %v1204_v7 }
 0x283   : > { %v1239_v13 = vpop.f32.mrf.mxu3 }
 0x284   : > { %v1280_v14 = vmax.f32 %v1205_v11, 0.0  ;;  %v1240_v16 = vadd.f32 %v2988_v41, %v1239_v13 }
 0x286   : > { %v1310_v19 = vpack.c.bf16 %v1280_v14, %v1279_v24  ;;  %v1294_v62 = vmax.f32 %v1240_v16, 0.0  ;;  %v2175_v14 = vld [vmem:[#allocation7] sm:$0xf]  ;;  %v2278_v16 = vld [vmem:[#allocation7 + $0x4] sm:$0xf0] }
 0x288   : > { %v3029_v20 = vpack.c.bf16 %v1294_v62, %v1293_v18  ;;  %2158 = vmatmul.msk.bf16.gmra.mxu3 %vm1139_vm0, %v1310_v19  ;;  %v2176_v18 = vor.u32 %v2278_v16, %v2175_v14  ;;  %v2277_v19 = vld [vmem:[#allocation7 + $0x4] sm:$0xf]  ;;  %v2177_v62 = vld [vmem:[#allocation7 + $0x8] sm:$0xf0] }
 0x289   : > { %v1207_v25 = vpop.f32.mrf.mxu2  ;;  %v2180_v21 = vor.u32 %v2277_v19, %v2177_v62 }
 0x28a   : > { %v1208_v28 = vadd.f32 %v2988_v41, %v1207_v25  ;;  %1655 = vmatpush.bf16.msrb.mxu0 %v2176_v18 }
 0x28b   : > { %v1242_v54 = vpop.f32.mrf.mxu3  ;;  %1744 = vmatpush.bf16.msrb.mxu1 %v2180_v21 }
 0x28c   : > { %v1243_v8 = vadd.f32 %v2988_v41, %v1242_v54  ;;  %v1281_v34 = vmax.f32 %v1208_v28, 0.0 }
 0x28e   : > { %v1295_v10 = vmax.f32 %v1243_v8, 0.0 }
 0x291   : > { %v1209_v30 = vpop.f32.mrf.mxu2 }
 0x292   : > { %v1210_v32 = vadd.f32 %v2988_v41, %v1209_v30 }
 0x293   : > { %v1244_v33 = vpop.f32.mrf.mxu3 }
 0x294   : > { %v1282_v17 = vmax.f32 %v1210_v32, 0.0  ;;  %v1245_v35 = vadd.f32 %v2988_v41, %v1244_v33 }
 0x296   : > { %v1311_v15 = vpack.c.bf16 %v1282_v17, %v1281_v34  ;;  %v1296_v36 = vmax.f32 %v1245_v35, 0.0 }
 0x298   : > { %v3036_v6 = vpack.c.bf16 %v1296_v36, %v1295_v10  ;;  %2159 = vmatmul.msk.bf16.gmra.mxu3 %vm1139_vm0, %v1311_v15 }
 0x29b   : > { %v1247_v38 = vpop.f32.mrf.mxu3 }
 0x29c   : > { %v1248_v37 = vadd.f32 %v2988_v41, %v1247_v38 }
 0x29e   : > { %v1297_v5 = vmax.f32 %v1248_v37, 0.0 }
 0x2a3   : > { %v1249_v50 = vpop.f32.mrf.mxu3 }
 0x2a4   : > { %v1250_v51 = vadd.f32 %v2988_v41, %v1249_v50 }
 0x2a6   : > { %v1298_v52 = vmax.f32 %v1250_v51, 0.0 }
 0x2a8   : > { %v3041_v53 = vpack.c.bf16 %v1298_v52, %v1297_v5  ;;  %2160 = vmatmul.msk.bf16.gmra.mxu3 %vm1139_vm0, %v2994_v22 }
 0x2ab   : > { %v1252_v56 = vpop.f32.mrf.mxu3 }
 0x2ac   : > { %v1253_v57 = vadd.f32 %v2988_v41, %v1252_v56 }
 0x2ae   : > { %v1299_v61 = vmax.f32 %v1253_v57, 0.0 }
 0x2b3   : > { %v1254_v58 = vpop.f32.mrf.mxu3 }
 0x2b4   : > { %v1255_v59 = vadd.f32 %v2988_v41, %v1254_v58 }
 0x2b6   : > { %v1300_v63 = vmax.f32 %v1255_v59, 0.0 }
 0x2b8   : > { %v3047_v40 = vpack.c.bf16 %v1300_v63, %v1299_v61  ;;  %2161 = vmatmul.msk.bf16.gmra.mxu3 %vm1139_vm0, %v3001_v12 }
 0x2bb   : > { %v1257_v22 = vpop.f32.mrf.mxu3 }
 0x2bc   : > { %v1258_v4 = vadd.f32 %v2988_v41, %v1257_v22 }
 0x2be   : > { %v1301_v11 = vmax.f32 %v1258_v4, 0.0 }
 0x2c3   : > { %v1259_v7 = vpop.f32.mrf.mxu3 }
 0x2c4   : > { %v1260_v9 = vadd.f32 %v2988_v41, %v1259_v7 }
 0x2c6   : > { %v1302_v13 = vmax.f32 %v1260_v9, 0.0 }
 0x2c8   : > { %v3053_v24 = vpack.c.bf16 %v1302_v13, %v1301_v11  ;;  %2162 = vmatmul.msk.bf16.gmra.mxu3 %vm1139_vm0, %v3008_v26 }
 0x2cb   : > { %v1262_v12 = vpop.f32.mrf.mxu3 }
 0x2cc   : > { %v1263_v23 = vadd.f32 %v2988_v41, %v1262_v12 }
 0x2ce   : > { %v1303_v55 = vmax.f32 %v1263_v23, 0.0 }
 0x2d3   : > { %v1264_v49 = vpop.f32.mrf.mxu3 }
 0x2d4   : > { %v1265_v25 = vadd.f32 %v2988_v41, %v1264_v49 }
 0x2d6   : > { %v1304_v0 = vmax.f32 %v1265_v25, 0.0 }
 0x2d8   : > { %v3059_v27 = vpack.c.bf16 %v1304_v0, %v1303_v55  ;;  %2163 = vmatmul.msk.bf16.gmra.mxu3 %vm1139_vm0, %v3015_v48 }
 0x2db   : > { %v1267_v26 = vpop.f32.mrf.mxu3 }
 0x2dc   : > { %v1268_v54 = vadd.f32 %v2988_v41, %v1267_v26 }
 0x2de   : > { %v1305_v8 = vmax.f32 %v1268_v54, 0.0 }
 0x2e3   : > { %v1269_v28 = vpop.f32.mrf.mxu3 }
 0x2e4   : > { %v1270_v30 = vadd.f32 %v2988_v41, %v1269_v28 }
 0x2e6   : > { %v1306_v32 = vmax.f32 %v1270_v30, 0.0 }
 0x2e8   : > { %v3065_v33 = vpack.c.bf16 %v1306_v32, %v1305_v8  ;;  %2164 = vmatmul.msk.bf16.gmra.mxu3 %vm1139_vm0, %v3022_v2 }
 0x2eb   : > { %v1272_v34 = vpop.f32.mrf.mxu3 }
 0x2ec   : > { %v1273_v17 = vadd.f32 %v2988_v41, %v1272_v34 }
 0x2ee   : > { %v1307_v48 = vmax.f32 %v1273_v17, 0.0  ;;  %v1562_v17 = vld [vmem:[%s3309_s10] sm:$0x3] }
 0x2f3   : > { %v1274_v35 = vpop.f32.mrf.mxu3 }
 0x2f4   : > { %v1275_v10 = vadd.f32 %v2988_v41, %v1274_v35 }
 0x2f6   : > { %v1308_v15 = vmax.f32 %v1275_v10, 0.0 }
 0x2f8   : > { %v3071_v36 = vpack.c.bf16 %v1308_v15, %v1307_v48  ;;  %2165 = vmatmul.msk.bf16.gmra.mxu3 %vm1139_vm0, %v3029_v20  ;;  %v3115_v15 = vperm.slane %v1562_v17, 0 }
 0x2fb   : > { %v1418_v38 = vpop.f32.mrf.mxu3 }
 0x2fc   : > { %v1419_v2 = vadd.f32 %v3078_v42, %v1418_v38 }
 0x2fe   : > { %v1498_v46 = vmax.f32 %v1419_v2, 0.0 }
 0x303   : > { %v1420_v44 = vpop.f32.mrf.mxu3 }
 0x304   : > { %v1421_v45 = vadd.f32 %v3078_v42, %v1420_v44 }
 0x306   : > { %v1499_v41 = vmax.f32 %v1421_v45, 0.0 }
 0x308   : > { %v1530_v29 = vpack.c.bf16 %v1499_v41, %v1498_v46  ;;  %2166 = vmatmul.msk.bf16.gmra.mxu3 %vm1139_vm0, %v3036_v6 }
 0x30a   : > { %1656 = vmatmul.bf16.vlgmr.msrb.gmra.mxu0 %v1530_v29  ;;  %1745 = vmatmul.bf16.vlgmr.msrb.gmra.mxu1 %v1530_v29 }
 0x30b   : > { %v1423_v20 = vpop.f32.mrf.mxu3 }
 0x30c   : > { %v1424_v31 = vadd.f32 %v3078_v42, %v1423_v20 }
 0x30e   : > { %v1500_v51 = vmax.f32 %v1424_v31, 0.0 }
 0x313   : > { %v1425_v37 = vpop.f32.mrf.mxu3 }
 0x314   : > { %v1426_v50 = vadd.f32 %v3078_v42, %v1425_v37 }
 0x316   : > { %v1501_v5 = vmax.f32 %v1426_v50, 0.0 }
 0x318   : > { %2167 = vmatmul.msk.bf16.gmra.mxu3 %vm1139_vm0, %v3041_v53  ;;  %v1531_v52 = vpack.c.bf16 %v1501_v5, %v1500_v51 }
 0x31a   : > { %1661 = vmatmul.bf16.gmra.mxu0 %v1531_v52  ;;  %1750 = vmatmul.bf16.gmra.mxu1 %v1531_v52 }
 0x31b   : > { %v1428_v56 = vpop.f32.mrf.mxu3 }
 0x31c   : > { %v1429_v57 = vadd.f32 %v3078_v42, %v1428_v56 }
 0x31e   : > { %v1502_v59 = vmax.f32 %v1429_v57, 0.0 }
 0x323   : > { %v1430_v6 = vpop.f32.mrf.mxu3 }
 0x324   : > { %v1431_v58 = vadd.f32 %v3078_v42, %v1430_v6 }
 0x326   : > { %v1503_v61 = vmax.f32 %v1431_v58, 0.0 }
 0x328   : > { %2168 = vmatmul.msk.bf16.gmra.mxu3 %vm1139_vm0, %v3047_v40  ;;  %v1532_v63 = vpack.c.bf16 %v1503_v61, %v1502_v59 }
 0x32a   : > { %1666 = vmatmul.bf16.gmra.mxu0 %v1532_v63  ;;  %1755 = vmatmul.bf16.gmra.mxu1 %v1532_v63 }
 0x32b   : > { %v1433_v47 = vpop.f32.mrf.mxu3 }
 0x32c   : > { %v1434_v53 = vadd.f32 %v3078_v42, %v1433_v47 }
 0x32e   : > { %v1504_v3 = vmax.f32 %v1434_v53, 0.0 }
 0x333   : > { %v1435_v60 = vpop.f32.mrf.mxu3 }
 0x334   : > { %v1436_v1 = vadd.f32 %v3078_v42, %v1435_v60 }
 0x336   : > { %v1505_v39 = vmax.f32 %v1436_v1, 0.0 }
 0x338   : > { %2169 = vmatmul.msk.bf16.gmra.mxu3 %vm1139_vm0, %v3053_v24  ;;  %v1533_v43 = vpack.c.bf16 %v1505_v39, %v1504_v3 }
 0x33a   : > { %1671 = vmatmul.bf16.gmra.mxu0 %v1533_v43  ;;  %1760 = vmatmul.bf16.gmra.mxu1 %v1533_v43 }
 0x33b   : > { %v1438_v22 = vpop.f32.mrf.mxu3 }
 0x33c   : > { %v1439_v40 = vadd.f32 %v3078_v42, %v1438_v22 }
 0x33e   : > { %v1506_v9 = vmax.f32 %v1439_v40, 0.0 }
 0x343   : > { %v1440_v4 = vpop.f32.mrf.mxu3 }
 0x344   : > { %v1441_v7 = vadd.f32 %v3078_v42, %v1440_v4 }
 0x346   : > { %v1507_v11 = vmax.f32 %v1441_v7, 0.0 }
 0x348   : > { %v1534_v13 = vpack.c.bf16 %v1507_v11, %v1506_v9  ;;  %2170 = vmatmul.msk.bf16.gmra.mxu3 %vm1139_vm0, %v3059_v27 }
 0x34a   : > { %1676 = vmatmul.bf16.gmra.mxu0 %v1534_v13  ;;  %1765 = vmatmul.bf16.gmra.mxu1 %v1534_v13 }
 0x34b   : > { %v1443_v12 = vpop.f32.mrf.mxu3 }
 0x34c   : > { %v1444_v24 = vadd.f32 %v3078_v42, %v1443_v12 }
 0x34e   : > { %v1508_v18 = vmax.f32 %v1444_v24, 0.0 }
 0x353   : > { %v1445_v14 = vpop.f32.mrf.mxu3 }
 0x354   : > { %v1446_v16 = vadd.f32 %v3078_v42, %v1445_v14 }
 0x356   : > { %v1509_v19 = vmax.f32 %v1446_v16, 0.0 }
 0x358   : > { %v1535_v62 = vpack.c.bf16 %v1509_v19, %v1508_v18  ;;  %2171 = vmatmul.msk.bf16.gmra.mxu3 %vm1139_vm0, %v3065_v33 }
 0x35a   : > { %1681 = vmatmul.bf16.gmra.mxu0 %v1535_v62  ;;  %1770 = vmatmul.bf16.gmra.mxu1 %v1535_v62 }
 0x35b   : > { %v1448_v21 = vpop.f32.mrf.mxu3 }
 0x35c   : > { %v1449_v23 = vadd.f32 %v3078_v42, %v1448_v21 }
 0x35e   : > { %v1510_v55 = vmax.f32 %v1449_v23, 0.0 }
 0x363   : > { %v1450_v49 = vpop.f32.mrf.mxu3 }
 0x364   : > { %v1451_v25 = vadd.f32 %v3078_v42, %v1450_v49 }
 0x366   : > { %v1511_v0 = vmax.f32 %v1451_v25, 0.0 }
 0x368   : > { %v1536_v27 = vpack.c.bf16 %v1511_v0, %v1510_v55  ;;  %2172 = vmatmul.msk.bf16.gmra.mxu3 %vm1139_vm0, %v3071_v36  ;;  %v3117_v36 = vperm.slane %v1562_v17, 1 }
 0x36a   : > { %1686 = vmatmul.bf16.gmra.mxu0 %v1536_v27  ;;  %1775 = vmatmul.bf16.gmra.mxu1 %v1536_v27 }
 0x36b   : > { %v1453_v26 = vpop.f32.mrf.mxu3 }
 0x36c   : > { %v1454_v54 = vadd.f32 %v3078_v42, %v1453_v26 }
 0x36e   : > { %v1512_v8 = vmax.f32 %v1454_v54, 0.0 }
 0x373   : > { %v1455_v28 = vpop.f32.mrf.mxu3 }
 0x374   : > { %v1456_v30 = vadd.f32 %v3078_v42, %v1455_v28 }
 0x376   : > { %v1513_v32 = vmax.f32 %v1456_v30, 0.0 }
 0x378   : > { %v1537_v33 = vpack.c.bf16 %v1513_v32, %v1512_v8 }
 0x37a   : > { %1691 = vmatmul.bf16.gmra.mxu0 %v1537_v33  ;;  %1780 = vmatmul.bf16.gmra.mxu1 %v1537_v33 }
 0x37b   : > { %v1458_v34 = vpop.f32.mrf.mxu3 }
 0x37c   : > { %v1459_v35 = vadd.f32 %v3078_v42, %v1458_v34 }
 0x37e   : > { %v1514_v38 = vmax.f32 %v1459_v35, 0.0 }
 0x383   : > { %v1460_v10 = vpop.f32.mrf.mxu3 }
 0x384   : > { %v1461_v48 = vadd.f32 %v3078_v42, %v1460_v10 }
 0x386   : > { %v1515_v2 = vmax.f32 %v1461_v48, 0.0 }
 0x387   : > { %v1657_v44 = vpop.f32.mrf.mxu0  ;;  %v1746_v45 = vpop.f32.mrf.mxu1 }
 0x388   : > { %v1538_v46 = vpack.c.bf16 %v1515_v2, %v1514_v38  ;;  %v1658_v41 = vadd.f32 %v1657_v44, %v3115_v15  ;;  %v1747_v29 = vadd.f32 %v1746_v45, %v3117_v36 }
 0x38a   : > { %1826 = vst [vmem:[%s3123_s13] sm:$0xff] %v1658_v41  ;;  %1696 = vmatmul.bf16.gmra.mxu0 %v1538_v46  ;;  %1785 = vmatmul.bf16.gmra.mxu1 %v1538_v46 }
 0x38b   : > { %1827 = vst [vmem:[%s3123_s13 + $0x8] sm:$0xff] %v1747_v29  ;;  %v1463_v20 = vpop.f32.mrf.mxu3 }
 0x38c   : > { %v1464_v5 = vadd.f32 %v3078_v42, %v1463_v20 }
 0x38e   : > { %v1516_v57 = vmax.f32 %v1464_v5, 0.0 }
 0x38f   : > { %v1659_v31 = vpop.f32.mrf.mxu0  ;;  %v1748_v37 = vpop.f32.mrf.mxu1 }
 0x390   : > { %v1660_v50 = vadd.f32 %v1659_v31, %v3115_v15  ;;  %v1749_v51 = vadd.f32 %v1748_v37, %v3117_v36 }
 0x392   : > { %1828 = vst [vmem:[%s3123_s13 + $0x10] sm:$0xff] %v1660_v50 }
 0x393   : > { %1829 = vst [vmem:[%s3123_s13 + $0x18] sm:$0xff] %v1749_v51  ;;  %v1465_v52 = vpop.f32.mrf.mxu3 }
 0x394   : > { %v1466_v56 = vadd.f32 %v3078_v42, %v1465_v52 }
 0x396   : > { %v1517_v6 = vmax.f32 %v1466_v56, 0.0 }
 0x397   : > { %v1662_v58 = vpop.f32.mrf.mxu0  ;;  %v1751_v59 = vpop.f32.mrf.mxu1 }
 0x398   : > { %v1539_v61 = vpack.c.bf16 %v1517_v6, %v1516_v57  ;;  %v1663_v63 = vadd.f32 %v1662_v58, %v3115_v15  ;;  %v1752_v47 = vadd.f32 %v1751_v59, %v3117_v36 }
 0x39a   : > { %1830 = vst [vmem:[%s3123_s13 + $0x20] sm:$0xff] %v1663_v63  ;;  %1701 = vmatmul.bf16.gmra.mxu0 %v1539_v61  ;;  %1790 = vmatmul.bf16.gmra.mxu1 %v1539_v61 }
 0x39b   : > { %1831 = vst [vmem:[%s3123_s13 + $0x28] sm:$0xff] %v1752_v47  ;;  %v1468_v53 = vpop.f32.mrf.mxu3 }
 0x39c   : > { %v1469_v43 = vadd.f32 %v3078_v42, %v1468_v53 }
 0x39e   : > { %v1518_v4 = vmax.f32 %v1469_v43, 0.0 }
 0x39f   : > { %v1664_v60 = vpop.f32.mrf.mxu0  ;;  %v1753_v1 = vpop.f32.mrf.mxu1 }
 0x3a0   : > { %v1665_v3 = vadd.f32 %v1664_v60, %v3115_v15  ;;  %v1754_v39 = vadd.f32 %v1753_v1, %v3117_v36 }
 0x3a2   : > { %1832 = vst [vmem:[%s3123_s13 + $0x30] sm:$0xff] %v1665_v3 }
 0x3a3   : > { %1833 = vst [vmem:[%s3123_s13 + $0x38] sm:$0xff] %v1754_v39  ;;  %v1470_v22 = vpop.f32.mrf.mxu3 }
 0x3a4   : > { %v1471_v40 = vadd.f32 %v3078_v42, %v1470_v22 }
 0x3a6   : > { %v1519_v7 = vmax.f32 %v1471_v40, 0.0 }
 0x3a7   : > { %v1667_v9 = vpop.f32.mrf.mxu0  ;;  %v1756_v11 = vpop.f32.mrf.mxu1 }
 0x3a8   : > { %v1540_v13 = vpack.c.bf16 %v1519_v7, %v1518_v4  ;;  %v1668_v12 = vadd.f32 %v1667_v9, %v3115_v15  ;;  %v1757_v24 = vadd.f32 %v1756_v11, %v3117_v36 }
 0x3aa   : > { %1834 = vst [vmem:[%s3123_s13 + $0x40] sm:$0xff] %v1668_v12  ;;  %1706 = vmatmul.bf16.gmra.mxu0 %v1540_v13  ;;  %1795 = vmatmul.bf16.gmra.mxu1 %v1540_v13 }
 0x3ab   : > { %1835 = vst [vmem:[%s3123_s13 + $0x48] sm:$0xff] %v1757_v24  ;;  %v1473_v14 = vpop.f32.mrf.mxu3 }
 0x3ac   : > { %v1474_v21 = vadd.f32 %v3078_v42, %v1473_v14 }
 0x3ae   : > { %v1520_v25 = vmax.f32 %v1474_v21, 0.0 }
 0x3af   : > { %v1669_v16 = vpop.f32.mrf.mxu0  ;;  %v1758_v18 = vpop.f32.mrf.mxu1 }
 0x3b0   : > { %v1670_v19 = vadd.f32 %v1669_v16, %v3115_v15  ;;  %v1759_v62 = vadd.f32 %v1758_v18, %v3117_v36 }
 0x3b2   : > { %1836 = vst [vmem:[%s3123_s13 + $0x50] sm:$0xff] %v1670_v19 }
 0x3b3   : > { %1837 = vst [vmem:[%s3123_s13 + $0x58] sm:$0xff] %v1759_v62  ;;  %v1475_v23 = vpop.f32.mrf.mxu3 }
 0x3b4   : > { %v1476_v49 = vadd.f32 %v3078_v42, %v1475_v23 }
 0x3b6   : > { %v1521_v55 = vmax.f32 %v1476_v49, 0.0 }
 0x3b7   : > { %v1672_v0 = vpop.f32.mrf.mxu0  ;;  %v1761_v27 = vpop.f32.mrf.mxu1 }
 0x3b8   : > { %v1541_v26 = vpack.c.bf16 %v1521_v55, %v1520_v25  ;;  %v1673_v54 = vadd.f32 %v1672_v0, %v3115_v15  ;;  %v1762_v28 = vadd.f32 %v1761_v27, %v3117_v36 }
 0x3ba   : > { %1838 = vst [vmem:[%s3123_s13 + $0x60] sm:$0xff] %v1673_v54  ;;  %1711 = vmatmul.bf16.gmra.mxu0 %v1541_v26  ;;  %1800 = vmatmul.bf16.gmra.mxu1 %v1541_v26 }
 0x3bb   : > { %1839 = vst [vmem:[%s3123_s13 + $0x68] sm:$0xff] %v1762_v28  ;;  %v1478_v30 = vpop.f32.mrf.mxu3 }
 0x3bc   : > { %v1479_v17 = vadd.f32 %v3078_v42, %v1478_v30 }
 0x3be   : > { %v1522_v48 = vmax.f32 %v1479_v17, 0.0 }
 0x3bf   : > { %v1674_v8 = vpop.f32.mrf.mxu0  ;;  %v1763_v32 = vpop.f32.mrf.mxu1 }
 0x3c0   : > { %v1675_v33 = vadd.f32 %v1674_v8, %v3115_v15  ;;  %v1764_v34 = vadd.f32 %v1763_v32, %v3117_v36 }
 0x3c2   : > { %1840 = vst [vmem:[%s3123_s13 + $0x70] sm:$0xff] %v1675_v33 }
 0x3c3   : > { %1841 = vst [vmem:[%s3123_s13 + $0x78] sm:$0xff] %v1764_v34  ;;  %v1480_v35 = vpop.f32.mrf.mxu3 }
 0x3c4   : > { %v1481_v10 = vadd.f32 %v3078_v42, %v1480_v35 }
 0x3c6   : > { %v1523_v38 = vmax.f32 %v1481_v10, 0.0 }
 0x3c7   : > { %v1677_v2 = vpop.f32.mrf.mxu0  ;;  %v1766_v44 = vpop.f32.mrf.mxu1 }
 0x3c8   : > { %v1542_v45 = vpack.c.bf16 %v1523_v38, %v1522_v48  ;;  %v1678_v46 = vadd.f32 %v1677_v2, %v3115_v15  ;;  %v1767_v41 = vadd.f32 %v1766_v44, %v3117_v36 }
 0x3ca   : > { %1842 = vst [vmem:[%s3123_s13 + $0x80] sm:$0xff] %v1678_v46  ;;  %1716 = vmatmul.bf16.gmra.mxu0 %v1542_v45  ;;  %1805 = vmatmul.bf16.gmra.mxu1 %v1542_v45 }
 0x3cb   : > { %1843 = vst [vmem:[%s3123_s13 + $0x88] sm:$0xff] %v1767_v41  ;;  %v1483_v29 = vpop.f32.mrf.mxu3 }
 0x3cc   : > { %v1484_v51 = vadd.f32 %v3078_v42, %v1483_v29 }
 0x3ce   : > { %v1524_v56 = vmax.f32 %v1484_v51, 0.0 }
 0x3cf   : > { %v1679_v20 = vpop.f32.mrf.mxu0  ;;  %v1768_v31 = vpop.f32.mrf.mxu1 }
 0x3d0   : > { %v1680_v37 = vadd.f32 %v1679_v20, %v3115_v15  ;;  %v1769_v50 = vadd.f32 %v1768_v31, %v3117_v36 }
 0x3d2   : > { %1844 = vst [vmem:[%s3123_s13 + $0x90] sm:$0xff] %v1680_v37 }
 0x3d3   : > { %1845 = vst [vmem:[%s3123_s13 + $0x98] sm:$0xff] %v1769_v50  ;;  %v1485_v5 = vpop.f32.mrf.mxu3 }
 0x3d4   : > { %v1486_v52 = vadd.f32 %v3078_v42, %v1485_v5 }
 0x3d6   : > { %v1525_v57 = vmax.f32 %v1486_v52, 0.0 }
 0x3d7   : > { %v1682_v6 = vpop.f32.mrf.mxu0  ;;  %v1771_v58 = vpop.f32.mrf.mxu1 }
 0x3d8   : > { %v1543_v59 = vpack.c.bf16 %v1525_v57, %v1524_v56  ;;  %v1683_v61 = vadd.f32 %v1682_v6, %v3115_v15  ;;  %v1772_v63 = vadd.f32 %v1771_v58, %v3117_v36 }
 0x3da   : > { %1846 = vst [vmem:[%s3123_s13 + $0xa0] sm:$0xff] %v1683_v61  ;;  %1721 = vmatmul.bf16.gmra.mxu0 %v1543_v59  ;;  %1810 = vmatmul.bf16.gmra.mxu1 %v1543_v59 }
 0x3db   : > { %1847 = vst [vmem:[%s3123_s13 + $0xa8] sm:$0xff] %v1772_v63  ;;  %v1488_v47 = vpop.f32.mrf.mxu3 }
 0x3dc   : > { %v1489_v39 = vadd.f32 %v3078_v42, %v1488_v47 }
 0x3de   : > { %v1526_v40 = vmax.f32 %v1489_v39, 0.0 }
 0x3df   : > { %v1684_v53 = vpop.f32.mrf.mxu0  ;;  %v1773_v60 = vpop.f32.mrf.mxu1 }
 0x3e0   : > { %v1685_v1 = vadd.f32 %v1684_v53, %v3115_v15  ;;  %v1774_v3 = vadd.f32 %v1773_v60, %v3117_v36 }
 0x3e2   : > { %1848 = vst [vmem:[%s3123_s13 + $0xb0] sm:$0xff] %v1685_v1 }
 0x3e3   : > { %1849 = vst [vmem:[%s3123_s13 + $0xb8] sm:$0xff] %v1774_v3  ;;  %v1490_v43 = vpop.f32.mrf.mxu3 }
 0x3e4   : > { %v1491_v22 = vadd.f32 %v3078_v42, %v1490_v43 }
 0x3e6   : > { %v1527_v4 = vmax.f32 %v1491_v22, 0.0 }
 0x3e7   : > { %v1687_v7 = vpop.f32.mrf.mxu0  ;;  %v1776_v9 = vpop.f32.mrf.mxu1 }
 0x3e8   : > { %v1544_v11 = vpack.c.bf16 %v1527_v4, %v1526_v40  ;;  %v1688_v13 = vadd.f32 %v1687_v7, %v3115_v15  ;;  %v1777_v12 = vadd.f32 %v1776_v9, %v3117_v36 }
 0x3ea   : > { %1850 = vst [vmem:[%s3123_s13 + $0xc0] sm:$0xff] %v1688_v13  ;;  %1726 = vmatmul.bf16.gmra.mxu0 %v1544_v11  ;;  %1815 = vmatmul.bf16.gmra.mxu1 %v1544_v11 }
 0x3eb   : > { %1851 = vst [vmem:[%s3123_s13 + $0xc8] sm:$0xff] %v1777_v12  ;;  %v1493_v24 = vpop.f32.mrf.mxu3 }
 0x3ec   : > { %v1494_v62 = vadd.f32 %v3078_v42, %v1493_v24 }
 0x3ee   : > { %v1528_v49 = vmax.f32 %v1494_v62, 0.0 }
 0x3ef   : > { %v1689_v14 = vpop.f32.mrf.mxu0  ;;  %v1778_v16 = vpop.f32.mrf.mxu1 }
 0x3f0   : > { %v1690_v18 = vadd.f32 %v1689_v14, %v3115_v15  ;;  %v1779_v19 = vadd.f32 %v1778_v16, %v3117_v36 }
 0x3f2   : > { %1852 = vst [vmem:[%s3123_s13 + $0xd0] sm:$0xff] %v1690_v18 }
 0x3f3   : > { %1853 = vst [vmem:[%s3123_s13 + $0xd8] sm:$0xff] %v1779_v19  ;;  %v1495_v21 = vpop.f32.mrf.mxu3 }
 0x3f4   : > { %v1496_v23 = vadd.f32 %v3078_v42, %v1495_v21 }
 0x3f6   : > { %v1529_v25 = vmax.f32 %v1496_v23, 0.0 }
 0x3f7   : > { %v1692_v55 = vpop.f32.mrf.mxu0  ;;  %v1781_v0 = vpop.f32.mrf.mxu1 }
 0x3f8   : > { %v1545_v27 = vpack.c.bf16 %v1529_v25, %v1528_v49  ;;  %v1693_v26 = vadd.f32 %v1692_v55, %v3115_v15  ;;  %v1782_v54 = vadd.f32 %v1781_v0, %v3117_v36 }
 0x3fa   : > { %1854 = vst [vmem:[%s3123_s13 + $0xe0] sm:$0xff] %v1693_v26  ;;  %1731 = vmatmul.bf16.gmra.mxu0 %v1545_v27  ;;  %1820 = vmatmul.bf16.gmra.mxu1 %v1545_v27 }
 0x3fb   : > { %1855 = vst [vmem:[%s3123_s13 + $0xe8] sm:$0xff] %v1782_v54 }
 0x3ff   : > { %v1694_v28 = vpop.f32.mrf.mxu0  ;;  %v1783_v42 = vpop.f32.mrf.mxu1 }
 0x400   : > { %v1695_v30 = vadd.f32 %v1694_v28, %v3115_v15  ;;  %v1784_v8 = vadd.f32 %v1783_v42, %v3117_v36 }
 0x402   : > { %1856 = vst [vmem:[%s3123_s13 + $0xf0] sm:$0xff] %v1695_v30 }
 0x403   : > { %1857 = vst [vmem:[%s3123_s13 + $0xf8] sm:$0xff] %v1784_v8 }
 0x407   : > { %v1697_v32 = vpop.f32.mrf.mxu0  ;;  %v1786_v33 = vpop.f32.mrf.mxu1 }
 0x408   : > { %v1698_v34 = vadd.f32 %v1697_v32, %v3115_v15  ;;  %v1787_v17 = vadd.f32 %v1786_v33, %v3117_v36 }
 0x40a   : > { %1858 = vst [vmem:[%s3123_s13 + $0x100] sm:$0xff] %v1698_v34 }
 0x40b   : > { %1859 = vst [vmem:[%s3123_s13 + $0x108] sm:$0xff] %v1787_v17 }
 0x40f   : > { %v1699_v35 = vpop.f32.mrf.mxu0  ;;  %v1788_v10 = vpop.f32.mrf.mxu1 }
 0x410   : > { %v1700_v48 = vadd.f32 %v1699_v35, %v3115_v15  ;;  %v1789_v38 = vadd.f32 %v1788_v10, %v3117_v36 }
 0x412   : > { %1860 = vst [vmem:[%s3123_s13 + $0x110] sm:$0xff] %v1700_v48 }
 0x413   : > { %1861 = vst [vmem:[%s3123_s13 + $0x118] sm:$0xff] %v1789_v38 }
 0x417   : > { %v1702_v2 = vpop.f32.mrf.mxu0  ;;  %v1791_v44 = vpop.f32.mrf.mxu1 }
 0x418   : > { %v1703_v45 = vadd.f32 %v1702_v2, %v3115_v15  ;;  %v1792_v46 = vadd.f32 %v1791_v44, %v3117_v36 }
 0x41a   : > { %1862 = vst [vmem:[%s3123_s13 + $0x120] sm:$0xff] %v1703_v45 }
 0x41b   : > { %1863 = vst [vmem:[%s3123_s13 + $0x128] sm:$0xff] %v1792_v46 }
 0x41f   : > { %v1704_v41 = vpop.f32.mrf.mxu0  ;;  %v1793_v29 = vpop.f32.mrf.mxu1 }
 0x420   : > { %v1705_v20 = vadd.f32 %v1704_v41, %v3115_v15  ;;  %v1794_v31 = vadd.f32 %v1793_v29, %v3117_v36 }
 0x422   : > { %1864 = vst [vmem:[%s3123_s13 + $0x130] sm:$0xff] %v1705_v20 }
 0x423   : > { %1865 = vst [vmem:[%s3123_s13 + $0x138] sm:$0xff] %v1794_v31 }
 0x427   : > { %v1707_v37 = vpop.f32.mrf.mxu0  ;;  %v1796_v50 = vpop.f32.mrf.mxu1 }
 0x428   : > { %v1708_v51 = vadd.f32 %v1707_v37, %v3115_v15  ;;  %v1797_v5 = vadd.f32 %v1796_v50, %v3117_v36 }
 0x42a   : > { %1866 = vst [vmem:[%s3123_s13 + $0x140] sm:$0xff] %v1708_v51 }
 0x42b   : > { %1867 = vst [vmem:[%s3123_s13 + $0x148] sm:$0xff] %v1797_v5 }
 0x42f   : > { %v1709_v52 = vpop.f32.mrf.mxu0  ;;  %v1798_v56 = vpop.f32.mrf.mxu1 }
 0x430   : > { %v1710_v57 = vadd.f32 %v1709_v52, %v3115_v15  ;;  %v1799_v6 = vadd.f32 %v1798_v56, %v3117_v36 }
 0x432   : > { %1868 = vst [vmem:[%s3123_s13 + $0x150] sm:$0xff] %v1710_v57 }
 0x433   : > { %1869 = vst [vmem:[%s3123_s13 + $0x158] sm:$0xff] %v1799_v6 }
 0x437   : > { %v1712_v58 = vpop.f32.mrf.mxu0  ;;  %v1801_v59 = vpop.f32.mrf.mxu1 }
 0x438   : > { %v1713_v61 = vadd.f32 %v1712_v58, %v3115_v15  ;;  %v1802_v63 = vadd.f32 %v1801_v59, %v3117_v36 }
 0x43a   : > { %1870 = vst [vmem:[%s3123_s13 + $0x160] sm:$0xff] %v1713_v61 }
 0x43b   : > { %1871 = vst [vmem:[%s3123_s13 + $0x168] sm:$0xff] %v1802_v63 }
 0x43f   : > { %v1714_v47 = vpop.f32.mrf.mxu0  ;;  %v1803_v53 = vpop.f32.mrf.mxu1 }
 0x440   : > { %v1715_v60 = vadd.f32 %v1714_v47, %v3115_v15  ;;  %v1804_v1 = vadd.f32 %v1803_v53, %v3117_v36 }
 0x442   : > { %1872 = vst [vmem:[%s3123_s13 + $0x170] sm:$0xff] %v1715_v60 }
 0x443   : > { %1873 = vst [vmem:[%s3123_s13 + $0x178] sm:$0xff] %v1804_v1 }
 0x447   : > { %v1717_v3 = vpop.f32.mrf.mxu0  ;;  %v1806_v39 = vpop.f32.mrf.mxu1 }
 0x448   : > { %v1718_v43 = vadd.f32 %v1717_v3, %v3115_v15  ;;  %v1807_v22 = vadd.f32 %v1806_v39, %v3117_v36 }
 0x44a   : > { %1874 = vst [vmem:[%s3123_s13 + $0x180] sm:$0xff] %v1718_v43 }
 0x44b   : > { %1875 = vst [vmem:[%s3123_s13 + $0x188] sm:$0xff] %v1807_v22 }
 0x44f   : > { %v1719_v40 = vpop.f32.mrf.mxu0  ;;  %v1808_v4 = vpop.f32.mrf.mxu1 }
 0x450   : > { %v1720_v7 = vadd.f32 %v1719_v40, %v3115_v15  ;;  %v1809_v9 = vadd.f32 %v1808_v4, %v3117_v36 }
 0x452   : > { %1876 = vst [vmem:[%s3123_s13 + $0x190] sm:$0xff] %v1720_v7 }
 0x453   : > { %1877 = vst [vmem:[%s3123_s13 + $0x198] sm:$0xff] %v1809_v9 }
 0x457   : > { %v1722_v11 = vpop.f32.mrf.mxu0  ;;  %v1811_v13 = vpop.f32.mrf.mxu1 }
 0x458   : > { %v1723_v12 = vadd.f32 %v1722_v11, %v3115_v15  ;;  %v1812_v24 = vadd.f32 %v1811_v13, %v3117_v36 }
 0x45a   : > { %1878 = vst [vmem:[%s3123_s13 + $0x1a0] sm:$0xff] %v1723_v12 }
 0x45b   : > { %1879 = vst [vmem:[%s3123_s13 + $0x1a8] sm:$0xff] %v1812_v24 }
 0x45f   : > { %v1724_v14 = vpop.f32.mrf.mxu0  ;;  %v1813_v16 = vpop.f32.mrf.mxu1 }
 0x460   : > { %v1725_v18 = vadd.f32 %v1724_v14, %v3115_v15  ;;  %v1814_v19 = vadd.f32 %v1813_v16, %v3117_v36 }
 0x462   : > { %1880 = vst [vmem:[%s3123_s13 + $0x1b0] sm:$0xff] %v1725_v18 }
 0x463   : > { %1881 = vst [vmem:[%s3123_s13 + $0x1b8] sm:$0xff] %v1814_v19 }
 0x467   : > { %v1727_v62 = vpop.f32.mrf.mxu0  ;;  %v1816_v21 = vpop.f32.mrf.mxu1 }
 0x468   : > { %v1728_v23 = vadd.f32 %v1727_v62, %v3115_v15  ;;  %v1817_v49 = vadd.f32 %v1816_v21, %v3117_v36 }
 0x46a   : > { %1882 = vst [vmem:[%s3123_s13 + $0x1c0] sm:$0xff] %v1728_v23 }
 0x46b   : > { %1883 = vst [vmem:[%s3123_s13 + $0x1c8] sm:$0xff] %v1817_v49 }
 0x46f   : > { %v1729_v25 = vpop.f32.mrf.mxu0  ;;  %v1818_v55 = vpop.f32.mrf.mxu1 }
 0x470   : > { %v1730_v0 = vadd.f32 %v1729_v25, %v3115_v15  ;;  %v1819_v27 = vadd.f32 %v1818_v55, %v3117_v36 }
 0x472   : > { %1884 = vst [vmem:[%s3123_s13 + $0x1d0] sm:$0xff] %v1730_v0 }
 0x473   : > { %1885 = vst [vmem:[%s3123_s13 + $0x1d8] sm:$0xff] %v1819_v27 }
 0x477   : > { %v1732_v26 = vpop.f32.mrf.mxu0  ;;  %v1821_v54 = vpop.f32.mrf.mxu1 }
 0x478   : > { %v1733_v28 = vadd.f32 %v1732_v26, %v3115_v15  ;;  %v1822_v42 = vadd.f32 %v1821_v54, %v3117_v36 }
 0x47a   : > { %1886 = vst [vmem:[%s3123_s13 + $0x1e0] sm:$0xff] %v1733_v28 }
 0x47b   : > { %1887 = vst [vmem:[%s3123_s13 + $0x1e8] sm:$0xff] %v1822_v42 }
 0x47f   : > { %v1734_v30 = vpop.f32.mrf.mxu0  ;;  %v1823_v8 = vpop.f32.mrf.mxu1 }
 0x480   : > { %v1735_v32 = vadd.f32 %v1734_v30, %v3115_v15  ;;  %v1824_v33 = vadd.f32 %v1823_v8, %v3117_v36 }
 0x482   : > { %1888 = vst [vmem:[%s3123_s13 + $0x1f0] sm:$0xff] %v1735_v32 }
 0x483   : > { %1889 = vst [vmem:[%s3123_s13 + $0x1f8] sm:$0xff] %v1824_v33 }
 0x484   : > { %2511 = shalt.err (!%p2508_p10)
}
 0x485   : > { %s2564_s14 = smov 256   ;;  %s2565_s13 = smov 16  }
 0x486   : > { %2325 = dma.vmem_to_hbm [thread:$0]  (%p2695_p5), %s1905_s25, 8192, %s1907_s30, %s1891_s21, %s2564_s14, %s2564_s14, %s2565_s13  }
 0x487 PF: > { %s1921_s12 = sand.u32 1, %s2542_s17   ;;  %p3326_p12 = scmp.ge.s32.totalorder %s2554_s20, 2 }
 0x488   : > { %s1922_s1 = scalar_lea.sflag [#allocation4], %s1921_s12 }
 0x489   : > { %p2339_p13 = pnand %p3326_p12, %p2661_p6 }
 0x48b   : > { %p2340_p0 = pneg %p2339_p13 }
 0x48d   : > { %2537 = dma.done.wait (%p2340_p0), %s1922_s1, 8192  }
 0x48e   : > { %2539 = vsyncadd (%p2340_p0), %s1922_s1, 4294959104  ;;  %s3327_s20 = sld [smem:[#allocation13_spill]]  ;;  %s3330_s17 = smov %s2546_s18 }
 0x48f   : > { %s3328_s16 = sld [smem:[#allocation12_spill]] }
 0x490   : > { %s3329_s19 = sld [smem:[#allocation14_spill]] }
 0x494   : > { %p25_p3 = scmp.ge.s32.totalorder %s3327_s20, 4  }
 0x495   : > { %s3331_s18 = smov %s3328_s16 }
 0x496   :  { %27 = sbr.rel (!%p25_p3) target bundleno = 9 (0x9), region = 117 }
 0x49b   :  { %1928 = vsyncpa [#allocation3], 1 }
 0x49c   :  { %1930 = vsyncpa [#allocation3 + $0x1], 1 }
 0x49d   :  { %1931 = vsyncpa [#allocation6], 1 }
 0x49e   :  { %1932 = vsyncpa [#allocation4], 1 }
 0x49f   :  { %1934 = vsyncpa [#allocation4 + $0x1], 1 }

</bundles_post_ra>
